<compile_context>
chip_gen: v6e
topology: v6e:2x2x1
jax: 0.10.0
libtpu: 0.0.40
codegen_flags: <defaults>
</compile_context>

<pallas_src>
import jax
import jax.numpy as jnp
from jax.experimental import pallas as pl
from jax.experimental.pallas import tpu as pltpu


_BN_EPS = 1e-5


# ---------------------------------------------------------------------------
# Fused kernel
# ---------------------------------------------------------------------------
def _fused_kernel(x_ref, w1_ref, b1_ref, w2_ref, b2_ref, w3_ref, b3_ref,
                  wf1_ref, bf1_ref, wf2_ref, bf2_ref, wf3_ref, bf3_ref,
                  wf4_ref, bf4_ref, out_ref, f_acc):
    """Point MLP + running channel-max + lane-dense fc head, one grid sweep.

    Grid = (B, N // tn), nt (reduction) axis last / 'arbitrary'.  The [384,1]
    feature accumulator lives in VMEM scratch across nt; the fc head runs only
    on the final nt step and writes the per-batch [1, 3K] output row.
    """
    nt = pl.program_id(1)

    x = x_ref[0]                                               # [3, tn]

    # conv1 (+BN, ReLU): K=3 contraction on the VPU as broadcast FMAs
    # (keeps the MXU free for conv2/conv3; a K=3 matmul would be lane-sparse).
    w1 = w1_ref[...]                                           # [128, 3]
    y1 = (w1[:, 0:1] * x[0:1, :]
          + w1[:, 1:2] * x[1:2, :]
          + w1[:, 2:3] * x[2:3, :]
          + b1_ref[...])
    y1 = jnp.maximum(y1, 0.0)                                  # [128, tn] f32

    # conv2/conv3 (+BN, ReLU) on the MXU, [C_out,C_in] @ [C_in,tn].
    # Weights may be bf16 (wrapper cast); activations cast at the dot site;
    # accumulation stays f32 via preferred_element_type.
    mxu_dt = w2_ref.dtype
    y2 = jnp.maximum(
        jnp.dot(w2_ref[...], y1.astype(mxu_dt),
                preferred_element_type=jnp.float32) + b2_ref[...], 0.0)
    y3 = jnp.maximum(
        jnp.dot(w3_ref[...], y2.astype(mxu_dt),
                preferred_element_type=jnp.float32) + b3_ref[...], 0.0)

    # Running max over points into sublane slices of the [384,1] accumulator.
    @pl.when(nt == 0)
    def _():
        f_acc[...] = jnp.full((384, 1), -jnp.inf, jnp.float32)

    f_acc[0:128, :] = jnp.maximum(f_acc[0:128, :],
                                  jnp.max(y1, axis=1, keepdims=True))
    f_acc[128:256, :] = jnp.maximum(f_acc[128:256, :],
                                    jnp.max(y2, axis=1, keepdims=True))
    f_acc[256:384, :] = jnp.maximum(f_acc[256:384, :],
                                    jnp.max(y3, axis=1, keepdims=True))

    # Lane-dense fc head (fc1..fc3 +BN +ReLU, fc4) on the last step only.
    @pl.when(nt == pl.num_programs(1) - 1)
    def _():
        # Relayout the [384,1] column to a [1,384] row once per batch:
        # lane-broadcast then a full-tile (384,128)->(128,384) XLU transpose.
        feat = jnp.transpose(jnp.broadcast_to(f_acc[...], (384, 128)))[0:1, :]
        h = jnp.maximum(
            jnp.dot(feat, wf1_ref[...], preferred_element_type=jnp.float32)
            + bf1_ref[...], 0.0)                               # [1, 256]
        h = jnp.maximum(
            jnp.dot(h, wf2_ref[...], preferred_element_type=jnp.float32)
            + bf2_ref[...], 0.0)                               # [1, 256]
        h = jnp.maximum(
            jnp.dot(h, wf3_ref[...], preferred_element_type=jnp.float32)
            + bf3_ref[...], 0.0)                               # [1, 256]
        out_ref[0] = (
            jnp.dot(h, wf4_ref[...], preferred_element_type=jnp.float32)
            + bf4_ref[...])                                    # [1, 3K]


# ---------------------------------------------------------------------------
# Parameter setup / folding (plain-JAX glue)
# ---------------------------------------------------------------------------
def _fold_bn(w, b, gamma, beta, mean, var, eps=_BN_EPS):
    """Fold eval-mode BatchNorm into a [out, in] linear layer."""
    scale = gamma / jnp.sqrt(var + eps)
    w_f = w * scale[:, None]
    b_f = (b - mean) * scale + beta
    return w_f, b_f


def init_params(key, num_out_points):
    ks = iter(jax.random.split(key, 32))

    def lin(k, out_dim, in_dim):
        kw, kb = jax.random.split(k)
        w = jax.random.uniform(kw, (out_dim, in_dim), jnp.float32, -0.1, 0.1)
        b = jax.random.uniform(kb, (out_dim,), jnp.float32, -0.1, 0.1)
        return w, b

    def bn(k, dim):
        k1, k2, k3, k4 = jax.random.split(k, 4)
        gamma = jax.random.uniform(k1, (dim,), jnp.float32, 0.5, 1.5)
        beta = jax.random.uniform(k2, (dim,), jnp.float32, -0.1, 0.1)
        mean = jax.random.uniform(k3, (dim,), jnp.float32, -0.1, 0.1)
        var = jax.random.uniform(k4, (dim,), jnp.float32, 0.5, 1.5)
        return gamma, beta, mean, var

    p = {}
    # conv1d(kernel_size=1) weights: [out_ch, in_ch]
    p["conv1_w"], p["conv1_b"] = lin(next(ks), 128, 3)
    p["conv2_w"], p["conv2_b"] = lin(next(ks), 128, 128)
    p["conv3_w"], p["conv3_b"] = lin(next(ks), 128, 128)
    p["bn1"], p["bn2"], p["bn3"] = bn(next(ks), 128), bn(next(ks), 128), bn(next(ks), 128)
    # fc head (see TODO about fc1 input dim)
    p["fc1_w"], p["fc1_b"] = lin(next(ks), 256, 384)
    p["fc2_w"], p["fc2_b"] = lin(next(ks), 256, 256)
    p["fc3_w"], p["fc3_b"] = lin(next(ks), 256, 256)
    p["fc4_w"], p["fc4_b"] = lin(next(ks), 3 * num_out_points, 256)
    p["bn_fc1"], p["bn_fc2"], p["bn_fc3"] = bn(next(ks), 256), bn(next(ks), 256), bn(next(ks), 256)
    return p


def _vmem_estimate_bytes(tn, out_dim, mxu_bf16):
    """Rough padded, double-buffered VMEM footprint of the fused kernel."""
    wsz = 2 if mxu_bf16 else 4
    lane = lambda n: max(n, 128)
    sub = lambda n: ((n + 7) // 8) * 8
    blocks = 2 * (
        sub(3) * tn * 4                                     # x tile
        + 128 * lane(3) * 4 + 128 * lane(1) * 4             # conv1 w, b
        + 128 * 128 * wsz + 128 * lane(1) * 4               # conv2 w, b
        + 128 * 128 * wsz + 128 * lane(1) * 4               # conv3 w, b
        + 384 * 256 * 4 + sub(1) * 256 * 4                  # fc1 w, b
        + 256 * 256 * 4 + sub(1) * 256 * 4                  # fc2 w, b
        + 256 * 256 * 4 + sub(1) * 256 * 4                  # fc3 w, b
        + 256 * lane(out_dim) * 4 + sub(1) * lane(out_dim) * 4  # fc4 w, b
        + sub(1) * lane(out_dim) * 4)                       # out tile
    live = 3 * 128 * tn * 4                                 # y1/y2/y3 temps
    scratch = 384 * lane(1) * 4                             # f_acc
    return blocks + live + scratch


# ---------------------------------------------------------------------------
# Forward wrapper
# ---------------------------------------------------------------------------
def pure_mlp_net_forward(x_bcn, params, num_out_points, tn=None,
                         mxu_bf16=True, vmem_limit_bytes=None):
    """x_bcn: [B, 3, N] float32 ('bcn' input layout).  Returns (simp, out)."""
    B, C, N = x_bcn.shape
    if C != 3:
        raise RuntimeError("shape of x must be of [Batch x 3 x NumInPoints]")
    if tn is None:
        tn = N if N <= 2048 else 2048
    assert N % tn == 0, "NumInPoints must be a multiple of the point tile"
    assert tn == N or tn % 128 == 0, "point tile must be lane-aligned (x128)"

    # Fold eval-mode BN into the pointwise convs and the fc layers.
    w1, b1 = _fold_bn(params["conv1_w"], params["conv1_b"], *params["bn1"])
    w2, b2 = _fold_bn(params["conv2_w"], params["conv2_b"], *params["bn2"])
    w3, b3 = _fold_bn(params["conv3_w"], params["conv3_b"], *params["bn3"])
    wf1, bf1 = _fold_bn(params["fc1_w"], params["fc1_b"], *params["bn_fc1"])
    wf2, bf2 = _fold_bn(params["fc2_w"], params["fc2_b"], *params["bn_fc2"])
    wf3, bf3 = _fold_bn(params["fc3_w"], params["fc3_b"], *params["bn_fc3"])
    wf4, bf4 = params["fc4_w"], params["fc4_b"]

    # Conv biases as [C,1] columns (channels on sublanes, like activations).
    b1c, b2c, b3c = b1[:, None], b2[:, None], b3[:, None]
    # fc head: wrapper-transposed weights [in,out] and lane-dense (1,C) biases.
    wf1t, wf2t, wf3t, wf4t = wf1.T, wf2.T, wf3.T, wf4.T
    bf1r, bf2r, bf3r, bf4r = bf1[None, :], bf2[None, :], bf3[None, :], bf4[None, :]

    if mxu_bf16:
        # Only the MXU operands of conv2/conv3 go bf16 (f32 accumulation kept);
        # VPU/EUP work stays f32 (v5e has no bf16 VALU).
        w2 = w2.astype(jnp.bfloat16)
        w3 = w3.astype(jnp.bfloat16)

    out_dim = 3 * num_out_points
    const = lambda b, n: (0, 0)

    # VMEM budget: assert against v7x's smaller per-core VMEM; only set an
    # explicit scoped limit if we exceed v5e's 16 MiB default.
    est = _vmem_estimate_bytes(tn, out_dim, mxu_bf16)
    assert est < 48 * 1024 * 1024, (
        f"VMEM estimate {est/2**20:.1f} MiB too large for v7x; reduce tn")
    if vmem_limit_bytes is None and est > 14 * 1024 * 1024:
        vmem_limit_bytes = int(est * 1.25)

    flops = (2 * B * N * (3 * 128 + 128 * 128 + 128 * 128)
             + 2 * B * (384 * 256 + 256 * 256 + 256 * 256 + 256 * out_dim))
    bytes_accessed = int(
        4 * x_bcn.size + w1.size * 4 + w2.size * w2.dtype.itemsize
        + w3.size * w3.dtype.itemsize
        + 4 * (wf1t.size + wf2t.size + wf3t.size + wf4t.size + B * out_dim))

    y_row = pl.pallas_call(
        _fused_kernel,
        out_shape=jax.ShapeDtypeStruct((B, 1, out_dim), jnp.float32),
        grid_spec=pltpu.PrefetchScalarGridSpec(
            num_scalar_prefetch=0,
            grid=(B, N // tn),
            in_specs=[
                pl.BlockSpec((1, 3, tn), lambda b, n: (b, 0, n)),  # x (bcn)
                pl.BlockSpec((128, 3), const),        # conv1 w
                pl.BlockSpec((128, 1), const),        # conv1 b (column)
                pl.BlockSpec((128, 128), const),      # conv2 w (maybe bf16)
                pl.BlockSpec((128, 1), const),        # conv2 b
                pl.BlockSpec((128, 128), const),      # conv3 w (maybe bf16)
                pl.BlockSpec((128, 1), const),        # conv3 b
                pl.BlockSpec((384, 256), const),      # fc1 w^T
                pl.BlockSpec((1, 256), const),        # fc1 b (row)
                pl.BlockSpec((256, 256), const),      # fc2 w^T
                pl.BlockSpec((1, 256), const),        # fc2 b
                pl.BlockSpec((256, 256), const),      # fc3 w^T
                pl.BlockSpec((1, 256), const),        # fc3 b
                pl.BlockSpec((256, out_dim), const),  # fc4 w^T
                pl.BlockSpec((1, out_dim), const),    # fc4 b
            ],
            out_specs=pl.BlockSpec((1, 1, out_dim), lambda b, n: (b, 0, 0)),
            scratch_shapes=[pltpu.VMEM((384, 1), jnp.float32)],
        ),
        compiler_params=pltpu.CompilerParams(
            dimension_semantics=("parallel", "arbitrary"),
            vmem_limit_bytes=vmem_limit_bytes),
        cost_estimate=pl.CostEstimate(
            flops=flops, transcendentals=0, bytes_accessed=bytes_accessed),
    )(x_bcn, w1, b1c, w2, b2c, w3, b3c,
      wf1t, bf1r, wf2t, bf2r, wf3t, bf3r, wf4t, bf4r)

    simp = y_row.reshape(B, 3, num_out_points)   # output_shape='bcn'
    proj = simp                                  # skip_projection=True semantics
    return simp, proj


# ---------------------------------------------------------------------------
# Pure-JAX reference (for the correctness sanity check)
# ---------------------------------------------------------------------------
def _reference_forward(x_bcn, params, num_out_points):
    def bn_eval(v, stats):
        gamma, beta, mean, var = stats
        return gamma * (v - mean) / jnp.sqrt(var + _BN_EPS) + beta

    with jax.default_matmul_precision("highest"):
        x = jnp.transpose(x_bcn, (0, 2, 1))                           # [B, N, 3]
        y1 = jax.nn.relu(bn_eval(x @ params["conv1_w"].T + params["conv1_b"], params["bn1"]))
        y2 = jax.nn.relu(bn_eval(y1 @ params["conv2_w"].T + params["conv2_b"], params["bn2"]))
        y3 = jax.nn.relu(bn_eval(y2 @ params["conv3_w"].T + params["conv3_b"], params["bn3"]))
        feat = jnp.max(jnp.concatenate([y1, y2, y3], axis=-1), axis=1)  # [B, 384]
        h = jax.nn.relu(bn_eval(feat @ params["fc1_w"].T + params["fc1_b"], params["bn_fc1"]))
        h = jax.nn.relu(bn_eval(h @ params["fc2_w"].T + params["fc2_b"], params["bn_fc2"]))
        h = jax.nn.relu(bn_eval(h @ params["fc3_w"].T + params["fc3_b"], params["bn_fc3"]))
        y = h @ params["fc4_w"].T + params["fc4_b"]
    return y.reshape(-1, 3, num_out_points)


# ---------------------------------------------------------------------------
if __name__ == "__main__":
    B, N = 2, 1024
    NUM_OUT_POINTS = 16

    key = jax.random.PRNGKey(0)
    k_x, k_p = jax.random.split(key)
    x = jax.random.normal(k_x, (B, 3, N), jnp.float32)                # 'bcn' input
    params = init_params(k_p, NUM_OUT_POINTS)

    ref = _reference_forward(x, params, NUM_OUT_POINTS)
    ref = jax.block_until_ready(ref)

    # 1) Strict f32 path, small tile to exercise the multi-step running max.
    simp32, out32 = pure_mlp_net_forward(x, params, NUM_OUT_POINTS,
                                         tn=256, mxu_bf16=False)
    simp32 = jax.block_until_ready(simp32)
    out32 = jax.block_until_ready(out32)
    assert simp32.shape == (B, 3, NUM_OUT_POINTS)
    if not jnp.allclose(simp32, ref, rtol=1e-3, atol=1e-3):
        raise AssertionError("Pallas f32 output mismatches JAX reference")

    # 2) Default fast path: tn = min(N, 2048), bf16 MXU operands on conv2/conv3.
    simp_fast, out_fast = pure_mlp_net_forward(x, params, NUM_OUT_POINTS)
    simp_fast = jax.block_until_ready(simp_fast)
    out_fast = jax.block_until_ready(out_fast)
    assert simp_fast.shape == (B, 3, NUM_OUT_POINTS)
    err = float(jnp.max(jnp.abs(simp_fast - ref)))
    scale = float(jnp.max(jnp.abs(ref)))
    if err > 5e-2 * scale + 1e-3:
        raise AssertionError(
            f"Pallas bf16-MXU output error too large: {err} (scale {scale})")

    print("KERNEL_OK")
</pallas_src>

<mosaic_0001>
module attributes {stable_mosaic.version = 11 : i64} {
  func.func @_fused_kernel(%arg0: i32, %arg1: i32, %arg2: memref<1x3x256xf32, #tpu.memory_space<vmem>>, %arg3: memref<128x3xf32, #tpu.memory_space<vmem>>, %arg4: memref<128x1xf32, #tpu.memory_space<vmem>>, %arg5: memref<128x128xf32, #tpu.memory_space<vmem>>, %arg6: memref<128x1xf32, #tpu.memory_space<vmem>>, %arg7: memref<128x128xf32, #tpu.memory_space<vmem>>, %arg8: memref<128x1xf32, #tpu.memory_space<vmem>>, %arg9: memref<384x256xf32, #tpu.memory_space<vmem>>, %arg10: memref<1x256xf32, #tpu.memory_space<vmem>>, %arg11: memref<256x256xf32, #tpu.memory_space<vmem>>, %arg12: memref<1x256xf32, #tpu.memory_space<vmem>>, %arg13: memref<256x256xf32, #tpu.memory_space<vmem>>, %arg14: memref<1x256xf32, #tpu.memory_space<vmem>>, %arg15: memref<256x48xf32, #tpu.memory_space<vmem>>, %arg16: memref<1x48xf32, #tpu.memory_space<vmem>>, %arg17: memref<1x1x48xf32, #tpu.memory_space<vmem>>, %arg18: memref<384x1xf32, #tpu.memory_space<vmem>>) attributes {dimension_semantics = [#tpu.dimension_semantics<parallel>, #tpu.dimension_semantics<arbitrary>], iteration_bounds = array<i64: 2, 4>, scalar_prefetch = 0 : i64, scratch_operands = 1 : i64, tpu.core_type = #tpu.core_type<tc>, window_params = [{transform_indices = @transform_0, window_bounds = array<i64: 1, 3, 256>}, {pipeline_mode = #tpu.pipeline_mode<synchronous>, transform_indices = @transform_1, window_bounds = array<i64: 128, 3>}, {pipeline_mode = #tpu.pipeline_mode<synchronous>, transform_indices = @transform_2, window_bounds = array<i64: 128, 1>}, {pipeline_mode = #tpu.pipeline_mode<synchronous>, transform_indices = @transform_3, window_bounds = array<i64: 128, 128>}, {pipeline_mode = #tpu.pipeline_mode<synchronous>, transform_indices = @transform_4, window_bounds = array<i64: 128, 1>}, {pipeline_mode = #tpu.pipeline_mode<synchronous>, transform_indices = @transform_5, window_bounds = array<i64: 128, 128>}, {pipeline_mode = #tpu.pipeline_mode<synchronous>, transform_indices = @transform_6, window_bounds = array<i64: 128, 1>}, {pipeline_mode = #tpu.pipeline_mode<synchronous>, transform_indices = @transform_7, window_bounds = array<i64: 384, 256>}, {pipeline_mode = #tpu.pipeline_mode<synchronous>, transform_indices = @transform_8, window_bounds = array<i64: 1, 256>}, {pipeline_mode = #tpu.pipeline_mode<synchronous>, transform_indices = @transform_9, window_bounds = array<i64: 256, 256>}, {pipeline_mode = #tpu.pipeline_mode<synchronous>, transform_indices = @transform_10, window_bounds = array<i64: 1, 256>}, {pipeline_mode = #tpu.pipeline_mode<synchronous>, transform_indices = @transform_11, window_bounds = array<i64: 256, 256>}, {pipeline_mode = #tpu.pipeline_mode<synchronous>, transform_indices = @transform_12, window_bounds = array<i64: 1, 256>}, {pipeline_mode = #tpu.pipeline_mode<synchronous>, transform_indices = @transform_13, window_bounds = array<i64: 256, 48>}, {pipeline_mode = #tpu.pipeline_mode<synchronous>, transform_indices = @transform_14, window_bounds = array<i64: 1, 48>}, {transform_indices = @transform_15, window_bounds = array<i64: 1, 1, 48>}]} {
    %c0 = arith.constant 0 : index
    %c0_0 = arith.constant 0 : index
    %c0_1 = arith.constant 0 : index
    %0 = vector.load %arg2[%c0, %c0_0, %c0_1] : memref<1x3x256xf32, #tpu.memory_space<vmem>>, vector<1x3x256xf32>
    %1 = vector.shape_cast %0 : vector<1x3x256xf32> to vector<3x256xf32>
    %c0_2 = arith.constant 0 : index
    %c0_3 = arith.constant 0 : index
    %2 = vector.load %arg3[%c0_2, %c0_3] : memref<128x3xf32, #tpu.memory_space<vmem>>, vector<128x3xf32>
    %3 = vector.extract_strided_slice %2 {offsets = [0, 0], sizes = [128, 1], strides = [1, 1]} : vector<128x3xf32> to vector<128x1xf32>
    %4 = vector.extract_strided_slice %1 {offsets = [0, 0], sizes = [1, 256], strides = [1, 1]} : vector<3x256xf32> to vector<1x256xf32>
    %5 = vector.broadcast %3 : vector<128x1xf32> to vector<128x256xf32>
    %6 = vector.broadcast %4 : vector<1x256xf32> to vector<128x256xf32>
    %7 = arith.mulf %5, %6 : vector<128x256xf32>
    %8 = vector.extract_strided_slice %2 {offsets = [0, 1], sizes = [128, 1], strides = [1, 1]} : vector<128x3xf32> to vector<128x1xf32>
    %9 = vector.extract_strided_slice %1 {offsets = [1, 0], sizes = [1, 256], strides = [1, 1]} : vector<3x256xf32> to vector<1x256xf32>
    %10 = vector.broadcast %8 : vector<128x1xf32> to vector<128x256xf32>
    %11 = vector.broadcast %9 : vector<1x256xf32> to vector<128x256xf32>
    %12 = arith.mulf %10, %11 : vector<128x256xf32>
    %13 = arith.addf %7, %12 : vector<128x256xf32>
    %14 = vector.extract_strided_slice %2 {offsets = [0, 2], sizes = [128, 1], strides = [1, 1]} : vector<128x3xf32> to vector<128x1xf32>
    %15 = vector.extract_strided_slice %1 {offsets = [2, 0], sizes = [1, 256], strides = [1, 1]} : vector<3x256xf32> to vector<1x256xf32>
    %16 = vector.broadcast %14 : vector<128x1xf32> to vector<128x256xf32>
    %17 = vector.broadcast %15 : vector<1x256xf32> to vector<128x256xf32>
    %18 = arith.mulf %16, %17 : vector<128x256xf32>
    %19 = arith.addf %13, %18 : vector<128x256xf32>
    %c0_4 = arith.constant 0 : index
    %c0_5 = arith.constant 0 : index
    %20 = vector.load %arg4[%c0_4, %c0_5] : memref<128x1xf32, #tpu.memory_space<vmem>>, vector<128x1xf32>
    %21 = vector.broadcast %20 : vector<128x1xf32> to vector<128x256xf32>
    %22 = arith.addf %19, %21 : vector<128x256xf32>
    %cst = arith.constant 0.000000e+00 : f32
    %23 = vector.broadcast %cst : f32 to vector<128x256xf32>
    %24 = arith.maximumf %22, %23 : vector<128x256xf32>
    %c0_6 = arith.constant 0 : index
    %c0_7 = arith.constant 0 : index
    %25 = vector.load %arg5[%c0_6, %c0_7] : memref<128x128xf32, #tpu.memory_space<vmem>>, vector<128x128xf32>
    %cst_8 = arith.constant dense<0.000000e+00> : vector<128x256xf32>
    %26 = tpu.matmul %25, %24, %cst_8 {dimension_numbers = #tpu.dot_dimension_numbers<[1], [0], [0], [1], [0, 0, 1, 1], [], []>} : vector<128x128xf32>, vector<128x256xf32>, vector<128x256xf32> -> vector<128x256xf32>
    %c0_9 = arith.constant 0 : index
    %c0_10 = arith.constant 0 : index
    %27 = vector.load %arg6[%c0_9, %c0_10] : memref<128x1xf32, #tpu.memory_space<vmem>>, vector<128x1xf32>
    %28 = vector.broadcast %27 : vector<128x1xf32> to vector<128x256xf32>
    %29 = arith.addf %26, %28 : vector<128x256xf32>
    %cst_11 = arith.constant 0.000000e+00 : f32
    %30 = vector.broadcast %cst_11 : f32 to vector<128x256xf32>
    %31 = arith.maximumf %29, %30 : vector<128x256xf32>
    %c0_12 = arith.constant 0 : index
    %c0_13 = arith.constant 0 : index
    %32 = vector.load %arg7[%c0_12, %c0_13] : memref<128x128xf32, #tpu.memory_space<vmem>>, vector<128x128xf32>
    %cst_14 = arith.constant dense<0.000000e+00> : vector<128x256xf32>
    %33 = tpu.matmul %32, %31, %cst_14 {dimension_numbers = #tpu.dot_dimension_numbers<[1], [0], [0], [1], [0, 0, 1, 1], [], []>} : vector<128x128xf32>, vector<128x256xf32>, vector<128x256xf32> -> vector<128x256xf32>
    %c0_15 = arith.constant 0 : index
    %c0_16 = arith.constant 0 : index
    %34 = vector.load %arg8[%c0_15, %c0_16] : memref<128x1xf32, #tpu.memory_space<vmem>>, vector<128x1xf32>
    %35 = vector.broadcast %34 : vector<128x1xf32> to vector<128x256xf32>
    %36 = arith.addf %33, %35 : vector<128x256xf32>
    %cst_17 = arith.constant 0.000000e+00 : f32
    %37 = vector.broadcast %cst_17 : f32 to vector<128x256xf32>
    %38 = arith.maximumf %36, %37 : vector<128x256xf32>
    %c0_i32 = arith.constant 0 : i32
    %39 = arith.cmpi eq, %arg1, %c0_i32 : i32
    %40 = arith.extui %39 : i1 to i32
    %c0_i32_18 = arith.constant 0 : i32
    %41 = arith.cmpi ne, %40, %c0_i32_18 : i32
    scf.if %41 {
      %cst_33 = arith.constant 0xFF800000 : f32
      %60 = vector.broadcast %cst_33 : f32 to vector<384x1xf32>
      %c0_34 = arith.constant 0 : index
      %c0_35 = arith.constant 0 : index
      %61 = vector.load %arg18[%c0_34, %c0_35] : memref<384x1xf32, #tpu.memory_space<vmem>>, vector<384x1xf32>
      tpu.vector_store %arg18[%c0_34, %c0_35], %60 {strides = array<i32>} : memref<384x1xf32, #tpu.memory_space<vmem>>, vector<384x1xf32>,
    } else {
    }
    %c0_19 = arith.constant 0 : index
    %c0_20 = arith.constant 0 : index
    %42 = vector.load %arg18[%c0_19, %c0_20] : memref<384x1xf32, #tpu.memory_space<vmem>>, vector<128x1xf32>
    %cst_21 = arith.constant dense<0xFF800000> : vector<128xf32>
    %43 = vector.multi_reduction <maximumf>, %24, %cst_21 [1] : vector<128x256xf32> to vector<128xf32>
    %44 = vector.shape_cast %43 : vector<128xf32> to vector<128x1xf32>
    %45 = arith.maximumf %42, %44 : vector<128x1xf32>
    %c0_22 = arith.constant 0 : index
    %c0_23 = arith.constant 0 : index
    %46 = vector.load %arg18[%c0_22, %c0_23] : memref<384x1xf32, #tpu.memory_space<vmem>>, vector<128x1xf32>
    tpu.vector_store %arg18[%c0_22, %c0_23], %45 {strides = array<i32>} : memref<384x1xf32, #tpu.memory_space<vmem>>, vector<128x1xf32>,
    %c128 = arith.constant 128 : index
    %c0_24 = arith.constant 0 : index
    %47 = vector.load %arg18[%c128, %c0_24] : memref<384x1xf32, #tpu.memory_space<vmem>>, vector<128x1xf32>
    %cst_25 = arith.constant dense<0xFF800000> : vector<128xf32>
    %48 = vector.multi_reduction <maximumf>, %31, %cst_25 [1] : vector<128x256xf32> to vector<128xf32>
    %49 = vector.shape_cast %48 : vector<128xf32> to vector<128x1xf32>
    %50 = arith.maximumf %47, %49 : vector<128x1xf32>
    %c128_26 = arith.constant 128 : index
    %c0_27 = arith.constant 0 : index
    %51 = vector.load %arg18[%c128_26, %c0_27] : memref<384x1xf32, #tpu.memory_space<vmem>>, vector<128x1xf32>
    tpu.vector_store %arg18[%c128_26, %c0_27], %50 {strides = array<i32>} : memref<384x1xf32, #tpu.memory_space<vmem>>, vector<128x1xf32>,
    %c256 = arith.constant 256 : index
    %c0_28 = arith.constant 0 : index
    %52 = vector.load %arg18[%c256, %c0_28] : memref<384x1xf32, #tpu.memory_space<vmem>>, vector<128x1xf32>
    %cst_29 = arith.constant dense<0xFF800000> : vector<128xf32>
    %53 = vector.multi_reduction <maximumf>, %38, %cst_29 [1] : vector<128x256xf32> to vector<128xf32>
    %54 = vector.shape_cast %53 : vector<128xf32> to vector<128x1xf32>
    %55 = arith.maximumf %52, %54 : vector<128x1xf32>
    %c256_30 = arith.constant 256 : index
    %c0_31 = arith.constant 0 : index
    %56 = vector.load %arg18[%c256_30, %c0_31] : memref<384x1xf32, #tpu.memory_space<vmem>>, vector<128x1xf32>
    tpu.vector_store %arg18[%c256_30, %c0_31], %55 {strides = array<i32>} : memref<384x1xf32, #tpu.memory_space<vmem>>, vector<128x1xf32>,
    %c3_i32 = arith.constant 3 : i32
    %57 = arith.cmpi eq, %arg1, %c3_i32 : i32
    %58 = arith.extui %57 : i1 to i32
    %c0_i32_32 = arith.constant 0 : i32
    %59 = arith.cmpi ne, %58, %c0_i32_32 : i32
    scf.if %59 {
      %c0_33 = arith.constant 0 : index
      %c0_34 = arith.constant 0 : index
      %60 = vector.load %arg18[%c0_33, %c0_34] : memref<384x1xf32, #tpu.memory_space<vmem>>, vector<384x1xf32>
      %61 = vector.shape_cast %60 : vector<384x1xf32> to vector<384x1xf32>
      %62 = vector.broadcast %61 : vector<384x1xf32> to vector<384x128xf32>
      %63 = tpu.transpose %62, [1, 0] : vector<384x128xf32> -> vector<128x384xf32>
      %64 = vector.extract_strided_slice %63 {offsets = [0, 0], sizes = [1, 384], strides = [1, 1]} : vector<128x384xf32> to vector<1x384xf32>
      %c0_35 = arith.constant 0 : index
      %c0_36 = arith.constant 0 : index
      %65 = vector.load %arg9[%c0_35, %c0_36] : memref<384x256xf32, #tpu.memory_space<vmem>>, vector<384x256xf32>
      %cst_37 = arith.constant dense<0.000000e+00> : vector<1x256xf32>
      %66 = tpu.matmul %64, %65, %cst_37 {dimension_numbers = #tpu.dot_dimension_numbers<[1], [0], [0], [1], [0, 0, 1, 1], [], []>} : vector<1x384xf32>, vector<384x256xf32>, vector<1x256xf32> -> vector<1x256xf32>
      %c0_38 = arith.constant 0 : index
      %c0_39 = arith.constant 0 : index
      %67 = vector.load %arg10[%c0_38, %c0_39] : memref<1x256xf32, #tpu.memory_space<vmem>>, vector<1x256xf32>
      %68 = arith.addf %66, %67 : vector<1x256xf32>
      %cst_40 = arith.constant 0.000000e+00 : f32
      %69 = vector.broadcast %cst_40 : f32 to vector<1x256xf32>
      %70 = arith.maximumf %68, %69 : vector<1x256xf32>
      %c0_41 = arith.constant 0 : index
      %c0_42 = arith.constant 0 : index
      %71 = vector.load %arg11[%c0_41, %c0_42] : memref<256x256xf32, #tpu.memory_space<vmem>>, vector<256x256xf32>
      %cst_43 = arith.constant dense<0.000000e+00> : vector<1x256xf32>
      %72 = tpu.matmul %70, %71, %cst_43 {dimension_numbers = #tpu.dot_dimension_numbers<[1], [0], [0], [1], [0, 0, 1, 1], [], []>} : vector<1x256xf32>, vector<256x256xf32>, vector<1x256xf32> -> vector<1x256xf32>
      %c0_44 = arith.constant 0 : index
      %c0_45 = arith.constant 0 : index
      %73 = vector.load %arg12[%c0_44, %c0_45] : memref<1x256xf32, #tpu.memory_space<vmem>>, vector<1x256xf32>
      %74 = arith.addf %72, %73 : vector<1x256xf32>
      %cst_46 = arith.constant 0.000000e+00 : f32
      %75 = vector.broadcast %cst_46 : f32 to vector<1x256xf32>
      %76 = arith.maximumf %74, %75 : vector<1x256xf32>
      %c0_47 = arith.constant 0 : index
      %c0_48 = arith.constant 0 : index
      %77 = vector.load %arg13[%c0_47, %c0_48] : memref<256x256xf32, #tpu.memory_space<vmem>>, vector<256x256xf32>
      %cst_49 = arith.constant dense<0.000000e+00> : vector<1x256xf32>
      %78 = tpu.matmul %76, %77, %cst_49 {dimension_numbers = #tpu.dot_dimension_numbers<[1], [0], [0], [1], [0, 0, 1, 1], [], []>} : vector<1x256xf32>, vector<256x256xf32>, vector<1x256xf32> -> vector<1x256xf32>
      %c0_50 = arith.constant 0 : index
      %c0_51 = arith.constant 0 : index
      %79 = vector.load %arg14[%c0_50, %c0_51] : memref<1x256xf32, #tpu.memory_space<vmem>>, vector<1x256xf32>
      %80 = arith.addf %78, %79 : vector<1x256xf32>
      %cst_52 = arith.constant 0.000000e+00 : f32
      %81 = vector.broadcast %cst_52 : f32 to vector<1x256xf32>
      %82 = arith.maximumf %80, %81 : vector<1x256xf32>
      %c0_53 = arith.constant 0 : index
      %c0_54 = arith.constant 0 : index
      %83 = vector.load %arg15[%c0_53, %c0_54] : memref<256x48xf32, #tpu.memory_space<vmem>>, vector<256x48xf32>
      %cst_55 = arith.constant dense<0.000000e+00> : vector<1x48xf32>
      %84 = tpu.matmul %82, %83, %cst_55 {dimension_numbers = #tpu.dot_dimension_numbers<[1], [0], [0], [1], [0, 0, 1, 1], [], []>} : vector<1x256xf32>, vector<256x48xf32>, vector<1x48xf32> -> vector<1x48xf32>
      %c0_56 = arith.constant 0 : index
      %c0_57 = arith.constant 0 : index
      %85 = vector.load %arg16[%c0_56, %c0_57] : memref<1x48xf32, #tpu.memory_space<vmem>>, vector<1x48xf32>
      %86 = arith.addf %84, %85 : vector<1x48xf32>
      %c0_58 = arith.constant 0 : index
      %c0_59 = arith.constant 0 : index
      %c0_60 = arith.constant 0 : index
      %87 = vector.load %arg17[%c0_58, %c0_59, %c0_60] : memref<1x1x48xf32, #tpu.memory_space<vmem>>, vector<1x1x48xf32>
      %88 = vector.shape_cast %87 : vector<1x1x48xf32> to vector<1x48xf32>
      %89 = vector.shape_cast %86 : vector<1x48xf32> to vector<1x1x48xf32>
      tpu.vector_store %arg17[%c0_58, %c0_59, %c0_60], %89 {strides = array<i32>} : memref<1x1x48xf32, #tpu.memory_space<vmem>>, vector<1x1x48xf32>,
    } else {
    }
    return
  }
  func.func @transform_0(%arg0: i32, %arg1: i32) -> (i32, i32, i32) {
    %c0_i32 = arith.constant 0 : i32
    %c0_i32_0 = arith.constant 0 : i32
    return %arg0, %c0_i32, %arg1 : i32, i32, i32
  }
  func.func @transform_1(%arg0: i32, %arg1: i32) -> (i32, i32) {
    %c0_i32 = arith.constant 0 : i32
    %c0_i32_0 = arith.constant 0 : i32
    %c0_i32_1 = arith.constant 0 : i32
    return %c0_i32, %c0_i32_0 : i32, i32
  }
  func.func @transform_2(%arg0: i32, %arg1: i32) -> (i32, i32) {
    %c0_i32 = arith.constant 0 : i32
    %c0_i32_0 = arith.constant 0 : i32
    %c0_i32_1 = arith.constant 0 : i32
    return %c0_i32, %c0_i32_0 : i32, i32
  }
  func.func @transform_3(%arg0: i32, %arg1: i32) -> (i32, i32) {
    %c0_i32 = arith.constant 0 : i32
    %c0_i32_0 = arith.constant 0 : i32
    %c0_i32_1 = arith.constant 0 : i32
    return %c0_i32, %c0_i32_0 : i32, i32
  }
  func.func @transform_4(%arg0: i32, %arg1: i32) -> (i32, i32) {
    %c0_i32 = arith.constant 0 : i32
    %c0_i32_0 = arith.constant 0 : i32
    %c0_i32_1 = arith.constant 0 : i32
    return %c0_i32, %c0_i32_0 : i32, i32
  }
  func.func @transform_5(%arg0: i32, %arg1: i32) -> (i32, i32) {
    %c0_i32 = arith.constant 0 : i32
    %c0_i32_0 = arith.constant 0 : i32
    %c0_i32_1 = arith.constant 0 : i32
    return %c0_i32, %c0_i32_0 : i32, i32
  }
  func.func @transform_6(%arg0: i32, %arg1: i32) -> (i32, i32) {
    %c0_i32 = arith.constant 0 : i32
    %c0_i32_0 = arith.constant 0 : i32
    %c0_i32_1 = arith.constant 0 : i32
    return %c0_i32, %c0_i32_0 : i32, i32
  }
  func.func @transform_7(%arg0: i32, %arg1: i32) -> (i32, i32) {
    %c0_i32 = arith.constant 0 : i32
    %c0_i32_0 = arith.constant 0 : i32
    %c0_i32_1 = arith.constant 0 : i32
    return %c0_i32, %c0_i32_0 : i32, i32
  }
  func.func @transform_8(%arg0: i32, %arg1: i32) -> (i32, i32) {
    %c0_i32 = arith.constant 0 : i32
    %c0_i32_0 = arith.constant 0 : i32
    %c0_i32_1 = arith.constant 0 : i32
    return %c0_i32, %c0_i32_0 : i32, i32
  }
  func.func @transform_9(%arg0: i32, %arg1: i32) -> (i32, i32) {
    %c0_i32 = arith.constant 0 : i32
    %c0_i32_0 = arith.constant 0 : i32
    %c0_i32_1 = arith.constant 0 : i32
    return %c0_i32, %c0_i32_0 : i32, i32
  }
  func.func @transform_10(%arg0: i32, %arg1: i32) -> (i32, i32) {
    %c0_i32 = arith.constant 0 : i32
    %c0_i32_0 = arith.constant 0 : i32
    %c0_i32_1 = arith.constant 0 : i32
    return %c0_i32, %c0_i32_0 : i32, i32
  }
  func.func @transform_11(%arg0: i32, %arg1: i32) -> (i32, i32) {
    %c0_i32 = arith.constant 0 : i32
    %c0_i32_0 = arith.constant 0 : i32
    %c0_i32_1 = arith.constant 0 : i32
    return %c0_i32, %c0_i32_0 : i32, i32
  }
  func.func @transform_12(%arg0: i32, %arg1: i32) -> (i32, i32) {
    %c0_i32 = arith.constant 0 : i32
    %c0_i32_0 = arith.constant 0 : i32
    %c0_i32_1 = arith.constant 0 : i32
    return %c0_i32, %c0_i32_0 : i32, i32
  }
  func.func @transform_13(%arg0: i32, %arg1: i32) -> (i32, i32) {
    %c0_i32 = arith.constant 0 : i32
    %c0_i32_0 = arith.constant 0 : i32
    %c0_i32_1 = arith.constant 0 : i32
    return %c0_i32, %c0_i32_0 : i32, i32
  }
  func.func @transform_14(%arg0: i32, %arg1: i32) -> (i32, i32) {
    %c0_i32 = arith.constant 0 : i32
    %c0_i32_0 = arith.constant 0 : i32
    %c0_i32_1 = arith.constant 0 : i32
    return %c0_i32, %c0_i32_0 : i32, i32
  }
  func.func @transform_15(%arg0: i32, %arg1: i32) -> (i32, i32, i32) {
    %c0_i32 = arith.constant 0 : i32
    %c0_i32_0 = arith.constant 0 : i32
    %c0_i32_1 = arith.constant 0 : i32
    return %arg0, %c0_i32, %c0_i32_0 : i32, i32, i32
  }
}

</mosaic_0001>

<bundles_post_ra>
// kernel: tpu_custom_call.1
= control target key start
LH: loop header
LB: loop body
LE: loop exit
PB: predicated region body
PF: predicated region fallthrough
CT: control target
= control target key end

     0   :  { %s5811_s0 = inlined_call_operand.vmem [shape: f32[2,3,1024], index: 0, kind: input, shape index: {}]   ;;  %s5812_s1 = inlined_call_operand.vmem [shape: f32[128,3], index: 1, kind: input, shape index: {}]   ;;  %s5813_s2 = inlined_call_operand.vmem [shape: f32[128,1], index: 2, kind: input, shape index: {}]   ;;  %s5814_s3 = inlined_call_operand.vmem [shape: f32[128,128], index: 3, kind: input, shape index: {}]   ;;  %s5815_s4 = inlined_call_operand.vmem [shape: f32[128,1], index: 4, kind: input, shape index: {}]   ;;  %s5816_s5 = inlined_call_operand.hbm [shape: f32[128,128], index: 5, kind: input, shape index: {}]   ;;  %s5817_s6 = inlined_call_operand.vmem [shape: f32[128,1], index: 6, kind: input, shape index: {}]   ;;  %s5818_s7 = inlined_call_operand.vmem [shape: f32[384,256], index: 7, kind: input, shape index: {}]   ;;  %s5819_s8 = inlined_call_operand.vmem [shape: f32[1,256], index: 8, kind: input, shape index: {}]   ;;  %s5820_s9 = inlined_call_operand.hbm [shape: f32[256,256], index: 9, kind: input, shape index: {}]   ;;  %s5821_s10 = inlined_call_operand.vmem [shape: f32[1,256], index: 10, kind: input, shape index: {}]   ;;  %s5822_s11 = inlined_call_operand.hbm [shape: f32[256,256], index: 11, kind: input, shape index: {}]   ;;  %s5823_s12 = inlined_call_operand.vmem [shape: f32[1,256], index: 12, kind: input, shape index: {}]   ;;  %s5824_s13 = inlined_call_operand.vmem [shape: f32[256,48], index: 13, kind: input, shape index: {}]   ;;  %s5825_s14 = inlined_call_operand.vmem [shape: f32[1,48], index: 14, kind: input, shape index: {}]   ;;  %s5826_s15 = inlined_call_operand.hbm [shape: f32[2,1,48], index: 15, kind: output, shape index: {}]  }
   0x1   :  { %5952 = sst [smem:[#allocation68_spill]] %s5826_s15 }
   0x2   :  { %20 = vsyncpa [#allocation4], 0 }
   0x3   :  { %21 = vsyncpa [#allocation7], 0 }
   0x4   :  { %22 = vsyncpa [#allocation5], 0 }
   0x5   :  { %24 = vsyncpa [#allocation5 + $0x1], 0  ;;  %s3916_s18 = smov 0   ;;  %s3918_s19 = smov 0  }
   0x6   :  { %s3920_s20 = smov 0   ;;  %s3922_s21 = smov 0  }
   0x7   :  { %s3924_s22 = smov 0   ;;  %s3926_s23 = smov 0  }
   0x8   :  { %s3928_s24 = smov 0   ;;  %s3930_s25 = smov 0  }
   0x9 LB: > { %5953 = sst [smem:[#allocation13_spill]] %s3791_s18  ;;  %s3275_s26 = sadd.s32 4294967295, %s3819_s25   ;;  %s3819_s25 = sphi %s3930_s25, %s30_s25   ;;  %s3815_s24 = sphi %s3928_s24, %s6166_s24   ;;  %s3811_s23 = sphi %s3926_s23, %s6165_s23   ;;  %s3807_s22 = sphi %s3924_s22, %s6169_s22   ;;  %s3803_s21 = sphi %s3922_s21, %s6163_s21   ;;  %s3799_s20 = sphi %s3920_s20, %s6162_s20   ;;  %s3795_s19 = sphi %s3918_s19, %s6168_s19   ;;  %s3791_s18 = sphi %s3916_s18, %s6167_s18  }
   0xa   : > { %5954 = sst [smem:[#allocation14_spill]] %s3799_s20  ;;  %s3276_s27 = sadd.s32 4294967294, %s3819_s25  }
   0xb   : > { %5955 = sst [smem:[#allocation15_spill]] %s3811_s23  ;;  %s39_s28 = sadd.s32 1, %s3811_s23 }
   0xc   : > { %5956 = sst [smem:[#allocation16_spill]] %s3815_s24  ;;  %s42_s29 = sadd.s32 1, %s3815_s24 }
   0xd   : > { %5957 = sst [smem:[#allocation17_spill]] %s3819_s25  ;;  %p40_p0 = scmp.ge.s32.totalorder %s39_s28, 4 }
   0xe   : > { %s371_s30 = sadd.s32 1, %s3799_s20  ;;  %p381_p1 = scmp.ne.s32.totalorder %s3799_s20, %s3795_s19 }
   0xf   : > { %p382_p2 = scmp.eq.s32.totalorder %s3275_s26, 7  ;;  %s6171_s28 = smov (%p40_p0, %s39_s28), 0 }
  0x10   : > { %5958 = sst [smem:[#allocation18_spill]] %s6171_s28  ;;  %s6173_s29 = smov (!%p40_p0, %s42_s29), %s3815_s24 }
  0x11   : > { %p3966_p3 = por %p382_p2, %p381_p1  ;;  %p387_p4 = scmp.ne.s32.totalorder %s3795_s19, %s3791_s18 }
  0x12   : > { %p44_p5 = scmp.ge.s32.totalorder %s6173_s29, 2  ;;  %p388_p6 = scmp.eq.s32.totalorder %s3276_s27, 7 }
  0x13   : > { %s5959_s16 = scalar_select %p3966_p3, 1, 0 }
  0x14   : > { %p3277_p7 = scmp.ge.s32.totalorder %s3819_s25, 1  ;;  %p395_p8 = scmp.lt.s32.totalorder %s3819_s25, 9 }
  0x15   : > { %5960 = sst [smem:[#allocation19_spill]] %s5959_s16  ;;  %s6175_s29 = smov (%p44_p5, %s6173_s29), 0 }
  0x16   : > { %5961 = sst [smem:[#allocation20_spill]] %s6175_s29  ;;  %p3976_p9 = por %p388_p6, %p387_p4 }
  0x17   : > { %p3980_p10 = pnand %p3277_p7, %p395_p8  ;;  %s368_s28 = ssub.s32 %s3815_s24, %s6175_s29 }
  0x18   : > { %s5962_s17 = scalar_select %p3976_p9, 1, 0 }
  0x19   : > { %p369_p11 = scmp.eq.s32.totalorder %s368_s28, 0  ;;  %p3343_p12 = pneg %p3980_p10 }
  0x1a   : > { %5963 = sst [smem:[#allocation21_spill]] %s5962_s17  ;;  %p3988_p13 = scmp.eq.s32.totalorder %s3275_s26, 0 }
  0x1b   : > { %s3993_s18 = scalar_select %p369_p11, %s3799_s20, %s371_s30  }
  0x1c   : > { %p3997_p0 = pnand %p3988_p13, %p3343_p12  ;;  %s3821_s17 = smov [#allocation6]  }
  0x1d   : > { %5966 = sst [smem:[#allocation22_spill]] %s3993_s18  ;;  %s441_s15 = sshll.u32 %s3821_s17, 4  ;;  %s442_s15 = int_to_ptr.vmem [resolvable:$true] %s441_s15 }
  0x1e   : > { %p3643_p1 = pneg %p3997_p0  ;;  %s3652_s28 = scalar_lea.vmem %s442_s15, 8192 }
  0x1f   : > { %p3653_p2 = scmp.ne.s32.totalorder %s442_s15, %s3652_s28  ;;  %p3660_p6 = scmp.lt.s32.totalorder %s442_s15, %s442_s15 }
  0x20   : > { %p3661_p7 = scmp.lt.s32.totalorder %s3652_s28, %s3652_s28 }
  0x21   : > { %p3655_p4 = pnand %p3653_p2, %p3643_p1 }
  0x22   : > { %p3662_p8 = por %p3661_p7, %p3660_p6 }
  0x23   : > { %p3656_p5 = pneg %p3655_p4 }
  0x25   : > { %p3663_p11 = pnand %p3662_p8, %p3656_p5 }
  0x27   : > { %3666 = shalt.err (!%p3663_p11)
}
  0x28   : > { %s5838_s26 = smov 256   ;;  %s3823_s30 = smov 16  }
  0x29   : > { %3349 = dma.hbm_to_vmem [thread:$0]  (!%p3997_p0), %s5820_s9, 8192, %s442_s15, [#allocation7], %s5838_s26, %s5838_s26, %s3823_s30  }
  0x2a   : > { %s3824_s24 = smov [#allocation3]  }
  0x2b   : > { %s419_s18 = sshll.u32 %s3824_s24, 4  ;;  %s420_s18 = int_to_ptr.vmem [resolvable:$true] %s419_s18 }
  0x2c   : > { %s3678_s20 = scalar_lea.vmem %s420_s18, 2048  ;;  %p3686_p5 = scmp.lt.s32.totalorder %s420_s18, %s420_s18 }
  0x2d   : > { %p3679_p12 = scmp.ne.s32.totalorder %s420_s18, %s3678_s20  ;;  %p3687_p6 = scmp.lt.s32.totalorder %s3678_s20, %s3678_s20 }
  0x2f   : > { %p3681_p2 = pnand %p3679_p12, %p3643_p1  ;;  %p3688_p7 = por %p3687_p6, %p3686_p5 }
  0x31   : > { %p3682_p4 = pneg %p3681_p2 }
  0x33   : > { %p3689_p8 = pnand %p3688_p7, %p3682_p4 }
  0x35   : > { %3692 = shalt.err (!%p3689_p8)
}
  0x36   : > { %s3825_s28 = smov 128   ;;  %s3826_s16 = smov 8  }
  0x37   : > { %3346 = dma.hbm_to_vmem [thread:$0]  (!%p3997_p0), %s5816_s5, 2048, %s420_s18, [#allocation4], %s3825_s28, %s3825_s28, %s3826_s16  }
  0x38   : > { %s3827_s24 = smov [#allocation8]  }
  0x39   : > { %s457_s17 = sshll.u32 %s3827_s24, 4  ;;  %s458_s17 = int_to_ptr.vmem [resolvable:$true] %s457_s17 }
  0x3a   : > { %s3704_s26 = scalar_lea.vmem %s458_s17, 8192  ;;  %p3712_p4 = scmp.lt.s32.totalorder %s458_s17, %s458_s17 }
  0x3b   : > { %p3705_p11 = scmp.ne.s32.totalorder %s458_s17, %s3704_s26  ;;  %p3713_p5 = scmp.lt.s32.totalorder %s3704_s26, %s3704_s26 }
  0x3d   : > { %p3707_p12 = pnand %p3705_p11, %p3643_p1  ;;  %p3714_p6 = por %p3713_p5, %p3712_p4 }
  0x3f   : > { %p3708_p2 = pneg %p3707_p12 }
  0x41   : > { %p3715_p7 = pnand %p3714_p6, %p3708_p2 }
  0x43   : > { %3718 = shalt.err (!%p3715_p7)
}
  0x44   : > { %s5968_s20 = smov 256   ;;  %495 = sbr.rel (%p3980_p10) target bundleno = 2289 (0x8f1), region = 80 }
  0x45   : > { %3352 = dma.hbm_to_vmem [thread:$0]  (!%p3997_p0), %s5822_s11, 8192, %s458_s17, [#allocation7], %s5968_s20, %s5968_s20, %s3823_s30  }
  0x49   : > { %3778 = dma.done.wait (%p3988_p13), [#allocation4], 2048  }
  0x4a   : > { %3780 = vsyncadd (%p3988_p13), [#allocation4], 4294965248 }
  0x4b   : > { %3782 = dma.done.wait (%p3988_p13), [#allocation7], 16384  }
  0x4c   : > { %3784 = vsyncadd (%p3988_p13), [#allocation7], 4294950912  ;;  %v3828_v0 = vmov 2   ;;  %v3829_v1 = vmov 0   ;;  %v579_v2 = vld [vmem:[%s5812_s1 + $0x70] sm:$0xff]  ;;  %v578_v3 = vld [vmem:[%s5812_s1 + $0x68] sm:$0xff]  ;;  %v662_v50 = vlaneseq }
  0x4d   : > { %3448 = vset.pattern.permute.xlu0 %v3828_v0  ;;  %3442 = vset.pattern.permute.xlu1 %v3829_v1  ;;  %v580_v4 = vld [vmem:[%s5812_s1 + $0x78] sm:$0xff]  ;;  %v3830_v5 = vmov 1   ;;  %v574_v7 = vld [vmem:[%s5812_s1 + $0x48] sm:$0xff]  ;;  %v577_v10 = vld [vmem:[%s5812_s1 + $0x60] sm:$0xff]  ;;  %s552_s18 = sand.u32 1, %s3795_s19   ;;  %s3286_s25 = sshll.u32 %s3803_s21, 1 }
  0x4e   : > { %653 = vperm.xlu1 %3442, %v579_v2   ;;  %911 = vperm.xlu0 %3448, %v578_v3   ;;  %v576_v6 = vld [vmem:[%s5812_s1 + $0x58] sm:$0xff]  ;;  %v4073_v9 = vld [vmem:[%s5812_s1 + $0x28] sm:$0xff]  ;;  %v1018_v14 = vld [vmem:[%s5813_s2 + $0x70] sm:$0xff]  ;;  %p555_p10 = scmp.lt.s32.totalorder %s3807_s22, 1  ;;  %p557_p13 = scmp.lt.s32.totalorder %s3286_s25, 7  ;;  %v663_v54 = vshrl.u32 %v662_v50, 7 }
  0x4f   : > { %v4067_v8 = vld [vmem:[%s5812_s1 + $0x38] sm:$0xff]  ;;  %v4090_v12 = vld [vmem:[%s5812_s1 + $0x8] sm:$0xff]  ;;  %v575_v15 = vld [vmem:[%s5812_s1 + $0x50] sm:$0xff]  ;;  %s5069_s16 = scalar_lea.vmem [#allocation9], %s552_s18  ;;  %p3289_p0 = scmp.ne.s32.totalorder %s3803_s21, 0 }
  0x50   : > { %v4083_v11 = vld [vmem:[%s5812_s1 + $0x18] sm:$0xff]  ;;  %v1017_v16 = vld [vmem:[%s5813_s2 + $0x68] sm:$0xff]  ;;  %v573_v17 = vld [vmem:[%s5812_s1 + $0x40] sm:$0xff]  ;;  %s556_s28 = scalar_select %p555_p10, %s3807_s22, 1  ;;  %v4256_v58 = vsub.s32 1, %v663_v54  ;;  %v782_v59 = vsub.s32 5, %v663_v54 }
  0x51   : > { %v1019_v13 = vld [vmem:[%s5813_s2 + $0x78] sm:$0xff]  ;;  %v571_v19 = vld [vmem:[%s5812_s1 + $0x30] sm:$0xff]  ;;  %v1013_v20 = vld [vmem:[%s5813_s2 + $0x48] sm:$0xff]  ;;  %s6177_s25 = smov (!%p557_p13, %s3286_s25), 7  ;;  %v4258_v60 = vsub.s32 0, %v663_v54  ;;  %v668_v61 = vsub.s32 4, %v663_v54 }
  0x52   : > { %3443 = vset.pattern.permute.xlu1 %v3830_v5  ;;  %3449 = vset.pattern.permute.xlu0 %v3830_v5  ;;  %v1015_v18 = vld [vmem:[%s5813_s2 + $0x58] sm:$0xff]  ;;  %v1016_v21 = vld [vmem:[%s5813_s2 + $0x60] sm:$0xff]  ;;  %v4143_v24 = vld [vmem:[%s5812_s1 + $0x10] sm:$0xff]  ;;  %s3287_s29 = sshll.u32 %s556_s28, 3  ;;  %5969 = vst [vmem:[#allocation23_spill] sm:$0xff] %v4256_v58 }
  0x53   : > { %769 = vperm.xlu1 %3443, %v579_v2   ;;  %773 = vperm.xlu0 %3449, %v580_v4   ;;  %v4132_v22 = vld [vmem:[%s5812_s1 + $0x20] sm:$0xff]  ;;  %v1011_v23 = vld [vmem:[%s5813_s2 + $0x38] sm:$0xff]  ;;  %v1009_v25 = vld [vmem:[%s5813_s2 + $0x28] sm:$0xff]  ;;  %s560_s24 = sadd.s32 %s3287_s29, %s6177_s25  ;;  %5970 = vst [vmem:[#allocation24_spill] sm:$0xff] %v4258_v60 }
  0x54   : > { %v4154_v26 = vld [vmem:[%s5812_s1] sm:$0xff]  ;;  %v1007_v27 = vld [vmem:[%s5813_s2 + $0x18] sm:$0xff]  ;;  %v1014_v28 = vld [vmem:[%s5813_s2 + $0x50] sm:$0xff]  ;;  %s3288_s26 = sshll.u32 %s560_s24, 2 }
  0x55   : > { %v1006_v29 = vld [vmem:[%s5813_s2 + $0x10] sm:$0xff]  ;;  %v1004_v30 = vld [vmem:[%s5813_s2] sm:$0xff]  ;;  %v1486_v44 = vld [vmem:[%s5817_s6 + $0x8] sm:$0xff]  ;;  %s562_s27 = scalar_lea.vmem %s5811_s0, %s3288_s26 }
  0x56   : > { %v1194_v31 = vld [vmem:[%s5815_s4 + $0x70] sm:$0xff]  ;;  %v1192_v32 = vld [vmem:[%s5815_s4 + $0x60] sm:$0xff]  ;;  %v1488_v47 = vld [vmem:[%s5817_s6 + $0x18] sm:$0xff] }
  0x57   : > { %3444 = vset.pattern.permute.xlu1 %v3828_v0  ;;  %757 = vperm.xlu0 %3449, %v576_v6   ;;  %v1190_v33 = vld [vmem:[%s5815_s4 + $0x50] sm:$0xff]  ;;  %v1188_v34 = vld [vmem:[%s5815_s4 + $0x40] sm:$0xff]  ;;  %v1490_v51 = vld [vmem:[%s5817_s6 + $0x28] sm:$0xff] }
  0x58   : > { %919 = vperm.xlu1 %3444, %v580_v4   ;;  %v1186_v35 = vld [vmem:[%s5815_s4 + $0x30] sm:$0xff]  ;;  %v1012_v36 = vld [vmem:[%s5813_s2 + $0x40] sm:$0xff]  ;;  %v1492_v56 = vld [vmem:[%s5817_s6 + $0x38] sm:$0xff] }
  0x59   : > { %v1184_v37 = vld [vmem:[%s5815_s4 + $0x20] sm:$0xff]  ;;  %v1182_v40 = vld [vmem:[%s5815_s4 + $0x10] sm:$0xff]  ;;  %v1494_v62 = vld [vmem:[%s5817_s6 + $0x48] sm:$0xff] }
  0x5a   : > { %v1180_v41 = vld [vmem:[%s5815_s4] sm:$0xff]  ;;  %v1010_v53 = vld [vmem:[%s5813_s2 + $0x30] sm:$0xff] }
  0x5b   : > { %749 = vperm.xlu0 %3449, %v574_v7   ;;  %v564_v63 = vld [vmem:[%s562_s27] sm:$0x77] }
  0x5c   : > { %3445 = vset.pattern.permute.xlu1 %v3830_v5 }
  0x5d   : > { %765 = vperm.xlu1 %3445, %v578_v3  }
  0x5f   : > { %741 = vperm.xlu0 %3449, %v4067_v8  }
  0x61   : > { %3446 = vset.pattern.permute.xlu1 %v3828_v0 }
  0x62   : > { %915 = vperm.xlu1 %3446, %v579_v2   ;;  %v924_v2 = vsub.s32 2, %v663_v54 }
  0x63   : > { %733 = vperm.xlu0 %3449, %v4073_v9  }
  0x66   : > { %3447 = vset.pattern.permute.xlu1 %v3830_v5 }
  0x67   : > { %761 = vperm.xlu1 %3447, %v577_v10   ;;  %725 = vperm.xlu0 %3449, %v4083_v11  }
  0x6b   : > { %3450 = vset.pattern.permute.xlu1 %v3829_v1  ;;  %717 = vperm.xlu0 %3449, %v4090_v12  }
  0x6c   : > { %1097 = vperm.xlu1 %3450, %v1019_v13   ;;  %v1496_v13 = vld [vmem:[%s5817_s6 + $0x58] sm:$0xff] }
  0x6f   : > { %3476 = vset.pattern.permute.xlu0 %v3829_v1 }
  0x70   : > { %638 = vperm.xlu1 %3450, %v576_v6   ;;  %658 = vperm.xlu0 %3476, %v580_v4  }
  0x74   : > { %3451 = vset.pattern.permute.xlu1 %v3828_v0  ;;  %648 = vperm.xlu0 %3476, %v578_v3   ;;  %v928_v3 = vsub.s32 6, %v663_v54 }
  0x75   : > { %907 = vperm.xlu1 %3451, %v577_v10  }
  0x78   : > { %643 = vperm.xlu0 %3476, %v577_v10   ;;  %v669_v10 = vrot.slane %v564_v63, %v668_v61 }
  0x79   : > { %3452 = vset.pattern.permute.xlu1 %v3829_v1 }
  0x7a   : > { %1092 = vperm.xlu1 %3452, %v1018_v14   ;;  %v925_v14 = vrot.slane %v564_v63, %v924_v2 }
  0x7c   : > { %633 = vperm.xlu0 %3476, %v575_v15  }
  0x7e   : > { %3453 = vset.pattern.permute.xlu1 %v3830_v5 }
  0x7f   : > { %753 = vperm.xlu1 %3453, %v575_v15  }
  0x80   : > { %1087 = vperm.xlu0 %3476, %v1017_v16  }
  0x83   : > { %3454 = vset.pattern.permute.xlu1 %v3828_v0 }
  0x84   : > { %903 = vperm.xlu1 %3454, %v576_v6   ;;  %623 = vperm.xlu0 %3476, %v573_v17  }
  0x88   : > { %3455 = vset.pattern.permute.xlu1 %v3829_v1  ;;  %1077 = vperm.xlu0 %3476, %v1015_v18  }
  0x89   : > { %628 = vperm.xlu1 %3455, %v574_v7  }
  0x8c   : > { %613 = vperm.xlu0 %3476, %v571_v19  }
  0x8d   : > { %3456 = vset.pattern.permute.xlu1 %v3828_v0 }
  0x8e   : > { %899 = vperm.xlu1 %3456, %v575_v15   ;;  %v929_v15 = vrot.slane %v564_v63, %v928_v3 }
  0x90   : > { %1067 = vperm.xlu0 %3476, %v1013_v20  }
  0x92   : > { %3457 = vset.pattern.permute.xlu1 %v3829_v1 }
  0x93   : > { %1082 = vperm.xlu1 %3457, %v1016_v21   ;;  %v4288_v21 = vrot.slane %v669_v10, %v4258_v60 }
  0x94   : > { %603 = vperm.xlu0 %3476, %v4132_v22  }
  0x97   : > { %3458 = vset.pattern.permute.xlu1 %v3830_v5 }
  0x98   : > { %745 = vperm.xlu1 %3458, %v573_v17   ;;  %1057 = vperm.xlu0 %3476, %v1011_v23   ;;  %v4292_v23 = vrot.slane %v929_v15, %v924_v2 }
  0x9c   : > { %3459 = vset.pattern.permute.xlu1 %v3828_v0  ;;  %593 = vperm.xlu0 %3476, %v4143_v24  }
  0x9d   : > { %895 = vperm.xlu1 %3459, %v574_v7   ;;  %v779_v7 = vrot.slane %v564_v63, %v4256_v58 }
  0x9f   : > { %v4278_v18 = vrot.slane %v779_v7, %v4256_v58 }
  0xa0   : > { %1047 = vperm.xlu0 %3476, %v1009_v25  }
  0xa1   : > { %3460 = vset.pattern.permute.xlu1 %v3829_v1 }
  0xa2   : > { %618 = vperm.xlu1 %3460, %v4067_v8  }
  0xa4   : > { %583 = vperm.xlu0 %3476, %v4154_v26  }
  0xa6   : > { %3461 = vset.pattern.permute.xlu1 %v3828_v0 }
  0xa7   : > { %891 = vperm.xlu1 %3461, %v573_v17  }
  0xa8   : > { %1037 = vperm.xlu0 %3476, %v1007_v27  }
  0xab   : > { %3462 = vset.pattern.permute.xlu1 %v3829_v1 }
  0xac   : > { %1072 = vperm.xlu1 %3462, %v1014_v28   ;;  %1032 = vperm.xlu0 %3476, %v1006_v29  }
  0xb0   : > { %3463 = vset.pattern.permute.xlu1 %v3830_v5  ;;  %1022 = vperm.xlu0 %3476, %v1004_v30  }
  0xb1   : > { %737 = vperm.xlu1 %3463, %v571_v19  }
  0xb4   : > { %1268 = vperm.xlu0 %3476, %v1194_v31  }
  0xb5   : > { %3464 = vset.pattern.permute.xlu1 %v3828_v0 }
  0xb6   : > { %887 = vperm.xlu1 %3464, %v4067_v8   ;;  %v783_v8 = vrot.slane %v564_v63, %v782_v59 }
  0xb8   : > { %1258 = vperm.xlu0 %3476, %v1192_v32  }
  0xba   : > { %3465 = vset.pattern.permute.xlu1 %v3829_v1 }
  0xbb   : > { %608 = vperm.xlu1 %3465, %v4073_v9  }
  0xbc   : > { %1248 = vperm.xlu0 %3476, %v1190_v33  }
  0xbf   : > { %3466 = vset.pattern.permute.xlu1 %v3828_v0 }
  0xc0   : > { %883 = vperm.xlu1 %3466, %v571_v19   ;;  %1238 = vperm.xlu0 %3476, %v1188_v34   ;;  %v4281_v19 = vrot.slane %v783_v8, %v4256_v58  ;;  %v1008_v8 = vld [vmem:[%s5813_s2 + $0x20] sm:$0xff] }
  0xc4   : > { %3467 = vset.pattern.permute.xlu1 %v3829_v1  ;;  %1228 = vperm.xlu0 %3476, %v1186_v35  }
  0xc5   : > { %1062 = vperm.xlu1 %3467, %v1012_v36  }
  0xc8   : > { %1218 = vperm.xlu0 %3476, %v1184_v37  }
  0xc9   : > { %v4200_v38 = vpop.permute.xlu1 %653  ;;  %3468 = vset.pattern.permute.xlu1 %v3830_v5  ;;  %v4203_v39 = vpop.permute.xlu0 %911 }
  0xca   : > { %729 = vperm.xlu1 %3468, %v4132_v22   ;;  %v967_v10 = vmul.f32 %v4292_v23, %v4203_v39 }
  0xcc   : > { %1208 = vperm.xlu0 %3476, %v1182_v40   ;;  %v1500_v40 = vld [vmem:[%s5817_s6 + $0x78] sm:$0xff] }
  0xce   : > { %v4214_v42 = vpop.permute.xlu1 %769  ;;  %3469 = vset.pattern.permute.xlu1 %v3828_v0  ;;  %v4217_v43 = vpop.permute.xlu0 %773 }
  0xcf   : > { %879 = vperm.xlu1 %3469, %v4073_v9   ;;  %v665_v9 = vrot.slane %v564_v63, %v4258_v60  ;;  %v824_v25 = vmul.f32 %v4278_v18, %v4217_v43  ;;  %v825_v27 = vmul.f32 %v4281_v19, %v4217_v43  ;;  %v822_v32 = vmul.f32 %v4278_v18, %v4214_v42 }
  0xd0   : > { %1198 = vperm.xlu0 %3476, %v1180_v41   ;;  %v823_v33 = vmul.f32 %v4281_v19, %v4214_v42  ;;  %v709_v42 = vmul.f32 %v4288_v21, %v4200_v38 }
  0xd1   : > { %v4285_v20 = vrot.slane %v665_v9, %v4258_v60 }
  0xd2   : > { %v4224_v45 = vpop.permute.xlu0 %757  ;;  %v855_v54 = vadd.f32 %v823_v33, %v709_v42 }
  0xd3   : > { %v4226_v46 = vpop.permute.xlu1 %919  ;;  %3470 = vset.pattern.permute.xlu1 %v3829_v1  ;;  %v708_v41 = vmul.f32 %v4285_v20, %v4200_v38 }
  0xd4   : > { %598 = vperm.xlu1 %3470, %v4083_v11   ;;  %1508 = vperm.xlu0 %3476, %v1486_v44   ;;  %v971_v35 = vmul.f32 %v4292_v23, %v4226_v46 }
  0xd6   : > { %v4233_v48 = vpop.permute.xlu0 %749 }
  0xd8   : > { %v4235_v49 = vpop.permute.xlu1 %765  ;;  %3471 = vset.pattern.permute.xlu1 %v3828_v0  ;;  %1518 = vperm.xlu0 %3476, %v1488_v47  }
  0xd9   : > { %875 = vperm.xlu1 %3471, %v4132_v22   ;;  %v4290_v22 = vrot.slane %v925_v14, %v924_v2 }
  0xda   : > { %v4242_v52 = vpop.permute.xlu0 %741 }
  0xdb   : > { %v970_v34 = vmul.f32 %v4290_v22, %v4226_v46  ;;  %v966_v9 = vmul.f32 %v4290_v22, %v4203_v39 }
  0xdc   : > { %1528 = vperm.xlu0 %3476, %v1490_v51  }
  0xdd   : > { %v916_v55 = vpop.permute.xlu1 %915  ;;  %3472 = vset.pattern.permute.xlu1 %v3829_v1 }
  0xde   : > { %1052 = vperm.xlu1 %3472, %v1010_v53   ;;  %v4251_v57 = vpop.permute.xlu0 %733  ;;  %v968_v44 = vmul.f32 %v4290_v22, %v916_v55  ;;  %v969_v47 = vmul.f32 %v4292_v23, %v916_v55  ;;  %v854_v53 = vadd.f32 %v822_v32, %v708_v41  ;;  %v820_v55 = vmul.f32 %v4278_v18, %v4235_v49 }
  0xe0   : > { %1538 = vperm.xlu0 %3476, %v1492_v56   ;;  %v1000_v2 = vadd.f32 %v968_v44, %v854_v53  ;;  %v1001_v3 = vadd.f32 %v969_v47, %v855_v54 }
  0xe2   : > { %v4263_v4 = vpop.permute.xlu1 %761  ;;  %3473 = vset.pattern.permute.xlu1 %v3830_v5  ;;  %v4266_v6 = vpop.permute.xlu0 %725 }
  0xe3   : > { %721 = vperm.xlu1 %3473, %v4143_v24   ;;  %v818_v44 = vmul.f32 %v4278_v18, %v4263_v4  ;;  %v819_v47 = vmul.f32 %v4281_v19, %v4263_v4 }
  0xe4   : > { %1548 = vperm.xlu0 %3476, %v1494_v62   ;;  %v821_v62 = vmul.f32 %v4281_v19, %v4235_v49 }
  0xe6   : > { %v4274_v16 = vpop.permute.xlu0 %717 }
  0xe7   : > { %v1098_v17 = vpop.permute.xlu1 %1097  ;;  %3474 = vset.pattern.permute.xlu1 %v3828_v0 }
  0xe8   : > { %871 = vperm.xlu1 %3474, %v4083_v11   ;;  %1558 = vperm.xlu0 %3476, %v1496_v13   ;;  %v1498_v11 = vld [vmem:[%s5817_s6 + $0x68] sm:$0xff] }
  0xeb   : > { %v4301_v28 = vpop.permute.xlu1 %638  ;;  %v659_v29 = vpop.permute.xlu0 %658 }
  0xec   : > { %v710_v30 = vmul.f32 %v4285_v20, %v659_v29  ;;  %v711_v31 = vmul.f32 %v4288_v21, %v659_v29  ;;  %3475 = vset.pattern.permute.xlu1 %v3829_v1  ;;  %1568 = vperm.xlu0 %3476, %v1498_v11  }
  0xed   : > { %588 = vperm.xlu1 %3475, %v4090_v12  }
  0xee   : > { %v856_v36 = vadd.f32 %v824_v25, %v710_v30  ;;  %v857_v37 = vadd.f32 %v825_v27, %v711_v31 }
  0xef   : > { %v649_v43 = vpop.permute.xlu0 %648 }
  0xf0   : > { %v4324_v50 = vpop.permute.xlu1 %907  ;;  %v1003_v46 = vadd.f32 %v971_v35, %v857_v37  ;;  %v1002_v51 = vadd.f32 %v970_v34, %v856_v36  ;;  %1578 = vperm.xlu0 %3476, %v1500_v40   ;;  %v706_v56 = vmul.f32 %v4285_v20, %v649_v43  ;;  %v707_v59 = vmul.f32 %v4288_v21, %v649_v43 }
  0xf1   : > { %3477 = vset.pattern.permute.xlu1 %v3828_v0  ;;  %v817_v37 = vmul.f32 %v4281_v19, %v4224_v45  ;;  %v703_v40 = vmul.f32 %v4288_v21, %v4301_v28  ;;  %v965_v4 = vmul.f32 %v4292_v23, %v4324_v50 }
  0xf2   : > { %867 = vperm.xlu1 %3477, %v4143_v24   ;;  %v4330_v38 = vadd.f32 %v1098_v17, %v1003_v46  ;;  %v4332_v61 = vadd.f32 %v1098_v17, %v1002_v51  ;;  %v852_v14 = vadd.f32 %v820_v55, %v706_v56  ;;  %v853_v49 = vadd.f32 %v821_v62, %v707_v59  ;;  %v1195_v62 = vld [vmem:[%s5815_s4 + $0x78] sm:$0xff] }
  0xf3   : > { %v644_v63 = vpop.permute.xlu0 %643  ;;  %v964_v59 = vmul.f32 %v4290_v22, %v4324_v50 }
  0xf4   : > { %5971 = vst [vmem:[#allocation25_spill] sm:$0xff] %v4330_v38  ;;  %5972 = vst [vmem:[#allocation26_spill] sm:$0xff] %v4332_v61  ;;  %v5842_v7 = vmax.f32 %v4330_v38, 0.0  ;;  %v5841_v24 = vmax.f32 %v4332_v61, 0.0  ;;  %v998_v29 = vadd.f32 %v966_v9, %v852_v14  ;;  %v999_v30 = vadd.f32 %v967_v10, %v853_v49  ;;  %v1193_v14 = vld [vmem:[%s5815_s4 + $0x68] sm:$0xff] }
  0xf5   : > { %v1093_v13 = vpop.permute.xlu1 %1092  ;;  %v704_v41 = vmul.f32 %v4285_v20, %v644_v63  ;;  %v705_v42 = vmul.f32 %v4288_v21, %v644_v63  ;;  %v5861_v9 = vmov 0.0  }
  0xf6   : > { %v4347_v15 = vadd.f32 %v1093_v13, %v1000_v2  ;;  %v4349_v17 = vadd.f32 %v1093_v13, %v1001_v3  ;;  %3478 = vset.pattern.permute.xlu1 %v3829_v1  ;;  %1276 = vmatprep.subr.mxu0 %v5842_v7 }
  0xf7   : > { %v4354_v25 = vpop.permute.xlu0 %633  ;;  %1042 = vperm.xlu1 %3478, %v1008_v8   ;;  %1277 = vmatpush1.msra.mxu0 %v5841_v24  ;;  %v850_v53 = vadd.f32 %v818_v44, %v704_v41  ;;  %v851_v54 = vadd.f32 %v819_v47, %v705_v42  ;;  %v1189_v41 = vld [vmem:[%s5815_s4 + $0x48] sm:$0xff]  ;;  %v813_v44 = vmul.f32 %v4281_v19, %v4233_v48 }
  0xf8   : > { %5973 = vst [vmem:[#allocation27_spill] sm:$0xff] %v4347_v15  ;;  %5974 = vst [vmem:[#allocation28_spill] sm:$0xff] %v4349_v17  ;;  %v5839_v27 = vmax.f32 %v4347_v15, 0.0  ;;  %v5840_v11 = vmax.f32 %v4349_v17, 0.0  ;;  %1340 = vmatprep.mubr.f32.mxu0 %v5861_v9  ;;  %1645 = vmatprep.mubr.f32.mxu1 %v5861_v9 }
  0xf9   : > { %v996_v3 = vadd.f32 %v964_v59, %v850_v53  ;;  %v997_v8 = vadd.f32 %v965_v4, %v851_v54  ;;  %v701_v53 = vmul.f32 %v4288_v21, %v4354_v25 }
  0xfa   : > { %v4360_v39 = vpop.permute.xlu1 %753  ;;  %1278 = vmatprep.subr.mxu0 %v5840_v11 }
  0xfb   : > { %v1088_v31 = vpop.permute.xlu0 %1087  ;;  %3479 = vset.pattern.permute.xlu1 %v3830_v5  ;;  %1279 = vmatpush1.msra.mxu0 %v5839_v27  ;;  %v814_v54 = vmul.f32 %v4278_v18, %v4360_v39 }
  0xfc   : > { %v4367_v32 = vadd.f32 %v1088_v31, %v998_v29  ;;  %v4369_v33 = vadd.f32 %v1088_v31, %v999_v30  ;;  %713 = vperm.xlu1 %3479, %v4154_v26  }
  0xfe   : > { %5975 = vst [vmem:[#allocation29_spill] sm:$0xff] %v4367_v32  ;;  %5976 = vst [vmem:[#allocation30_spill] sm:$0xff] %v4369_v33  ;;  %v5845_v34 = vmax.f32 %v4367_v32, 0.0  ;;  %v5846_v35 = vmax.f32 %v4369_v33, 0.0 }
  0xff   : > { %v904_v36 = vpop.permute.xlu1 %903  ;;  %v4391_v43 = vpop.permute.xlu0 %623 }
 0x100   : > { %3480 = vset.pattern.permute.xlu1 %v3828_v0  ;;  %1280 = vmatprep.subr.mxu0 %v5846_v35  ;;  %v816_v0 = vmul.f32 %v4278_v18, %v4224_v45  ;;  %v963_v46 = vmul.f32 %v4292_v23, %v904_v36  ;;  %v962_v51 = vmul.f32 %v4290_v22, %v904_v36 }
 0x101   : > { %863 = vperm.xlu1 %3480, %v4090_v12   ;;  %1281 = vmatpush1.msra.mxu0 %v5845_v34  ;;  %v702_v12 = vmul.f32 %v4285_v20, %v4301_v28  ;;  %v849_v45 = vadd.f32 %v817_v37, %v703_v40  ;;  %v1191_v37 = vld [vmem:[%s5815_s4 + $0x58] sm:$0xff] }
 0x103   : > { %v848_v56 = vadd.f32 %v816_v0, %v702_v12  ;;  %v995_v55 = vadd.f32 %v963_v46, %v849_v45  ;;  %v1078_v63 = vpop.permute.xlu0 %1077  ;;  %v1187_v0 = vld [vmem:[%s5815_s4 + $0x38] sm:$0xff]  ;;  %v812_v46 = vmul.f32 %v4278_v18, %v4233_v48  ;;  %v1185_v45 = vld [vmem:[%s5815_s4 + $0x28] sm:$0xff] }
 0x104   : > { %v629_v5 = vpop.permute.xlu1 %628 }
 0x105   : > { %859 = vperm.xlu1 %3480, %v4154_v26   ;;  %v1005_v26 = vld [vmem:[%s5813_s2 + $0x8] sm:$0xff]  ;;  %v994_v2 = vadd.f32 %v962_v51, %v848_v56  ;;  %v4412_v10 = vadd.f32 %v1078_v63, %v995_v55  ;;  %v699_v47 = vmul.f32 %v4288_v21, %v629_v5  ;;  %v698_v51 = vmul.f32 %v4285_v20, %v629_v5 }
 0x106   : > { %v815_v56 = vmul.f32 %v4281_v19, %v4360_v39 }
 0x107   : > { %5977 = vst [vmem:[#allocation31_spill] sm:$0xff] %v4412_v10  ;;  %v4421_v49 = vadd.f32 %v1078_v63, %v994_v2  ;;  %v5850_v31 = vmax.f32 %v4412_v10, 0.0  ;;  %v4464_v59 = vpop.permute.xlu0 %613  ;;  %v845_v5 = vadd.f32 %v813_v44, %v699_v47  ;;  %v1183_v2 = vld [vmem:[%s5815_s4 + $0x18] sm:$0xff] }
 0x108   : > { %v847_v39 = vadd.f32 %v815_v56, %v701_v53 }
 0x109   : > { %v900_v28 = vpop.permute.xlu1 %899  ;;  %3481 = vset.pattern.permute.xlu1 %v3829_v1  ;;  %5980 = vst [vmem:[#allocation34_spill] sm:$0xff] %v4421_v49  ;;  %v5849_v40 = vmax.f32 %v4421_v49, 0.0 }
 0x10a   : > { %1027 = vperm.xlu1 %3481, %v1005_v26   ;;  %v700_v26 = vmul.f32 %v4285_v20, %v4354_v25  ;;  %v960_v55 = vmul.f32 %v4290_v22, %v900_v28  ;;  %v844_v25 = vadd.f32 %v812_v46, %v698_v51 }
 0x10e   : > { %v1083_v1 = vpop.permute.xlu1 %1082  ;;  %1273 = vperm.xlu1 %3481, %v1195_v62   ;;  %v961_v62 = vmul.f32 %v4292_v23, %v900_v28  ;;  %v1181_v28 = vld [vmem:[%s5815_s4 + $0x8] sm:$0xff] }
 0x10f   : > { %v4414_v13 = vadd.f32 %v1083_v1, %v996_v3  ;;  %v4416_v50 = vadd.f32 %v1083_v1, %v997_v8  ;;  %v846_v3 = vadd.f32 %v814_v54, %v700_v26 }
 0x111   : > { %5978 = vst [vmem:[#allocation32_spill] sm:$0xff] %v4414_v13  ;;  %5979 = vst [vmem:[#allocation33_spill] sm:$0xff] %v4416_v50  ;;  %v5843_v29 = vmax.f32 %v4414_v13, 0.0  ;;  %v5844_v30 = vmax.f32 %v4416_v50, 0.0 }
 0x112   : > { %1263 = vperm.xlu1 %3481, %v1193_v14   ;;  %v992_v14 = vadd.f32 %v960_v55, %v846_v3  ;;  %v808_v3 = vmul.f32 %v4278_v18, %v4242_v52 }
 0x113   : > { %v4426_v36 = vpop.permute.xlu1 %745  ;;  %1282 = vmatprep.subr.mxu0 %v5844_v30 }
 0x114   : > { %1283 = vmatpush1.msra.mxu0 %v5843_v29 }
 0x115   : > { %1284 = vmatprep.subr.mxu0 %v5850_v31 }
 0x116   : > { %1253 = vperm.xlu1 %3481, %v1191_v37   ;;  %1285 = vmatpush1.msra.mxu0 %v5849_v40  ;;  %v993_v37 = vadd.f32 %v961_v62, %v847_v39  ;;  %v809_v62 = vmul.f32 %v4281_v19, %v4242_v52  ;;  %v696_v39 = vmul.f32 %v4285_v20, %v4391_v43 }
 0x118   : > { %v896_v42 = vpop.permute.xlu1 %895 }
 0x119   : > { %v959_v48 = vmul.f32 %v4292_v23, %v896_v42  ;;  %v958_v4 = vmul.f32 %v4290_v22, %v896_v42 }
 0x11a   : > { %1243 = vperm.xlu1 %3481, %v1189_v41   ;;  %v1068_v41 = vpop.permute.xlu0 %1067 }
 0x11b   : > { %v991_v8 = vadd.f32 %v959_v48, %v845_v5  ;;  %v990_v1 = vadd.f32 %v958_v4, %v844_v25  ;;  %v1487_v48 = vld [vmem:[%s5817_s6 + $0x10] sm:$0xff]  ;;  %v1489_v5 = vld [vmem:[%s5817_s6 + $0x20] sm:$0xff] }
 0x11d   : > { %v619_v12 = vpop.permute.xlu1 %618  ;;  %v4479_v47 = vadd.f32 %v1068_v41, %v991_v8  ;;  %v4481_v46 = vadd.f32 %v1068_v41, %v990_v1  ;;  %v697_v1 = vmul.f32 %v4288_v21, %v4391_v43  ;;  %v1493_v43 = vld [vmem:[%s5817_s6 + $0x40] sm:$0xff] }
 0x11e   : > { %1233 = vperm.xlu1 %3481, %v1187_v0   ;;  %v695_v25 = vmul.f32 %v4288_v21, %v619_v12  ;;  %v694_v8 = vmul.f32 %v4285_v20, %v619_v12 }
 0x11f   : > { %5983 = vst [vmem:[#allocation37_spill] sm:$0xff] %v4479_v47  ;;  %5984 = vst [vmem:[#allocation38_spill] sm:$0xff] %v4481_v46  ;;  %v5854_v54 = vmax.f32 %v4479_v47, 0.0  ;;  %v5853_v56 = vmax.f32 %v4481_v46, 0.0 }
 0x122   : > { %v892_v63 = vpop.permute.xlu1 %891  ;;  %1223 = vperm.xlu1 %3481, %v1185_v45   ;;  %v1485_v45 = vld [vmem:[%s5817_s6] sm:$0xff] }
 0x123   : > { %v957_v12 = vmul.f32 %v4292_v23, %v892_v63 }
 0x126   : > { %1213 = vperm.xlu1 %3481, %v1183_v2   ;;  %v1491_v2 = vld [vmem:[%s5817_s6 + $0x30] sm:$0xff] }
 0x127   : > { %v1073_v42 = vpop.permute.xlu1 %1072 }
 0x128   : > { %v4475_v0 = vadd.f32 %v1073_v42, %v992_v14  ;;  %v4477_v44 = vadd.f32 %v1073_v42, %v993_v37  ;;  %v810_v14 = vmul.f32 %v4278_v18, %v4426_v36  ;;  %v811_v37 = vmul.f32 %v4281_v19, %v4426_v36  ;;  %v4524_v42 = vpop.permute.xlu0 %603 }
 0x12a   : > { %5981 = vst [vmem:[#allocation35_spill] sm:$0xff] %v4475_v0  ;;  %5982 = vst [vmem:[#allocation36_spill] sm:$0xff] %v4477_v44  ;;  %v5847_v26 = vmax.f32 %v4475_v0, 0.0  ;;  %v5848_v51 = vmax.f32 %v4477_v44, 0.0  ;;  %1203 = vperm.xlu1 %3481, %v1181_v28   ;;  %v841_v28 = vadd.f32 %v809_v62, %v695_v25  ;;  %v842_v27 = vadd.f32 %v810_v14, %v696_v39 }
 0x12b   : > { %v843_v36 = vadd.f32 %v811_v37, %v697_v1 }
 0x12c   : > { %v4488_v53 = vpop.permute.xlu1 %737  ;;  %1286 = vmatprep.subr.mxu0 %v5848_v51  ;;  %v1058_v62 = vpop.permute.xlu0 %1057 }
 0x12d   : > { %1287 = vmatpush1.msra.mxu0 %v5847_v26  ;;  %v989_v29 = vadd.f32 %v957_v12, %v843_v36  ;;  %v806_v12 = vmul.f32 %v4278_v18, %v4488_v53  ;;  %v804_v36 = vmul.f32 %v4278_v18, %v4251_v57 }
 0x12e   : > { %1503 = vperm.xlu1 %3481, %v1485_v45   ;;  %1288 = vmatprep.subr.mxu0 %v5854_v54  ;;  %v956_v45 = vmul.f32 %v4290_v22, %v892_v63 }
 0x12f   : > { %1289 = vmatpush1.msra.mxu0 %v5853_v56 }
 0x130   : > { %v988_v7 = vadd.f32 %v956_v45, %v842_v27  ;;  %v693_v45 = vmul.f32 %v4288_v21, %v4464_v59 }
 0x131   : > { %v888_v4 = vpop.permute.xlu1 %887 }
 0x132   : > { %1513 = vperm.xlu1 %3481, %v1487_v48   ;;  %v955_v41 = vmul.f32 %v4292_v23, %v888_v4  ;;  %v954_v52 = vmul.f32 %v4290_v22, %v888_v4  ;;  %v1495_v4 = vld [vmem:[%s5817_s6 + $0x50] sm:$0xff] }
 0x134   : > { %v987_v11 = vadd.f32 %v955_v41, %v841_v28  ;;  %v805_v41 = vmul.f32 %v4281_v19, %v4251_v57 }
 0x136   : > { %v609_v55 = vpop.permute.xlu1 %608  ;;  %1523 = vperm.xlu1 %3481, %v1489_v5   ;;  %v840_v5 = vadd.f32 %v808_v3, %v694_v8  ;;  %v4539_v30 = vadd.f32 %v1058_v62, %v987_v11  ;;  %v1497_v8 = vld [vmem:[%s5817_s6 + $0x60] sm:$0xff]  ;;  %v1499_v11 = vld [vmem:[%s5817_s6 + $0x70] sm:$0xff] }
 0x137   : > { %v691_v37 = vmul.f32 %v4288_v21, %v609_v55  ;;  %v690_v28 = vmul.f32 %v4285_v20, %v609_v55 }
 0x138   : > { %v986_v24 = vadd.f32 %v954_v52, %v840_v5  ;;  %v692_v52 = vmul.f32 %v4285_v20, %v4464_v59 }
 0x13a   : > { %1533 = vperm.xlu1 %3481, %v1491_v2   ;;  %v4541_v3 = vadd.f32 %v1058_v62, %v986_v24  ;;  %v838_v34 = vadd.f32 %v806_v12, %v692_v52 }
 0x13b   : > { %v884_v48 = vpop.permute.xlu1 %883 }
 0x13c   : > { %v5857_v24 = vmax.f32 %v4541_v3, 0.0  ;;  %v952_v55 = vmul.f32 %v4290_v22, %v884_v48 }
 0x13e   : > { %1543 = vperm.xlu1 %3481, %v1493_v43   ;;  %v807_v43 = vmul.f32 %v4281_v19, %v4488_v53  ;;  %v984_v53 = vadd.f32 %v952_v55, %v838_v34 }
 0x140   : > { %v1063_v25 = vpop.permute.xlu1 %1062  ;;  %v839_v35 = vadd.f32 %v807_v43, %v693_v45  ;;  %v689_v45 = vmul.f32 %v4288_v21, %v4524_v42 }
 0x141   : > { %v4535_v63 = vadd.f32 %v1063_v25, %v988_v7  ;;  %v4537_v2 = vadd.f32 %v1063_v25, %v989_v29  ;;  %v5858_v7 = vmax.f32 %v4539_v30, 0.0  ;;  %v837_v25 = vadd.f32 %v805_v41, %v691_v37 }
 0x142   : > { %1553 = vperm.xlu1 %3481, %v1495_v4   ;;  %v594_v4 = vpop.permute.xlu0 %593 }
 0x143   : > { %5985 = vst [vmem:[#allocation39_spill] sm:$0xff] %v4535_v63  ;;  %5986 = vst [vmem:[#allocation40_spill] sm:$0xff] %v4537_v2  ;;  %v5851_v39 = vmax.f32 %v4535_v63, 0.0  ;;  %v5852_v27 = vmax.f32 %v4537_v2, 0.0 }
 0x145   : > { %v730_v1 = vpop.permute.xlu1 %729  ;;  %1290 = vmatprep.subr.mxu0 %v5852_v27 }
 0x146   : > { %1563 = vperm.xlu1 %3481, %v1497_v8   ;;  %1291 = vmatpush1.msra.mxu0 %v5851_v39  ;;  %v953_v8 = vmul.f32 %v4292_v23, %v884_v48  ;;  %v1048_v31 = vpop.permute.xlu0 %1047  ;;  %v802_v43 = vmul.f32 %v4278_v18, %v730_v1 }
 0x147   : > { %1292 = vmatprep.subr.mxu0 %v5858_v7 }
 0x148   : > { %1293 = vmatpush1.msra.mxu0 %v5857_v24  ;;  %v985_v40 = vadd.f32 %v953_v8, %v839_v35 }
 0x14a   : > { %v880_v29 = vpop.permute.xlu1 %879  ;;  %1573 = vperm.xlu1 %3481, %v1499_v11   ;;  %v836_v11 = vadd.f32 %v804_v36, %v690_v28  ;;  %v688_v28 = vmul.f32 %v4285_v20, %v4524_v42 }
 0x14b   : > { %v951_v5 = vmul.f32 %v4292_v23, %v880_v29  ;;  %v950_v62 = vmul.f32 %v4290_v22, %v880_v29 }
 0x14c   : > { %v834_v24 = vadd.f32 %v802_v43, %v688_v28 }
 0x14d   : > { %v983_v26 = vadd.f32 %v951_v5, %v837_v25  ;;  %v982_v51 = vadd.f32 %v950_v62, %v836_v11  ;;  %v803_v5 = vmul.f32 %v4281_v19, %v730_v1  ;;  %v800_v25 = vmul.f32 %v4278_v18, %v4266_v6 }
 0x14e   : > { %v685_v11 = vmul.f32 %v4288_v21, %v594_v4  ;;  %v684_v1 = vmul.f32 %v4285_v20, %v594_v4 }
 0x14f   : > { %v599_v14 = vpop.permute.xlu1 %598  ;;  %v4583_v29 = vadd.f32 %v1048_v31, %v983_v26  ;;  %v4585_v37 = vadd.f32 %v1048_v31, %v982_v51 }
 0x150   : > { %v687_v51 = vmul.f32 %v4288_v21, %v599_v14  ;;  %v686_v12 = vmul.f32 %v4285_v20, %v599_v14 }
 0x151   : > { %v5860_v34 = vmax.f32 %v4583_v29, 0.0  ;;  %v5859_v35 = vmax.f32 %v4585_v37, 0.0 }
 0x154   : > { %v876_v59 = vpop.permute.xlu1 %875 }
 0x155   : > { %v948_v14 = vmul.f32 %v4290_v22, %v876_v59 }
 0x159   : > { %v1053_v39 = vpop.permute.xlu1 %1052 }
 0x15a   : > { %v4579_v27 = vadd.f32 %v1053_v39, %v984_v53  ;;  %v4581_v57 = vadd.f32 %v1053_v39, %v985_v40  ;;  %v584_v40 = vpop.permute.xlu0 %583  ;;  %v801_v39 = vmul.f32 %v4281_v19, %v4266_v6  ;;  %v949_v53 = vmul.f32 %v4292_v23, %v876_v59 }
 0x15c   : > { %5987 = vst [vmem:[#allocation41_spill] sm:$0xff] %v4579_v27  ;;  %5988 = vst [vmem:[#allocation42_spill] sm:$0xff] %v4581_v57  ;;  %v5855_v48 = vmax.f32 %v4579_v27, 0.0  ;;  %v5856_v41 = vmax.f32 %v4581_v57, 0.0  ;;  %v833_v42 = vadd.f32 %v801_v39, %v687_v51  ;;  %v980_v39 = vadd.f32 %v948_v14, %v834_v24 }
 0x15e   : > { %v722_v52 = vpop.permute.xlu1 %721  ;;  %1294 = vmatprep.subr.mxu0 %v5856_v41  ;;  %v1038_v54 = vpop.permute.xlu0 %1037 }
 0x15f   : > { %1295 = vmatpush1.msra.mxu0 %v5855_v48  ;;  %v799_v36 = vmul.f32 %v4281_v19, %v722_v52  ;;  %v798_v55 = vmul.f32 %v4278_v18, %v722_v52  ;;  %v832_v48 = vadd.f32 %v800_v25, %v686_v12  ;;  %v835_v52 = vadd.f32 %v803_v5, %v689_v45 }
 0x160   : > { %1296 = vmatprep.subr.mxu0 %v5860_v34 }
 0x161   : > { %1297 = vmatpush1.msra.mxu0 %v5859_v35  ;;  %v831_v7 = vadd.f32 %v799_v36, %v685_v11  ;;  %v830_v35 = vadd.f32 %v798_v55, %v684_v1  ;;  %v981_v9 = vadd.f32 %v949_v53, %v835_v52  ;;  %v680_v36 = vmul.f32 %v4285_v20, %v584_v40 }
 0x162   : > { %v1033_v25 = vpop.permute.xlu0 %1032  ;;  %v796_v55 = vmul.f32 %v4278_v18, %v4274_v16 }
 0x163   : > { %v872_v31 = vpop.permute.xlu1 %871 }
 0x164   : > { %v947_v62 = vmul.f32 %v4292_v23, %v872_v31  ;;  %v946_v8 = vmul.f32 %v4290_v22, %v872_v31 }
 0x166   : > { %v979_v31 = vadd.f32 %v947_v62, %v833_v42  ;;  %v978_v34 = vadd.f32 %v946_v8, %v832_v48  ;;  %v681_v62 = vmul.f32 %v4288_v21, %v584_v40  ;;  %v797_v8 = vmul.f32 %v4281_v19, %v4274_v16 }
 0x168   : > { %v589_v26 = vpop.permute.xlu1 %588  ;;  %v4625_v12 = vadd.f32 %v1038_v54, %v979_v31  ;;  %v4627_v15 = vadd.f32 %v1038_v54, %v978_v34 }
 0x169   : > { %v682_v43 = vmul.f32 %v4285_v20, %v589_v26  ;;  %v683_v5 = vmul.f32 %v4288_v21, %v589_v26 }
 0x16a   : > { %v5872_v54 = vmax.f32 %v4627_v15, 0.0 }
 0x16b   : > { %v828_v20 = vadd.f32 %v796_v55, %v682_v43  ;;  %v829_v52 = vadd.f32 %v797_v8, %v683_v5  ;;  %v1165_v43 = vld [vmem:[%s5814_s3 + $0x8] sm:$0xff]  ;;  %v1166_v5 = vld [vmem:[%s5814_s3 + $0x10] sm:$0xff] }
 0x16c   : > { %v1169_v55 = vld [vmem:[%s5814_s3 + $0x28] sm:$0xff]  ;;  %v1170_v8 = vld [vmem:[%s5814_s3 + $0x30] sm:$0xff] }
 0x16d   : > { %v868_v56 = vpop.permute.xlu1 %867 }
 0x16e   : > { %v944_v41 = vmul.f32 %v4290_v22, %v868_v56  ;;  %v945_v6 = vmul.f32 %v4292_v23, %v868_v56 }
 0x170   : > { %v977_v51 = vadd.f32 %v945_v6, %v831_v7  ;;  %v976_v58 = vadd.f32 %v944_v41, %v830_v35 }
 0x172   : > { %v1043_v59 = vpop.permute.xlu1 %1042  ;;  %v4631_v45 = vadd.f32 %v1033_v25, %v977_v51  ;;  %v4633_v7 = vadd.f32 %v1033_v25, %v976_v58  ;;  %v1023_v51 = vpop.permute.xlu0 %1022 }
 0x173   : > { %v4621_v60 = vadd.f32 %v1043_v59, %v980_v39  ;;  %v4623_v4 = vadd.f32 %v1043_v59, %v981_v9  ;;  %v5873_v9 = vmax.f32 %v4625_v12, 0.0 }
 0x174   : > { %v5877_v48 = vmax.f32 %v4631_v45, 0.0  ;;  %v5876_v58 = vmax.f32 %v4633_v7, 0.0 }
 0x175   : > { %v5868_v56 = vmax.f32 %v4621_v60, 0.0  ;;  %v5869_v28 = vmax.f32 %v4623_v4, 0.0 }
 0x177   : > { %v714_v24 = vpop.permute.xlu1 %713  ;;  %1298 = vmatprep.subr.mxu0 %v5869_v28 }
 0x178   : > { %1299 = vmatpush1.msra.mxu0 %v5868_v56  ;;  %v794_v34 = vmul.f32 %v4278_v18, %v714_v24  ;;  %v795_v35 = vmul.f32 %v4281_v19, %v714_v24 }
 0x179   : > { %1300 = vmatprep.subr.mxu0 %v5873_v9 }
 0x17a   : > { %1301 = vmatpush1.msra.mxu0 %v5872_v54  ;;  %v826_v53 = vadd.f32 %v794_v34, %v680_v36  ;;  %v827_v1 = vadd.f32 %v795_v35, %v681_v62  ;;  %v1164_v34 = vld [vmem:[%s5814_s3] sm:$0xff]  ;;  %v5989_v35 = vmov 0.0   ;;  %v1167_v36 = vld [vmem:[%s5814_s3 + $0x18] sm:$0xff] }
 0x17b   : > { %1302 = vmatprep.subr.mxu0 %v5877_v48  ;;  %v1168_v62 = vld [vmem:[%s5814_s3 + $0x20] sm:$0xff] }
 0x17c   : > { %v864_v41 = vpop.permute.xlu1 %863  ;;  %1303 = vmatpush1.msra.mxu0 %v5876_v58 }
 0x17d   : > { %v942_v11 = vmul.f32 %v4290_v22, %v864_v41  ;;  %v943_v42 = vmul.f32 %v4292_v23, %v864_v41 }
 0x17f   : > { %v974_v31 = vadd.f32 %v942_v11, %v828_v20  ;;  %v975_v18 = vadd.f32 %v943_v42, %v829_v52  ;;  %v1171_v11 = vld [vmem:[%s5814_s3 + $0x38] sm:$0xff]  ;;  %v1172_v42 = vld [vmem:[%s5814_s3 + $0x40] sm:$0xff]  ;;  %v1178_v20 = vld [vmem:[%s5814_s3 + $0x70] sm:$0xff] }
 0x180   : > { %v860_v14 = vpop.permute.xlu1 %859  ;;  %v1179_v52 = vld [vmem:[%s5814_s3 + $0x78] sm:$0xff] }
 0x181   : > { %v940_v6 = vmul.f32 %v4290_v22, %v860_v14  ;;  %v941_v26 = vmul.f32 %v4292_v23, %v860_v14  ;;  %v1173_v14 = vld [vmem:[%s5814_s3 + $0x48] sm:$0xff] }
 0x183   : > { %v972_v21 = vadd.f32 %v940_v6, %v826_v53  ;;  %v973_v40 = vadd.f32 %v941_v26, %v827_v1  ;;  %v1174_v53 = vld [vmem:[%s5814_s3 + $0x50] sm:$0xff]  ;;  %v1175_v1 = vld [vmem:[%s5814_s3 + $0x58] sm:$0xff]  ;;  %v1176_v6 = vld [vmem:[%s5814_s3 + $0x60] sm:$0xff] }
 0x184   : > { %v1177_v26 = vld [vmem:[%s5814_s3 + $0x68] sm:$0xff] }
 0x185   : > { %v1028_v39 = vpop.permute.xlu1 %1027  ;;  %v4669_v59 = vadd.f32 %v1023_v51, %v973_v40  ;;  %v4671_v25 = vadd.f32 %v1023_v51, %v972_v21 }
 0x186   : > { %v4665_v16 = vadd.f32 %v1028_v39, %v974_v31  ;;  %v4667_v19 = vadd.f32 %v1028_v39, %v975_v18 }
 0x187   : > { %v5875_v24 = vmax.f32 %v4669_v59, 0.0  ;;  %v5874_v41 = vmax.f32 %v4671_v25, 0.0 }
 0x188   : > { %v5870_v22 = vmax.f32 %v4665_v16, 0.0  ;;  %v5871_v23 = vmax.f32 %v4667_v19, 0.0 }
 0x189   : > { %v1274_v28 = vpop.permute.xlu1 %1273 }
 0x18a   : > { %1304 = vmatprep.subr.mxu0 %v5871_v23  ;;  %v1269_v23 = vpop.permute.xlu0 %1268 }
 0x18b   : > { %1305 = vmatpush1.msra.mxu0 %v5870_v22 }
 0x18c   : > { %1306 = vmatprep.subr.mxu0 %v5875_v24 }
 0x18d   : > { %1307 = vmatpush1.msra.mxu0 %v5874_v41  ;;  %v1264_v41 = vpop.permute.xlu1 %1263 }
 0x18e   : > { %1341 = vmatmul.mubr.f32.vlgmr.msra.gmra.mxu0 %v1164_v34  ;;  %v1259_v58 = vpop.permute.xlu0 %1258 }
 0x18f   : > { %1346 = vmatprep.mubr.f32.mxu0 %v5989_v35 }
 0x191   : > { %v1254_v61 = vpop.permute.xlu1 %1253 }
 0x192   : > { %1347 = vmatmul.mubr.f32.gmra.mxu0 %v1165_v43  ;;  %v1249_v13 = vpop.permute.xlu0 %1248 }
 0x193   : > { %1352 = vmatprep.mubr.f32.mxu0 %v5989_v35 }
 0x195   : > { %v1244_v49 = vpop.permute.xlu1 %1243 }
 0x196   : > { %1353 = vmatmul.mubr.f32.gmra.mxu0 %v1166_v5  ;;  %v1239_v46 = vpop.permute.xlu0 %1238 }
 0x197   : > { %1358 = vmatprep.mubr.f32.mxu0 %v5989_v35 }
 0x19a   : > { %1359 = vmatmul.mubr.f32.gmra.mxu0 %v1167_v36 }
 0x19b   : > { %1364 = vmatprep.mubr.f32.mxu0 %v5989_v35 }
 0x19e   : > { %1365 = vmatmul.mubr.f32.gmra.mxu0 %v1168_v62 }
 0x19f   : > { %1370 = vmatprep.mubr.f32.mxu0 %v5989_v35 }
 0x1a2   : > { %1371 = vmatmul.mubr.f32.gmra.mxu0 %v1169_v55 }
 0x1a3   : > { %1376 = vmatprep.mubr.f32.mxu0 %v5989_v35 }
 0x1a6   : > { %1377 = vmatmul.mubr.f32.gmra.mxu0 %v1170_v8 }
 0x1a7   : > { %1382 = vmatprep.mubr.f32.mxu0 %v5989_v35 }
 0x1aa   : > { %1383 = vmatmul.mubr.f32.gmra.mxu0 %v1171_v11 }
 0x1ab   : > { %1388 = vmatprep.mubr.f32.mxu0 %v5989_v35 }
 0x1ae   : > { %1389 = vmatmul.mubr.f32.gmra.mxu0 %v1172_v42 }
 0x1af   : > { %1394 = vmatprep.mubr.f32.mxu0 %v5989_v35 }
 0x1b2   : > { %1395 = vmatmul.mubr.f32.gmra.mxu0 %v1173_v14 }
 0x1b3   : > { %1400 = vmatprep.mubr.f32.mxu0 %v5989_v35 }
 0x1b6   : > { %1401 = vmatmul.mubr.f32.gmra.mxu0 %v1174_v53 }
 0x1b7   : > { %1406 = vmatprep.mubr.f32.mxu0 %v5989_v35 }
 0x1ba   : > { %1407 = vmatmul.mubr.f32.gmra.mxu0 %v1175_v1 }
 0x1bb   : > { %1412 = vmatprep.mubr.f32.mxu0 %v5989_v35 }
 0x1be   : > { %1413 = vmatmul.mubr.f32.gmra.mxu0 %v1176_v6 }
 0x1bf   : > { %1418 = vmatprep.mubr.f32.mxu0 %v5989_v35 }
 0x1c2   : > { %1419 = vmatmul.mubr.f32.gmra.mxu0 %v1177_v26 }
 0x1c3   : > { %1424 = vmatprep.mubr.f32.mxu0 %v5989_v35 }
 0x1c6   : > { %1425 = vmatmul.mubr.f32.gmra.mxu0 %v1178_v20 }
 0x1c7   : > { %1430 = vmatprep.mubr.f32.mxu0 %v5989_v35 }
 0x1ca   : > { %1431 = vmatmul.mubr.f32.gmra.mxu0 %v1179_v52 }
 0x24e   : > { %v4748_v21 = vpop.f32.mrf.mxu0 }
 0x250   : > { %v4750_v40 = vpop.f32.mrf.mxu0 }
 0x252   : > { %v4752_v31 = vpop.f32.mrf.mxu0 }
 0x254   : > { %v4754_v18 = vpop.f32.mrf.mxu0 }
 0x256   : > { %v4756_v51 = vpop.f32.mrf.mxu0 }
 0x258   : > { %v4758_v39 = vpop.f32.mrf.mxu0 }
 0x25a   : > { %v4760_v34 = vpop.f32.mrf.mxu0 }
 0x25c   : > { %v4762_v43 = vpop.f32.mrf.mxu0 }
 0x25e   : > { %v4764_v5 = vpop.f32.mrf.mxu0 }
 0x260   : > { %v4766_v36 = vpop.f32.mrf.mxu0 }
 0x262   : > { %v4768_v62 = vpop.f32.mrf.mxu0 }
 0x264   : > { %v4770_v55 = vpop.f32.mrf.mxu0 }
 0x266   : > { %v4772_v8 = vpop.f32.mrf.mxu0 }
 0x268   : > { %v4774_v11 = vpop.f32.mrf.mxu0 }
 0x26a   : > { %v4776_v42 = vpop.f32.mrf.mxu0 }
 0x26c   : > { %v4778_v14 = vpop.f32.mrf.mxu0 }
 0x26e   : > { %v1390_v53 = vpop.f32.mrf.mxu0 }
 0x270   : > { %v1392_v1 = vpop.f32.mrf.mxu0 }
 0x272   : > { %v1396_v6 = vpop.f32.mrf.mxu0 }
 0x274   : > { %v1398_v26 = vpop.f32.mrf.mxu0 }
 0x276   : > { %v1402_v20 = vpop.f32.mrf.mxu0 }
 0x278   : > { %v1404_v52 = vpop.f32.mrf.mxu0 }
 0x27a   : > { %v1408_v56 = vpop.f32.mrf.mxu0 }
 0x27c   : > { %v1410_v22 = vpop.f32.mrf.mxu0 }
 0x27e   : > { %v1414_v54 = vpop.f32.mrf.mxu0 }
 0x280   : > { %v1416_v9 = vpop.f32.mrf.mxu0 }
 0x281   : > { %v4794_v57 = vadd.f32 %v1416_v9, %v1259_v58  ;;  %v1234_v9 = vpop.permute.xlu1 %1233 }
 0x282   : > { %v1420_v24 = vpop.f32.mrf.mxu0 }
 0x283   : > { %v4791_v47 = vadd.f32 %v1420_v24, %v1264_v41  ;;  %v4819_v24 = vadd.f32 %v1402_v20, %v1249_v13 }
 0x284   : > { %v1422_v48 = vpop.f32.mrf.mxu0 }
 0x285   : > { %v4788_v63 = vadd.f32 %v1422_v48, %v1264_v41  ;;  %v4809_v48 = vadd.f32 %v1408_v56, %v1254_v61 }
 0x286   : > { %v1426_v17 = vpop.f32.mrf.mxu0 }
 0x287   : > { %v4786_v10 = vadd.f32 %v1426_v17, %v1269_v23 }
 0x288   : > { %v1428_v38 = vpop.f32.mrf.mxu0 }
 0x289   : > { %v4782_v0 = vadd.f32 %v1428_v38, %v1269_v23  ;;  %v4799_v38 = vadd.f32 %v1414_v54, %v1259_v58  ;;  %v5895_v17 = vmax.f32 %v4786_v10, 0.0  ;;  %v5901_v23 = vmax.f32 %v4791_v47, 0.0 }
 0x28a   : > { %v1432_v50 = vpop.f32.mrf.mxu0  ;;  %v4814_v54 = vadd.f32 %v1404_v52, %v1249_v13  ;;  %v5900_v58 = vmax.f32 %v4794_v57, 0.0  ;;  %v4829_v52 = vadd.f32 %v1396_v6, %v1244_v49  ;;  %v4834_v13 = vadd.f32 %v1392_v1, %v1239_v46 }
 0x28b   : > { %v4780_v32 = vadd.f32 %v1432_v50, %v1274_v28  ;;  %v5896_v50 = vmax.f32 %v4782_v0, 0.0  ;;  %v5899_v41 = vmax.f32 %v4799_v38, 0.0 }
 0x28c   : > { %v1434_v33 = vpop.f32.mrf.mxu0  ;;  %v5904_v20 = vmax.f32 %v4814_v54, 0.0 }
 0x28d   : > { %v4784_v44 = vadd.f32 %v1434_v33, %v1274_v28  ;;  %v5897_v27 = vmax.f32 %v4780_v32, 0.0  ;;  %v4804_v33 = vadd.f32 %v1410_v22, %v1254_v61  ;;  %v5902_v28 = vmax.f32 %v4788_v63, 0.0  ;;  %v1229_v22 = vpop.permute.xlu0 %1228 }
 0x28e   : > { %v4824_v61 = vadd.f32 %v1398_v26, %v1244_v49  ;;  %v1224_v26 = vpop.permute.xlu1 %1223  ;;  %v4845_v49 = vadd.f32 %v4778_v14, %v1234_v9  ;;  %v5908_v14 = vmax.f32 %v4834_v13, 0.0 }
 0x28f   : > { %v5898_v2 = vmax.f32 %v4784_v44, 0.0  ;;  %v5906_v56 = vmax.f32 %v4804_v33, 0.0 }
 0x290   : > { %v5910_v6 = vmax.f32 %v4824_v61, 0.0 }
 0x291   : > { %1581 = vmatprep.subr.mxu1 %v5898_v2  ;;  %v1219_v1 = vpop.permute.xlu0 %1218  ;;  %v4851_v2 = vadd.f32 %v4776_v42, %v1234_v9  ;;  %v4869_v42 = vadd.f32 %v4770_v55, %v1224_v26  ;;  %v5914_v9 = vmax.f32 %v4845_v49, 0.0 }
 0x292   : > { %1582 = vmatpush1.msra.mxu1 %v5897_v27  ;;  %v5903_v27 = vmax.f32 %v4819_v24, 0.0 }
 0x293   : > { %1583 = vmatprep.subr.mxu1 %v5896_v50  ;;  %v4839_v50 = vadd.f32 %v1390_v53, %v1239_v46  ;;  %v5909_v46 = vmax.f32 %v4829_v52, 0.0  ;;  %v4857_v53 = vadd.f32 %v4774_v11, %v1229_v22  ;;  %v1214_v11 = vpop.permute.xlu1 %1213 }
 0x294   : > { %1584 = vmatpush1.msra.mxu1 %v5895_v17  ;;  %v5905_v17 = vmax.f32 %v4809_v48, 0.0 }
 0x295   : > { %1585 = vmatprep.subr.mxu1 %v5902_v28  ;;  %v5912_v55 = vmax.f32 %v4857_v53, 0.0  ;;  %v1209_v28 = vpop.permute.xlu0 %1208 }
 0x296   : > { %1586 = vmatpush1.msra.mxu1 %v5901_v23  ;;  %v4875_v23 = vadd.f32 %v4768_v62, %v1224_v26  ;;  %v4893_v26 = vadd.f32 %v4762_v43, %v1214_v11 }
 0x297   : > { %1587 = vmatprep.subr.mxu1 %v5900_v58  ;;  %v5907_v58 = vmax.f32 %v4839_v50, 0.0  ;;  %v1204_v43 = vpop.permute.xlu1 %1203 }
 0x298   : > { %1588 = vmatpush1.msra.mxu1 %v5899_v41  ;;  %v4863_v41 = vadd.f32 %v4772_v8, %v1229_v22  ;;  %v5913_v8 = vmax.f32 %v4851_v2, 0.0  ;;  %v4881_v22 = vadd.f32 %v4766_v36, %v1219_v1  ;;  %v5918_v36 = vmax.f32 %v4869_v42, 0.0 }
 0x299   : > { %1589 = vmatprep.subr.mxu1 %v5906_v56  ;;  %v4911_v56 = vadd.f32 %v4756_v51, %v1209_v28 }
 0x29a   : > { %1590 = vmatpush1.msra.mxu1 %v5905_v17  ;;  %v5911_v62 = vmax.f32 %v4863_v41, 0.0  ;;  %v5917_v17 = vmax.f32 %v4875_v23, 0.0 }
 0x29b   : > { %1591 = vmatprep.subr.mxu1 %v5904_v20  ;;  %v4899_v20 = vadd.f32 %v4760_v34, %v1214_v11  ;;  %v4917_v11 = vadd.f32 %v4754_v18, %v1204_v43 }
 0x29c   : > { %1592 = vmatpush1.msra.mxu1 %v5903_v27  ;;  %v4887_v27 = vadd.f32 %v4764_v5, %v1219_v1  ;;  %v4905_v5 = vadd.f32 %v4758_v39, %v1209_v28  ;;  %v5916_v1 = vmax.f32 %v4881_v22, 0.0  ;;  %v5922_v39 = vmax.f32 %v4893_v26, 0.0 }
 0x29d   : > { %1593 = vmatprep.subr.mxu1 %v5910_v6  ;;  %v5921_v51 = vmax.f32 %v4899_v20, 0.0  ;;  %v5919_v6 = vmax.f32 %v4911_v56, 0.0 }
 0x29e   : > { %1594 = vmatpush1.msra.mxu1 %v5909_v46  ;;  %v5915_v34 = vmax.f32 %v4887_v27, 0.0  ;;  %v5920_v18 = vmax.f32 %v4905_v5, 0.0 }
 0x29f   : > { %1595 = vmatprep.subr.mxu1 %v5908_v14  ;;  %v4923_v14 = vadd.f32 %v4752_v31, %v1204_v43  ;;  %v5926_v31 = vmax.f32 %v4917_v11, 0.0 }
 0x2a0   : > { %1596 = vmatpush1.msra.mxu1 %v5907_v58  ;;  %v1199_v58 = vpop.permute.xlu0 %1198 }
 0x2a1   : > { %1597 = vmatprep.subr.mxu1 %v5914_v9  ;;  %v4929_v28 = vadd.f32 %v4750_v40, %v1199_v58  ;;  %v4935_v46 = vadd.f32 %v4748_v21, %v1199_v58  ;;  %v5925_v40 = vmax.f32 %v4923_v14, 0.0  ;;  %v1469_v58 = vld [vmem:[#allocation3] sm:$0xff] }
 0x2a2   : > { %1598 = vmatpush1.msra.mxu1 %v5913_v8  ;;  %v1472_v8 = vld [vmem:[#allocation3 + $0x18] sm:$0xff]  ;;  %v1473_v9 = vld [vmem:[#allocation3 + $0x20] sm:$0xff] }
 0x2a3   : > { %1599 = vmatprep.subr.mxu1 %v5912_v55  ;;  %v5924_v43 = vmax.f32 %v4929_v28, 0.0  ;;  %v5923_v21 = vmax.f32 %v4935_v46, 0.0  ;;  %v1471_v55 = vld [vmem:[#allocation3 + $0x10] sm:$0xff] }
 0x2a4   : > { %1600 = vmatpush1.msra.mxu1 %v5911_v62  ;;  %v1470_v62 = vld [vmem:[#allocation3 + $0x8] sm:$0xff] }
 0x2a5   : > { %1601 = vmatprep.subr.mxu1 %v5918_v36 }
 0x2a6   : > { %1602 = vmatpush1.msra.mxu1 %v5917_v17 }
 0x2a7   : > { %1603 = vmatprep.subr.mxu1 %v5916_v1 }
 0x2a8   : > { %1604 = vmatpush1.msra.mxu1 %v5915_v34  ;;  %v1474_v34 = vld [vmem:[#allocation3 + $0x28] sm:$0xff] }
 0x2a9   : > { %1605 = vmatprep.subr.mxu1 %v5922_v39 }
 0x2aa   : > { %1606 = vmatpush1.msra.mxu1 %v5921_v51 }
 0x2ab   : > { %1607 = vmatprep.subr.mxu1 %v5920_v18 }
 0x2ac   : > { %1608 = vmatpush1.msra.mxu1 %v5919_v6  ;;  %v1509_v6 = vpop.permute.xlu0 %1508 }
 0x2ad   : > { %1609 = vmatprep.subr.mxu1 %v5926_v31 }
 0x2ae   : > { %1610 = vmatpush1.msra.mxu1 %v5925_v40 }
 0x2af   : > { %1611 = vmatprep.subr.mxu1 %v5924_v43 }
 0x2b0   : > { %1612 = vmatpush1.msra.mxu1 %v5923_v21  ;;  %v1519_v40 = vpop.permute.xlu0 %1518 }
 0x2b1   : > { %1646 = vmatmul.mubr.f32.vlgmr.msra.gmra.mxu1 %v1469_v58  ;;  %v1475_v58 = vld [vmem:[#allocation3 + $0x30] sm:$0xff] }
 0x2b2   : > { %1651 = vmatprep.mubr.f32.mxu1 %v5989_v35 }
 0x2b5   : > { %1652 = vmatmul.mubr.f32.gmra.mxu1 %v1470_v62  ;;  %v1476_v62 = vld [vmem:[#allocation3 + $0x38] sm:$0xff] }
 0x2b6   : > { %1657 = vmatprep.mubr.f32.mxu1 %v5989_v35 }
 0x2b9   : > { %1658 = vmatmul.mubr.f32.gmra.mxu1 %v1471_v55  ;;  %v1477_v55 = vld [vmem:[#allocation3 + $0x40] sm:$0xff] }
 0x2ba   : > { %1663 = vmatprep.mubr.f32.mxu1 %v5989_v35 }
 0x2bd   : > { %1664 = vmatmul.mubr.f32.gmra.mxu1 %v1472_v8  ;;  %v1478_v8 = vld [vmem:[#allocation3 + $0x48] sm:$0xff] }
 0x2be   : > { %1669 = vmatprep.mubr.f32.mxu1 %v5989_v35 }
 0x2c1   : > { %1670 = vmatmul.mubr.f32.gmra.mxu1 %v1473_v9  ;;  %v1479_v9 = vld [vmem:[#allocation3 + $0x50] sm:$0xff] }
 0x2c2   : > { %1675 = vmatprep.mubr.f32.mxu1 %v5989_v35 }
 0x2c5   : > { %1676 = vmatmul.mubr.f32.gmra.mxu1 %v1474_v34  ;;  %v1480_v34 = vld [vmem:[#allocation3 + $0x58] sm:$0xff] }
 0x2c6   : > { %1681 = vmatprep.mubr.f32.mxu1 %v5989_v35 }
 0x2c9   : > { %1682 = vmatmul.mubr.f32.gmra.mxu1 %v1475_v58  ;;  %v1481_v58 = vld [vmem:[#allocation3 + $0x60] sm:$0xff] }
 0x2ca   : > { %1687 = vmatprep.mubr.f32.mxu1 %v5989_v35 }
 0x2cd   : > { %1688 = vmatmul.mubr.f32.gmra.mxu1 %v1476_v62  ;;  %v1482_v62 = vld [vmem:[#allocation3 + $0x68] sm:$0xff] }
 0x2ce   : > { %1693 = vmatprep.mubr.f32.mxu1 %v5989_v35 }
 0x2d1   : > { %1694 = vmatmul.mubr.f32.gmra.mxu1 %v1477_v55  ;;  %v1483_v55 = vld [vmem:[#allocation3 + $0x70] sm:$0xff] }
 0x2d2   : > { %1699 = vmatprep.mubr.f32.mxu1 %v5989_v35 }
 0x2d5   : > { %1700 = vmatmul.mubr.f32.gmra.mxu1 %v1478_v8  ;;  %v1484_v8 = vld [vmem:[#allocation3 + $0x78] sm:$0xff] }
 0x2d6   : > { %1705 = vmatprep.mubr.f32.mxu1 %v5989_v35 }
 0x2d9   : > { %1706 = vmatmul.mubr.f32.gmra.mxu1 %v1479_v9  ;;  %v1504_v9 = vpop.permute.xlu1 %1503 }
 0x2da   : > { %1711 = vmatprep.mubr.f32.mxu1 %v5989_v35 }
 0x2dd   : > { %1712 = vmatmul.mubr.f32.gmra.mxu1 %v1480_v34 }
 0x2de   : > { %1717 = vmatprep.mubr.f32.mxu1 %v5989_v35 }
 0x2e1   : > { %1718 = vmatmul.mubr.f32.gmra.mxu1 %v1481_v58 }
 0x2e2   : > { %1723 = vmatprep.mubr.f32.mxu1 %v5989_v35 }
 0x2e5   : > { %1724 = vmatmul.mubr.f32.gmra.mxu1 %v1482_v62 }
 0x2e6   : > { %1729 = vmatprep.mubr.f32.mxu1 %v5989_v35 }
 0x2e9   : > { %1730 = vmatmul.mubr.f32.gmra.mxu1 %v1483_v55 }
 0x2ea   : > { %1735 = vmatprep.mubr.f32.mxu1 %v5989_v35 }
 0x2ed   : > { %1736 = vmatmul.mubr.f32.gmra.mxu1 %v1484_v8  ;;  %v1514_v8 = vpop.permute.xlu1 %1513 }
 0x371   : > { %v1647_v1 = vpop.f32.mrf.mxu1 }
 0x372   : > { %v4971_v17 = vadd.f32 %v1647_v1, %v1504_v9 }
 0x373   : > { %v1649_v34 = vpop.f32.mrf.mxu1 }
 0x374   : > { %5990 = vst [vmem:[#allocation43_spill] sm:$0xff] %v4971_v17  ;;  %v4974_v58 = vadd.f32 %v1649_v34, %v1504_v9  ;;  %v1524_v17 = vpop.permute.xlu1 %1523 }
 0x375   : > { %v1653_v18 = vpop.f32.mrf.mxu1 }
 0x376   : > { %5991 = vst [vmem:[#allocation44_spill] sm:$0xff] %v4974_v58  ;;  %v4977_v51 = vadd.f32 %v1653_v18, %v1509_v6 }
 0x377   : > { %v1655_v55 = vpop.f32.mrf.mxu1 }
 0x378   : > { %v4980_v39 = vadd.f32 %v1655_v55, %v1509_v6 }
 0x379   : > { %v1659_v21 = vpop.f32.mrf.mxu1 }
 0x37a   : > { %v4983_v43 = vadd.f32 %v1659_v21, %v1514_v8 }
 0x37b   : > { %v1661_v36 = vpop.f32.mrf.mxu1 }
 0x37c   : > { %5992 = vst [vmem:[#allocation45_spill] sm:$0xff] %v4983_v43  ;;  %v4986_v34 = vadd.f32 %v1661_v36, %v1514_v8  ;;  %v1529_v43 = vpop.permute.xlu0 %1528 }
 0x37d   : > { %v1665_v62 = vpop.f32.mrf.mxu1 }
 0x37e   : > { %5993 = vst [vmem:[#allocation46_spill] sm:$0xff] %v4986_v34  ;;  %v4989_v31 = vadd.f32 %v1665_v62, %v1519_v40 }
 0x37f   : > { %v1667_v35 = vpop.f32.mrf.mxu1 }
 0x380   : > { %5994 = vst [vmem:[#allocation47_spill] sm:$0xff] %v4989_v31  ;;  %v4992_v55 = vadd.f32 %v1667_v35, %v1519_v40  ;;  %v1534_v31 = vpop.permute.xlu1 %1533 }
 0x381   : > { %v1671_v1 = vpop.f32.mrf.mxu1 }
 0x382   : > { %5995 = vst [vmem:[#allocation48_spill] sm:$0xff] %v4992_v55  ;;  %v4995_v58 = vadd.f32 %v1671_v1, %v1524_v17 }
 0x383   : > { %v1673_v9 = vpop.f32.mrf.mxu1 }
 0x384   : > { %5996 = vst [vmem:[#allocation49_spill] sm:$0xff] %v4995_v58  ;;  %v4998_v8 = vadd.f32 %v1673_v9, %v1524_v17  ;;  %v1539_v58 = vpop.permute.xlu0 %1538 }
 0x385   : > { %v1677_v18 = vpop.f32.mrf.mxu1 }
 0x386   : > { %5997 = vst [vmem:[#allocation50_spill] sm:$0xff] %v4998_v8  ;;  %v5001_v34 = vadd.f32 %v1677_v18, %v1529_v43 }
 0x387   : > { %v1679_v6 = vpop.f32.mrf.mxu1 }
 0x388   : > { %5998 = vst [vmem:[#allocation51_spill] sm:$0xff] %v5001_v34  ;;  %v5004_v35 = vadd.f32 %v1679_v6, %v1529_v43  ;;  %v1544_v34 = vpop.permute.xlu1 %1543 }
 0x389   : > { %v1683_v21 = vpop.f32.mrf.mxu1 }
 0x38a   : > { %5999 = vst [vmem:[#allocation52_spill] sm:$0xff] %v5004_v35  ;;  %v5007_v55 = vadd.f32 %v1683_v21, %v1534_v31 }
 0x38b   : > { %v1685_v36 = vpop.f32.mrf.mxu1 }
 0x38c   : > { %6000 = vst [vmem:[#allocation53_spill] sm:$0xff] %v5007_v55  ;;  %v5010_v9 = vadd.f32 %v1685_v36, %v1534_v31  ;;  %v1549_v55 = vpop.permute.xlu0 %1548 }
 0x38d   : > { %v1689_v62 = vpop.f32.mrf.mxu1 }
 0x38e   : > { %6001 = vst [vmem:[#allocation54_spill] sm:$0xff] %v5010_v9  ;;  %v5013_v8 = vadd.f32 %v1689_v62, %v1539_v58 }
 0x38f   : > { %v1691_v40 = vpop.f32.mrf.mxu1 }
 0x390   : > { %6002 = vst [vmem:[#allocation55_spill] sm:$0xff] %v5013_v8  ;;  %v5016_v6 = vadd.f32 %v1691_v40, %v1539_v58  ;;  %v1554_v8 = vpop.permute.xlu1 %1553 }
 0x391   : > { %v1695_v1 = vpop.f32.mrf.mxu1 }
 0x392   : > { %6003 = vst [vmem:[#allocation56_spill] sm:$0xff] %v5016_v6  ;;  %v5019_v35 = vadd.f32 %v1695_v1, %v1544_v34 }
 0x393   : > { %v1697_v17 = vpop.f32.mrf.mxu1 }
 0x394   : > { %6004 = vst [vmem:[#allocation57_spill] sm:$0xff] %v5019_v35  ;;  %v5022_v36 = vadd.f32 %v1697_v17, %v1544_v34  ;;  %v1559_v35 = vpop.permute.xlu0 %1558 }
 0x395   : > { %v1701_v18 = vpop.f32.mrf.mxu1 }
 0x396   : > { %6005 = vst [vmem:[#allocation58_spill] sm:$0xff] %v5022_v36  ;;  %v5025_v9 = vadd.f32 %v1701_v18, %v1549_v55 }
 0x397   : > { %v1703_v43 = vpop.f32.mrf.mxu1 }
 0x398   : > { %6006 = vst [vmem:[#allocation59_spill] sm:$0xff] %v5025_v9  ;;  %v5028_v40 = vadd.f32 %v1703_v43, %v1549_v55  ;;  %v1564_v9 = vpop.permute.xlu1 %1563 }
 0x399   : > { %v1707_v21 = vpop.f32.mrf.mxu1 }
 0x39a   : > { %6007 = vst [vmem:[#allocation60_spill] sm:$0xff] %v5028_v40  ;;  %v5031_v6 = vadd.f32 %v1707_v21, %v1554_v8 }
 0x39b   : > { %v1709_v31 = vpop.f32.mrf.mxu1 }
 0x39c   : > { %6008 = vst [vmem:[#allocation61_spill] sm:$0xff] %v5031_v6  ;;  %v5034_v17 = vadd.f32 %v1709_v31, %v1554_v8  ;;  %v1569_v6 = vpop.permute.xlu0 %1568  ;;  %v1574_v21 = vpop.permute.xlu1 %1573 }
 0x39d   : > { %v1713_v62 = vpop.f32.mrf.mxu1 }
 0x39e   : > { %6009 = vst [vmem:[#allocation62_spill] sm:$0xff] %v5034_v17  ;;  %v5037_v36 = vadd.f32 %v1713_v62, %v1559_v35 }
 0x39f   : > { %v1715_v58 = vpop.f32.mrf.mxu1 }
 0x3a0   : > { %6010 = vst [vmem:[#allocation63_spill] sm:$0xff] %v5037_v36  ;;  %v5040_v43 = vadd.f32 %v1715_v58, %v1559_v35  ;;  %v1579_v62 = vpop.permute.xlu0 %1578 }
 0x3a1   : > { %v1719_v1 = vpop.f32.mrf.mxu1 }
 0x3a2   : > { %6011 = vst [vmem:[#allocation64_spill] sm:$0xff] %v5040_v43  ;;  %v5043_v40 = vadd.f32 %v1719_v1, %v1564_v9 }
 0x3a3   : > { %v1721_v34 = vpop.f32.mrf.mxu1 }
 0x3a4   : > { %6012 = vst [vmem:[#allocation65_spill] sm:$0xff] %v5043_v40  ;;  %v5046_v31 = vadd.f32 %v1721_v34, %v1564_v9 }
 0x3a5   : > { %v1725_v18 = vpop.f32.mrf.mxu1 }
 0x3a6   : > { %6013 = vst [vmem:[#allocation66_spill] sm:$0xff] %v5046_v31  ;;  %v5049_v17 = vadd.f32 %v1725_v18, %v1569_v6 }
 0x3a7   : > { %v1727_v55 = vpop.f32.mrf.mxu1 }
 0x3a8   : > { %v5052_v58 = vadd.f32 %v1727_v55, %v1569_v6 }
 0x3a9   : > { %v1731_v1 = vpop.f32.mrf.mxu1 }
 0x3aa   : > { %v5055_v43 = vadd.f32 %v1731_v1, %v1574_v21 }
 0x3ab   : > { %v1733_v9 = vpop.f32.mrf.mxu1 }
 0x3ac   : > { %6014 = vst [vmem:[#allocation67_spill] sm:$0xff] %v5055_v43  ;;  %v5058_v8 = vadd.f32 %v1733_v9, %v1574_v21  ;;  %1777 = sbr.rel (%p3289_p0) target bundleno = 970 (0x3ca), region = 96 }
 0x3ad   : > { %v1737_v18 = vpop.f32.mrf.mxu1 }
 0x3ae   : > { %v5061_v31 = vadd.f32 %v1737_v18, %v1579_v62 }
 0x3af   : > { %v1739_v6 = vpop.f32.mrf.mxu1 }
 0x3b0   : > { %v5064_v35 = vadd.f32 %v1739_v6, %v1579_v62 }
 0x3b1   : > { %vm1778_vm0 = vcmask 7168   ;;  %v3832_v21 = vmov -inf  }
 0x3b2   : > { %1779 = vst.msk [vmem:[#allocation2] sm:$0xff] %vm1778_vm0, %v3832_v21  ;;  %1780 = vst.msk [vmem:[#allocation2 + $0x8] sm:$0xff] %vm1778_vm0, %v3832_v21 }
 0x3b3   : > { %1781 = vst.msk [vmem:[#allocation2 + $0x10] sm:$0xff] %vm1778_vm0, %v3832_v21  ;;  %1782 = vst.msk [vmem:[#allocation2 + $0x18] sm:$0xff] %vm1778_vm0, %v3832_v21 }
 0x3b4   : > { %1783 = vst.msk [vmem:[#allocation2 + $0x20] sm:$0xff] %vm1778_vm0, %v3832_v21  ;;  %1784 = vst.msk [vmem:[#allocation2 + $0x28] sm:$0xff] %vm1778_vm0, %v3832_v21 }
 0x3b5   : > { %1785 = vst.msk [vmem:[#allocation2 + $0x30] sm:$0xff] %vm1778_vm0, %v3832_v21  ;;  %1786 = vst.msk [vmem:[#allocation2 + $0x38] sm:$0xff] %vm1778_vm0, %v3832_v21 }
 0x3b6   : > { %1787 = vst.msk [vmem:[#allocation2 + $0x40] sm:$0xff] %vm1778_vm0, %v3832_v21  ;;  %1788 = vst.msk [vmem:[#allocation2 + $0x48] sm:$0xff] %vm1778_vm0, %v3832_v21 }
 0x3b7   : > { %1789 = vst.msk [vmem:[#allocation2 + $0x50] sm:$0xff] %vm1778_vm0, %v3832_v21  ;;  %1790 = vst.msk [vmem:[#allocation2 + $0x58] sm:$0xff] %vm1778_vm0, %v3832_v21 }
 0x3b8   : > { %1791 = vst.msk [vmem:[#allocation2 + $0x60] sm:$0xff] %vm1778_vm0, %v3832_v21  ;;  %1792 = vst.msk [vmem:[#allocation2 + $0x68] sm:$0xff] %vm1778_vm0, %v3832_v21 }
 0x3b9   : > { %1793 = vst.msk [vmem:[#allocation2 + $0x70] sm:$0xff] %vm1778_vm0, %v3832_v21  ;;  %1794 = vst.msk [vmem:[#allocation2 + $0x78] sm:$0xff] %vm1778_vm0, %v3832_v21 }
 0x3ba   : > { %1795 = vst.msk [vmem:[#allocation2 + $0x80] sm:$0xff] %vm1778_vm0, %v3832_v21  ;;  %1796 = vst.msk [vmem:[#allocation2 + $0x88] sm:$0xff] %vm1778_vm0, %v3832_v21 }
 0x3bb   : > { %1797 = vst.msk [vmem:[#allocation2 + $0x90] sm:$0xff] %vm1778_vm0, %v3832_v21  ;;  %1798 = vst.msk [vmem:[#allocation2 + $0x98] sm:$0xff] %vm1778_vm0, %v3832_v21 }
 0x3bc   : > { %1799 = vst.msk [vmem:[#allocation2 + $0xa0] sm:$0xff] %vm1778_vm0, %v3832_v21  ;;  %1800 = vst.msk [vmem:[#allocation2 + $0xa8] sm:$0xff] %vm1778_vm0, %v3832_v21 }
 0x3bd   : > { %1801 = vst.msk [vmem:[#allocation2 + $0xb0] sm:$0xff] %vm1778_vm0, %v3832_v21  ;;  %1802 = vst.msk [vmem:[#allocation2 + $0xb8] sm:$0xff] %vm1778_vm0, %v3832_v21 }
 0x3be   : > { %1803 = vst.msk [vmem:[#allocation2 + $0xc0] sm:$0xff] %vm1778_vm0, %v3832_v21  ;;  %1804 = vst.msk [vmem:[#allocation2 + $0xc8] sm:$0xff] %vm1778_vm0, %v3832_v21 }
 0x3bf   : > { %1805 = vst.msk [vmem:[#allocation2 + $0xd0] sm:$0xff] %vm1778_vm0, %v3832_v21  ;;  %1806 = vst.msk [vmem:[#allocation2 + $0xd8] sm:$0xff] %vm1778_vm0, %v3832_v21 }
 0x3c0   : > { %1807 = vst.msk [vmem:[#allocation2 + $0xe0] sm:$0xff] %vm1778_vm0, %v3832_v21  ;;  %1808 = vst.msk [vmem:[#allocation2 + $0xe8] sm:$0xff] %vm1778_vm0, %v3832_v21 }
 0x3c1   : > { %1809 = vst.msk [vmem:[#allocation2 + $0xf0] sm:$0xff] %vm1778_vm0, %v3832_v21  ;;  %1810 = vst.msk [vmem:[#allocation2 + $0xf8] sm:$0xff] %vm1778_vm0, %v3832_v21 }
 0x3c2   : > { %1811 = vst.msk [vmem:[#allocation2 + $0x100] sm:$0xff] %vm1778_vm0, %v3832_v21  ;;  %1812 = vst.msk [vmem:[#allocation2 + $0x108] sm:$0xff] %vm1778_vm0, %v3832_v21 }
 0x3c3   : > { %1813 = vst.msk [vmem:[#allocation2 + $0x110] sm:$0xff] %vm1778_vm0, %v3832_v21  ;;  %1814 = vst.msk [vmem:[#allocation2 + $0x118] sm:$0xff] %vm1778_vm0, %v3832_v21 }
 0x3c4   : > { %1815 = vst.msk [vmem:[#allocation2 + $0x120] sm:$0xff] %vm1778_vm0, %v3832_v21  ;;  %1816 = vst.msk [vmem:[#allocation2 + $0x128] sm:$0xff] %vm1778_vm0, %v3832_v21 }
 0x3c5   : > { %1817 = vst.msk [vmem:[#allocation2 + $0x130] sm:$0xff] %vm1778_vm0, %v3832_v21  ;;  %1818 = vst.msk [vmem:[#allocation2 + $0x138] sm:$0xff] %vm1778_vm0, %v3832_v21 }
 0x3c6   : > { %1819 = vst.msk [vmem:[#allocation2 + $0x140] sm:$0xff] %vm1778_vm0, %v3832_v21  ;;  %1820 = vst.msk [vmem:[#allocation2 + $0x148] sm:$0xff] %vm1778_vm0, %v3832_v21 }
 0x3c7   : > { %1821 = vst.msk [vmem:[#allocation2 + $0x150] sm:$0xff] %vm1778_vm0, %v3832_v21  ;;  %1822 = vst.msk [vmem:[#allocation2 + $0x158] sm:$0xff] %vm1778_vm0, %v3832_v21 }
 0x3c8   : > { %1823 = vst.msk [vmem:[#allocation2 + $0x160] sm:$0xff] %vm1778_vm0, %v3832_v21  ;;  %1824 = vst.msk [vmem:[#allocation2 + $0x168] sm:$0xff] %vm1778_vm0, %v3832_v21 }
 0x3c9   : > { %1825 = vst.msk [vmem:[#allocation2 + $0x170] sm:$0xff] %vm1778_vm0, %v3832_v21  ;;  %1826 = vst.msk [vmem:[#allocation2 + $0x178] sm:$0xff] %vm1778_vm0, %v3832_v21 }
 0x3ca PF: > { %v6015_v62 = vmax.f32 %v4631_v45, 0.0  ;;  %v6016_v1 = vmax.f32 %v4633_v7, 0.0  ;;  %v6017_v18 = vmax.f32 %v4669_v59, 0.0  ;;  %v6018_v6 = vmax.f32 %v4671_v25, 0.0  ;;  %p3290_p1 = scmp.ne.s32.totalorder %s3803_s21, 3 }
 0x3cb   : > { %v6019_v40 = vmax.f32 %v4625_v12, 0.0  ;;  %v6020_v55 = vmax.f32 %v4627_v15, 0.0  ;;  %v6021_v21 = vmax.f32 %v4667_v19, 0.0  ;;  %v6022_v43 = vmax.f32 %v4665_v16, 0.0 }
 0x3cc   : > { %v1849_v9 = vmax.f32 %v6016_v1, %v6015_v62  ;;  %v1843_v34 = vmax.f32 %v6018_v6, %v6017_v18  ;;  %v6023_v7 = vmax.f32 %v4583_v29, 0.0  ;;  %v6024_v59 = vmax.f32 %v4585_v37, 0.0  ;;  %v6033_v37 = vld [vmem:[#allocation37_spill] sm:$0xff]  ;;  %v6037_v18 = vld [vmem:[#allocation40_spill] sm:$0xff] }
 0x3cd   : > { %v1852_v36 = vmax.f32 %v6020_v55, %v6019_v40  ;;  %v1846_v45 = vmax.f32 %v6022_v43, %v6021_v21  ;;  %v6025_v62 = vmax.f32 %v4623_v4, 0.0  ;;  %v6027_v15 = vmax.f32 %v4539_v30, 0.0  ;;  %v6029_v40 = vld [vmem:[#allocation42_spill] sm:$0xff]  ;;  %v6031_v43 = vld [vmem:[#allocation41_spill] sm:$0xff]  ;;  %v6039_v21 = vld [vmem:[#allocation39_spill] sm:$0xff] }
 0x3ce   : > { %1850 = vmax.xlane.f32.xlu1 %v1849_v9  ;;  %1844 = vmax.xlane.f32.xlu0 %v1843_v34  ;;  %v1858_v25 = vmax.f32 %v6024_v59, %v6023_v7  ;;  %v6026_v34 = vmax.f32 %v4621_v60, 0.0  ;;  %v6028_v19 = vmax.f32 %v4541_v3, 0.0  ;;  %v6032_v55 = vmax.f32 %v6031_v43, 0.0  ;;  %v6035_v4 = vld [vmem:[#allocation38_spill] sm:$0xff]  ;;  %v6041_v3 = vld [vmem:[#allocation31_spill] sm:$0xff]  ;;  %v6051_v43 = vld [vmem:[#allocation29_spill] sm:$0xff] }
 0x3cf   : > { %v6034_v1 = vmax.f32 %v6033_v37, 0.0  ;;  %v6036_v9 = vmax.f32 %v6035_v4, 0.0  ;;  %v6038_v6 = vmax.f32 %v6037_v18, 0.0  ;;  %v6042_v7 = vmax.f32 %v6041_v3, 0.0  ;;  %v6043_v59 = vld [vmem:[#allocation34_spill] sm:$0xff]  ;;  %v6053_v37 = vld [vmem:[#allocation33_spill] sm:$0xff] }
 0x3d0   : > { %v1855_v12 = vmax.f32 %v6026_v34, %v6025_v62  ;;  %v1864_v16 = vmax.f32 %v6028_v19, %v6027_v15  ;;  %v6045_v34 = vld [vmem:[#allocation36_spill] sm:$0xff]  ;;  %v6047_v15 = vld [vmem:[#allocation35_spill] sm:$0xff]  ;;  %v6057_v18 = vld [vmem:[#allocation25_spill] sm:$0xff]  ;;  %vm1907_vm1 = vcmask 7168  }
 0x3d1   : > { %v1870_v60 = vmax.f32 %v6036_v9, %v6034_v1  ;;  %v6048_v19 = vmax.f32 %v6047_v15, 0.0  ;;  %v6054_v1 = vmax.f32 %v6053_v37, 0.0  ;;  %v6055_v4 = vld [vmem:[#allocation32_spill] sm:$0xff]  ;;  %v6072_v37 = vmax.f32 %v4911_v56, 0.0 }
 0x3d2   : > { %1853 = vmax.xlane.f32.xlu1 %v1852_v36  ;;  %1847 = vmax.xlane.f32.xlu0 %v1846_v45  ;;  %v6030_v36 = vmax.f32 %v6029_v40, 0.0  ;;  %v6040_v45 = vmax.f32 %v6039_v21, 0.0  ;;  %v6049_v40 = vld [vmem:[#allocation30_spill] sm:$0xff]  ;;  %v6056_v9 = vmax.f32 %v6055_v4, 0.0  ;;  %v6061_v3 = vld [vmem:[#allocation28_spill] sm:$0xff]  ;;  %v6076_v4 = vmax.f32 %v4887_v27, 0.0 }
 0x3d3   : > { %v6059_v21 = vld [vmem:[#allocation26_spill] sm:$0xff] }
 0x3d4   : > { %v1861_v29 = vmax.f32 %v6032_v55, %v6030_v36  ;;  %v1867_v30 = vmax.f32 %v6040_v45, %v6038_v6  ;;  %v6050_v36 = vmax.f32 %v6049_v40, 0.0  ;;  %v6052_v55 = vmax.f32 %v6051_v43, 0.0 }
 0x3d5   : > { %v6058_v6 = vmax.f32 %v6057_v18, 0.0  ;;  %v6060_v45 = vmax.f32 %v6059_v21, 0.0  ;;  %v6070_v43 = vmax.f32 %v4899_v20, 0.0  ;;  %v6077_v20 = vmax.f32 %v4845_v49, 0.0 }
 0x3d6   : > { %1859 = vmax.xlane.f32.xlu1 %v1858_v25  ;;  %1856 = vmax.xlane.f32.xlu0 %v1855_v12  ;;  %v6044_v25 = vmax.f32 %v6043_v59, 0.0  ;;  %v6046_v12 = vmax.f32 %v6045_v34, 0.0  ;;  %v6063_v59 = vld [vmem:[#allocation27_spill] sm:$0xff]  ;;  %v6065_v34 = vmax.f32 %v4917_v11, 0.0  ;;  %v6083_v18 = vmax.f32 %v4834_v13, 0.0 }
 0x3d7   : > { %v6087_v21 = vmax.f32 %v4814_v54, 0.0  ;;  %v6090_v13 = vmax.f32 %v4791_v47, 0.0  ;;  %v6094_v54 = vmax.f32 %v4780_v32, 0.0  ;;  %v6097_v47 = vmax.f32 %v4980_v39, 0.0  ;;  %v6103_v32 = vld [vmem:[#allocation48_spill] sm:$0xff] }
 0x3d8   : > { %v1876_v62 = vmax.f32 %v6044_v25, %v6042_v7  ;;  %v6062_v7 = vmax.f32 %v6061_v3, 0.0  ;;  %v6064_v25 = vmax.f32 %v6063_v59, 0.0  ;;  %v6092_v3 = vmax.f32 %v4799_v38, 0.0 }
 0x3d9   : > { %v6096_v59 = vmax.f32 %v4786_v10, 0.0 }
 0x3da   : > { %1865 = vmax.xlane.f32.xlu1 %v1864_v16  ;;  %1862 = vmax.xlane.f32.xlu0 %v1861_v29  ;;  %v1873_v16 = vmax.f32 %v6048_v19, %v6046_v12  ;;  %v1882_v29 = vmax.f32 %v6052_v55, %v6050_v36  ;;  %v6066_v12 = vmax.f32 %v4923_v14, 0.0  ;;  %v6067_v19 = vmax.f32 %v4929_v28, 0.0 }
 0x3db   : > { %v6069_v36 = vmax.f32 %v4893_v26, 0.0  ;;  %v6073_v14 = vmax.f32 %v4869_v42, 0.0  ;;  %v6074_v28 = vmax.f32 %v4875_v23, 0.0  ;;  %v6081_v23 = vmax.f32 %v4824_v61, 0.0 }
 0x3dc   : > { %v1943_v15 = vmax.f32 %v6066_v12, %v6065_v34  ;;  %v6101_v34 = vld [vmem:[#allocation43_spill] sm:$0xff] }
 0x3dd   : > { %v1949_v55 = vmax.f32 %v6070_v43, %v6069_v36  ;;  %v6102_v12 = vmax.f32 %v6101_v34, 0.0  ;;  %v6109_v36 = vld [vmem:[#allocation45_spill] sm:$0xff] }
 0x3de   : > { %1871 = vmax.xlane.f32.xlu1 %v1870_v60  ;;  %1868 = vmax.xlane.f32.xlu0 %v1867_v30  ;;  %v1879_v60 = vmax.f32 %v6056_v9, %v6054_v1  ;;  %v1888_v30 = vmax.f32 %v6060_v45, %v6058_v6  ;;  %v6075_v1 = vmax.f32 %v4881_v22, 0.0  ;;  %v6079_v9 = vmax.f32 %v4857_v53, 0.0 }
 0x3df   : > { %v6082_v22 = vmax.f32 %v4829_v52, 0.0  ;;  %v6084_v6 = vmax.f32 %v4839_v50, 0.0  ;;  %v6086_v53 = vmax.f32 %v4809_v48, 0.0  ;;  %v6088_v45 = vmax.f32 %v4819_v24, 0.0 }
 0x3e0   : > { %v1952_v26 = vmax.f32 %v6076_v4, %v6075_v1  ;;  %v6089_v52 = vmax.f32 %v4788_v63, 0.0  ;;  %v6093_v48 = vmax.f32 %v4784_v44, 0.0  ;;  %v6110_v43 = vmax.f32 %v6109_v36, 0.0 }
 0x3e1   : > { %v1967_v27 = vmax.f32 %v6082_v22, %v6081_v23  ;;  %v1964_v49 = vmax.f32 %v6084_v6, %v6083_v18  ;;  %v1970_v61 = vmax.f32 %v6088_v45, %v6087_v21  ;;  %v6125_v23 = vld [vmem:[#allocation53_spill] sm:$0xff]  ;;  %v6127_v18 = vld [vmem:[#allocation60_spill] sm:$0xff] }
 0x3e2   : > { %1877 = vmax.xlane.f32.xlu1 %v1876_v62  ;;  %1874 = vmax.xlane.f32.xlu0 %v1873_v16  ;;  %v1885_v62 = vmax.f32 %v6064_v25, %v6062_v7  ;;  %v6068_v16 = vmax.f32 %v4935_v46, 0.0  ;;  %v1955_v46 = vmax.f32 %v6074_v28, %v6073_v14  ;;  %v1979_v50 = vmax.f32 %v6090_v13, %v6089_v52  ;;  %v6099_v25 = vld [vmem:[#allocation44_spill] sm:$0xff]  ;;  %v6115_v14 = vld [vmem:[#allocation50_spill] sm:$0xff]  ;;  %v6133_v45 = vld [vmem:[#allocation57_spill] sm:$0xff] }
 0x3e3   : > { %v1985_v24 = vmax.f32 %v6094_v54, %v6093_v48  ;;  %v6095_v7 = vmax.f32 %v4782_v0, 0.0  ;;  %v6105_v0 = vld [vmem:[#allocation47_spill] sm:$0xff]  ;;  %v6116_v28 = vmax.f32 %v6115_v14, 0.0  ;;  %v6126_v22 = vmax.f32 %v6125_v23, 0.0  ;;  %v6135_v13 = vld [vmem:[#allocation64_spill] sm:$0xff]  ;;  %v6139_v48 = vld [vmem:[#allocation62_spill] sm:$0xff] }
 0x3e4   : > { %v1940_v40 = vmax.f32 %v6068_v16, %v6067_v19  ;;  %v6106_v19 = vmax.f32 %v6105_v0, 0.0  ;;  %v6107_v16 = vld [vmem:[#allocation46_spill] sm:$0xff]  ;;  %v6128_v6 = vmax.f32 %v6127_v18, 0.0  ;;  %v6140_v54 = vmax.f32 %v6139_v48, 0.0 }
 0x3e5   : > { %v1982_v63 = vmax.f32 %v6096_v59, %v6095_v7  ;;  %v6151_v0 = vmax.f32 %v5058_v8, 0.0 }
 0x3e6   : > { %1883 = vmax.xlane.f32.xlu1 %v1882_v29  ;;  %1880 = vmax.xlane.f32.xlu0 %v1879_v60  ;;  %v6071_v29 = vmax.f32 %v4905_v5, 0.0  ;;  %v6078_v5 = vmax.f32 %v4851_v2, 0.0  ;;  %v6080_v60 = vmax.f32 %v4863_v41, 0.0  ;;  %v6085_v2 = vmax.f32 %v4804_v33, 0.0 }
 0x3e8   : > { %v1946_v11 = vmax.f32 %v6072_v37, %v6071_v29  ;;  %v1961_v56 = vmax.f32 %v6078_v5, %v6077_v20  ;;  %v1958_v42 = vmax.f32 %v6080_v60, %v6079_v9  ;;  %v1973_v41 = vmax.f32 %v6086_v53, %v6085_v2  ;;  %v6113_v29 = vld [vmem:[#allocation51_spill] sm:$0xff]  ;;  %v6123_v60 = vld [vmem:[#allocation54_spill] sm:$0xff] }
 0x3e9   : > { %v6114_v37 = vmax.f32 %v6113_v29, 0.0  ;;  %v6121_v5 = vld [vmem:[#allocation55_spill] sm:$0xff] }
 0x3ea   : > { %1889 = vmax.xlane.f32.xlu1 %v1888_v30  ;;  %1886 = vmax.xlane.f32.xlu0 %v1885_v62  ;;  %v6091_v30 = vmax.f32 %v4794_v57, 0.0  ;;  %v6098_v57 = vmax.f32 %v4977_v51, 0.0  ;;  %v6100_v62 = vmax.f32 %v6099_v25, 0.0  ;;  %v6111_v51 = vld [vmem:[#allocation52_spill] sm:$0xff] }
 0x3ec   : > { %v1976_v33 = vmax.f32 %v6092_v3, %v6091_v30  ;;  %v2039_v38 = vmax.f32 %v6098_v57, %v6097_v47  ;;  %v2036_v44 = vmax.f32 %v6102_v12, %v6100_v62  ;;  %v6137_v30 = vld [vmem:[#allocation63_spill] sm:$0xff]  ;;  %v6144_v47 = vmax.f32 %v5049_v17, 0.0  ;;  %v6147_v62 = vld [vmem:[#allocation65_spill] sm:$0xff] }
 0x3ed   : > { %v6138_v3 = vmax.f32 %v6137_v30, 0.0  ;;  %v6148_v34 = vmax.f32 %v6147_v62, 0.0  ;;  %v1829_v17 = vld [vmem:[#allocation2 + $0x10] sm:$0xff]  ;;  %v1927_v62 = vld [vmem:[#allocation2 + $0x98] sm:$0xff] }
 0x3ee   : > { %1944 = vmax.xlane.f32.xlu1 %v1943_v15  ;;  %1941 = vmax.xlane.f32.xlu0 %v1940_v40  ;;  %v6104_v15 = vmax.f32 %v6103_v32, 0.0  ;;  %v6108_v40 = vmax.f32 %v6107_v16, 0.0  ;;  %v6150_v32 = vmax.f32 %v5061_v31, 0.0  ;;  %v1827_v16 = vld [vmem:[#allocation2] sm:$0xff] }
 0x3f0   : > { %v2045_v10 = vmax.f32 %v6106_v19, %v6104_v15  ;;  %v2042_v39 = vmax.f32 %v6110_v43, %v6108_v40  ;;  %v6152_v19 = vld [vmem:[#allocation67_spill] sm:$0xff] }
 0x3f2   : > { %1950 = vmax.xlane.f32.xlu1 %v1949_v55  ;;  %1947 = vmax.xlane.f32.xlu0 %v1946_v11  ;;  %v6112_v55 = vmax.f32 %v6111_v51, 0.0  ;;  %v1830_v51 = vld [vmem:[#allocation2 + $0x18] sm:$0xff] }
 0x3f4   : > { %v2051_v11 = vmax.f32 %v6114_v37, %v6112_v55  ;;  %v1828_v55 = vld [vmem:[#allocation2 + $0x8] sm:$0xff] }
 0x3f5   : > { %v1832_v37 = vld [vmem:[#allocation2 + $0x28] sm:$0xff] }
 0x3f6   : > { %1956 = vmax.xlane.f32.xlu1 %v1955_v46  ;;  %1953 = vmax.xlane.f32.xlu0 %v1952_v26  ;;  %v6117_v46 = vld [vmem:[#allocation49_spill] sm:$0xff]  ;;  %v6119_v26 = vld [vmem:[#allocation56_spill] sm:$0xff] }
 0x3f7   : > { %v6118_v1 = vmax.f32 %v6117_v46, 0.0  ;;  %v6120_v20 = vmax.f32 %v6119_v26, 0.0  ;;  %v1833_v26 = vld [vmem:[#allocation2 + $0x30] sm:$0xff] }
 0x3f9   : > { %v2048_v4 = vmax.f32 %v6118_v1, %v6116_v28 }
 0x3fa   : > { %1962 = vmax.xlane.f32.xlu1 %v1961_v56  ;;  %1959 = vmax.xlane.f32.xlu0 %v1958_v42  ;;  %v6122_v56 = vmax.f32 %v6121_v5, 0.0  ;;  %v6124_v42 = vmax.f32 %v6123_v60, 0.0  ;;  %v1836_v60 = vld [vmem:[#allocation2 + $0x48] sm:$0xff] }
 0x3fc   : > { %v2057_v9 = vmax.f32 %v6122_v56, %v6120_v20 }
 0x3fe   : > { %1968 = vmax.xlane.f32.xlu1 %v1967_v27  ;;  %1965 = vmax.xlane.f32.xlu0 %v1964_v49  ;;  %v2054_v27 = vmax.f32 %v6126_v22, %v6124_v42  ;;  %v6129_v49 = vld [vmem:[#allocation59_spill] sm:$0xff] }
 0x3ff   : > { %v6130_v2 = vmax.f32 %v6129_v49, 0.0  ;;  %v1835_v42 = vld [vmem:[#allocation2 + $0x40] sm:$0xff]  ;;  %v1837_v49 = vld [vmem:[#allocation2 + $0x50] sm:$0xff] }
 0x401   : > { %v2063_v53 = vmax.f32 %v6130_v2, %v6128_v6  ;;  %v1838_v6 = vld [vmem:[#allocation2 + $0x58] sm:$0xff] }
 0x402   : > { %1974 = vmax.xlane.f32.xlu1 %v1973_v41  ;;  %1971 = vmax.xlane.f32.xlu0 %v1970_v61  ;;  %v6131_v41 = vld [vmem:[#allocation58_spill] sm:$0xff]  ;;  %v6134_v61 = vmax.f32 %v6133_v45, 0.0  ;;  %v1840_v45 = vld [vmem:[#allocation2 + $0x68] sm:$0xff] }
 0x403   : > { %v6132_v21 = vmax.f32 %v6131_v41, 0.0 }
 0x405   : > { %v2060_v52 = vmax.f32 %v6134_v61, %v6132_v21  ;;  %v1839_v61 = vld [vmem:[#allocation2 + $0x60] sm:$0xff] }
 0x406   : > { %1980 = vmax.xlane.f32.xlu1 %v1979_v50  ;;  %1977 = vmax.xlane.f32.xlu0 %v1976_v33  ;;  %v6136_v50 = vmax.f32 %v6135_v13, 0.0 }
 0x408   : > { %v2069_v33 = vmax.f32 %v6138_v3, %v6136_v50  ;;  %v1842_v3 = vld [vmem:[#allocation2 + $0x78] sm:$0xff] }
 0x40a   : > { %1986 = vmax.xlane.f32.xlu1 %v1985_v24  ;;  %1983 = vmax.xlane.f32.xlu0 %v1982_v63  ;;  %v6141_v24 = vld [vmem:[#allocation61_spill] sm:$0xff]  ;;  %v6143_v63 = vmax.f32 %v5052_v58, 0.0 }
 0x40b   : > { %v6142_v7 = vmax.f32 %v6141_v24, 0.0 }
 0x40c   : > { %v2075_v57 = vmax.f32 %v6144_v47, %v6143_v63  ;;  %v1924_v63 = vld [vmem:[#allocation2 + $0x80] sm:$0xff] }
 0x40d   : > { %v2066_v59 = vmax.f32 %v6142_v7, %v6140_v54 }
 0x40e   : > { %2040 = vmax.xlane.f32.xlu1 %v2039_v38  ;;  %2037 = vmax.xlane.f32.xlu0 %v2036_v44  ;;  %v6145_v38 = vld [vmem:[#allocation66_spill] sm:$0xff]  ;;  %v6149_v44 = vmax.f32 %v5064_v35, 0.0 }
 0x40f   : > { %v6146_v25 = vmax.f32 %v6145_v38, 0.0 }
 0x410   : > { %v2081_v15 = vmax.f32 %v6150_v32, %v6149_v44 }
 0x411   : > { %v2072_v12 = vmax.f32 %v6148_v34, %v6146_v25  ;;  %v1926_v34 = vld [vmem:[#allocation2 + $0x90] sm:$0xff] }
 0x412   : > { %2046 = vmax.xlane.f32.xlu1 %v2045_v10  ;;  %2043 = vmax.xlane.f32.xlu0 %v2042_v39  ;;  %v6153_v10 = vmax.f32 %v6152_v19, 0.0  ;;  %v1928_v19 = vld [vmem:[#allocation2 + $0xa0] sm:$0xff] }
 0x414   : > { %v2078_v58 = vmax.f32 %v6153_v10, %v6151_v0  ;;  %v1929_v0 = vld [vmem:[#allocation2 + $0xa8] sm:$0xff] }
 0x416   : > { %2052 = vmax.xlane.f32.xlu1 %v2051_v11  ;;  %2049 = vmax.xlane.f32.xlu0 %v2048_v4  ;;  %v1831_v11 = vld [vmem:[#allocation2 + $0x20] sm:$0xff]  ;;  %v1834_v4 = vld [vmem:[#allocation2 + $0x38] sm:$0xff] }
 0x41a   : > { %2058 = vmax.xlane.f32.xlu1 %v2057_v9  ;;  %2055 = vmax.xlane.f32.xlu0 %v2054_v27 }
 0x41e   : > { %2064 = vmax.xlane.f32.xlu1 %v2063_v53  ;;  %2061 = vmax.xlane.f32.xlu0 %v2060_v52 }
 0x422   : > { %2070 = vmax.xlane.f32.xlu1 %v2069_v33  ;;  %2067 = vmax.xlane.f32.xlu0 %v2066_v59  ;;  %v1841_v33 = vld [vmem:[#allocation2 + $0x70] sm:$0xff]  ;;  %v1925_v59 = vld [vmem:[#allocation2 + $0x88] sm:$0xff] }
 0x426   : > { %2076 = vmax.xlane.f32.xlu1 %v2075_v57  ;;  %2073 = vmax.xlane.f32.xlu0 %v2072_v12 }
 0x42a   : > { %2082 = vmax.xlane.f32.xlu1 %v2081_v15  ;;  %2079 = vmax.xlane.f32.xlu0 %v2078_v58 }
 0x457   : > { %v1851_v40 = vpop.xlane.xlu1 %1850  ;;  %v1845_v36 = vpop.xlane.xlu0 %1844 }
 0x458   : > { %v1893_v43 = vmax.f32 %v1829_v17, %v1851_v40  ;;  %v1891_v39 = vmax.f32 %v1827_v16, %v1845_v36  ;;  %v1931_v40 = vld [vmem:[#allocation2 + $0xb8] sm:$0xff]  ;;  %v1930_v36 = vld [vmem:[#allocation2 + $0xb0] sm:$0xff] }
 0x45a   : > { %1910 = vst.msk [vmem:[#allocation2 + $0x10] sm:$0xff] %vm1907_vm1, %v1893_v43  ;;  %1908 = vst.msk [vmem:[#allocation2] sm:$0xff] %vm1907_vm1, %v1891_v39 }
 0x45b   : > { %v1854_v31 = vpop.xlane.xlu1 %1853  ;;  %v1848_v8 = vpop.xlane.xlu0 %1847 }
 0x45c   : > { %v1894_v35 = vmax.f32 %v1830_v51, %v1854_v31  ;;  %v1892_v29 = vmax.f32 %v1828_v55, %v1848_v8  ;;  %v1933_v31 = vld [vmem:[#allocation2 + $0xc8] sm:$0xff]  ;;  %v1932_v8 = vld [vmem:[#allocation2 + $0xc0] sm:$0xff] }
 0x45e   : > { %1911 = vst.msk [vmem:[#allocation2 + $0x18] sm:$0xff] %vm1907_vm1, %v1894_v35  ;;  %1909 = vst.msk [vmem:[#allocation2 + $0x8] sm:$0xff] %vm1907_vm1, %v1892_v29 }
 0x45f   : > { %v1860_v14 = vpop.xlane.xlu1 %1859  ;;  %v1857_v28 = vpop.xlane.xlu0 %1856 }
 0x460   : > { %v1896_v46 = vmax.f32 %v1832_v37, %v1860_v14  ;;  %v1895_v1 = vmax.f32 %v1831_v11, %v1857_v28  ;;  %v1935_v14 = vld [vmem:[#allocation2 + $0xd8] sm:$0xff]  ;;  %v1934_v28 = vld [vmem:[#allocation2 + $0xd0] sm:$0xff] }
 0x462   : > { %1913 = vst.msk [vmem:[#allocation2 + $0x28] sm:$0xff] %vm1907_vm1, %v1896_v46  ;;  %1912 = vst.msk [vmem:[#allocation2 + $0x20] sm:$0xff] %vm1907_vm1, %v1895_v1 }
 0x463   : > { %v1866_v20 = vpop.xlane.xlu1 %1865  ;;  %v1863_v5 = vpop.xlane.xlu0 %1862 }
 0x464   : > { %v1898_v56 = vmax.f32 %v1834_v4, %v1866_v20  ;;  %v1897_v9 = vmax.f32 %v1833_v26, %v1863_v5  ;;  %v1937_v20 = vld [vmem:[#allocation2 + $0xe8] sm:$0xff]  ;;  %v1936_v5 = vld [vmem:[#allocation2 + $0xe0] sm:$0xff] }
 0x466   : > { %1915 = vst.msk [vmem:[#allocation2 + $0x38] sm:$0xff] %vm1907_vm1, %v1898_v56  ;;  %1914 = vst.msk [vmem:[#allocation2 + $0x30] sm:$0xff] %vm1907_vm1, %v1897_v9 }
 0x467   : > { %v1872_v23 = vpop.xlane.xlu1 %1871  ;;  %v1869_v22 = vpop.xlane.xlu0 %1868 }
 0x468   : > { %v1900_v27 = vmax.f32 %v1836_v60, %v1872_v23  ;;  %v1899_v18 = vmax.f32 %v1835_v42, %v1869_v22  ;;  %v1939_v23 = vld [vmem:[#allocation2 + $0xf8] sm:$0xff]  ;;  %v1938_v22 = vld [vmem:[#allocation2 + $0xf0] sm:$0xff] }
 0x46a   : > { %1917 = vst.msk [vmem:[#allocation2 + $0x48] sm:$0xff] %vm1907_vm1, %v1900_v27  ;;  %1916 = vst.msk [vmem:[#allocation2 + $0x40] sm:$0xff] %vm1907_vm1, %v1899_v18 }
 0x46b   : > { %v1878_v2 = vpop.xlane.xlu1 %1877  ;;  %v1875_v53 = vpop.xlane.xlu0 %1874 }
 0x46c   : > { %v1902_v41 = vmax.f32 %v1838_v6, %v1878_v2  ;;  %v1901_v21 = vmax.f32 %v1837_v49, %v1875_v53  ;;  %v2021_v2 = vld [vmem:[#allocation2 + $0x108] sm:$0xff]  ;;  %v2020_v53 = vld [vmem:[#allocation2 + $0x100] sm:$0xff] }
 0x46e   : > { %1919 = vst.msk [vmem:[#allocation2 + $0x58] sm:$0xff] %vm1907_vm1, %v1902_v41  ;;  %1918 = vst.msk [vmem:[#allocation2 + $0x50] sm:$0xff] %vm1907_vm1, %v1901_v21 }
 0x46f   : > { %v1884_v52 = vpop.xlane.xlu1 %1883  ;;  %v1881_v13 = vpop.xlane.xlu0 %1880 }
 0x470   : > { %v1904_v50 = vmax.f32 %v1840_v45, %v1884_v52  ;;  %v1903_v30 = vmax.f32 %v1839_v61, %v1881_v13  ;;  %v2023_v52 = vld [vmem:[#allocation2 + $0x118] sm:$0xff]  ;;  %v2022_v13 = vld [vmem:[#allocation2 + $0x110] sm:$0xff] }
 0x472   : > { %1921 = vst.msk [vmem:[#allocation2 + $0x68] sm:$0xff] %vm1907_vm1, %v1904_v50  ;;  %1920 = vst.msk [vmem:[#allocation2 + $0x60] sm:$0xff] %vm1907_vm1, %v1903_v30 }
 0x473   : > { %v1890_v48 = vpop.xlane.xlu1 %1889  ;;  %v1887_v54 = vpop.xlane.xlu0 %1886 }
 0x474   : > { %v1906_v24 = vmax.f32 %v1842_v3, %v1890_v48  ;;  %v1905_v7 = vmax.f32 %v1841_v33, %v1887_v54  ;;  %v2025_v48 = vld [vmem:[#allocation2 + $0x128] sm:$0xff]  ;;  %v2024_v54 = vld [vmem:[#allocation2 + $0x120] sm:$0xff] }
 0x476   : > { %1923 = vst.msk [vmem:[#allocation2 + $0x78] sm:$0xff] %vm1907_vm1, %v1906_v24  ;;  %1922 = vst.msk [vmem:[#allocation2 + $0x70] sm:$0xff] %vm1907_vm1, %v1905_v7 }
 0x477   : > { %v1945_v47 = vpop.xlane.xlu1 %1944  ;;  %v1942_v57 = vpop.xlane.xlu0 %1941 }
 0x478   : > { %v1989_v38 = vmax.f32 %v1925_v59, %v1945_v47  ;;  %v1988_v25 = vmax.f32 %v1924_v63, %v1942_v57  ;;  %v2027_v47 = vld [vmem:[#allocation2 + $0x138] sm:$0xff]  ;;  %v2026_v57 = vld [vmem:[#allocation2 + $0x130] sm:$0xff] }
 0x47a   : > { %2005 = vst.msk [vmem:[#allocation2 + $0x88] sm:$0xff] %vm1907_vm1, %v1989_v38  ;;  %2004 = vst.msk [vmem:[#allocation2 + $0x80] sm:$0xff] %vm1907_vm1, %v1988_v25 }
 0x47b   : > { %v1951_v12 = vpop.xlane.xlu1 %1950  ;;  %v1948_v44 = vpop.xlane.xlu0 %1947 }
 0x47c   : > { %v1991_v32 = vmax.f32 %v1927_v62, %v1951_v12  ;;  %v1990_v15 = vmax.f32 %v1926_v34, %v1948_v44  ;;  %v2029_v12 = vld [vmem:[#allocation2 + $0x148] sm:$0xff]  ;;  %v2028_v44 = vld [vmem:[#allocation2 + $0x140] sm:$0xff] }
 0x47e   : > { %2007 = vst.msk [vmem:[#allocation2 + $0x98] sm:$0xff] %vm1907_vm1, %v1991_v32  ;;  %2006 = vst.msk [vmem:[#allocation2 + $0x90] sm:$0xff] %vm1907_vm1, %v1990_v15 }
 0x47f   : > { %v1957_v10 = vpop.xlane.xlu1 %1956  ;;  %v1954_v58 = vpop.xlane.xlu0 %1953 }
 0x480   : > { %v1993_v17 = vmax.f32 %v1929_v0, %v1957_v10  ;;  %v1992_v16 = vmax.f32 %v1928_v19, %v1954_v58  ;;  %v2031_v10 = vld [vmem:[#allocation2 + $0x158] sm:$0xff]  ;;  %v2030_v58 = vld [vmem:[#allocation2 + $0x150] sm:$0xff] }
 0x482   : > { %2009 = vst.msk [vmem:[#allocation2 + $0xa8] sm:$0xff] %vm1907_vm1, %v1993_v17  ;;  %2008 = vst.msk [vmem:[#allocation2 + $0xa0] sm:$0xff] %vm1907_vm1, %v1992_v16 }
 0x483   : > { %v1963_v43 = vpop.xlane.xlu1 %1962  ;;  %v1960_v39 = vpop.xlane.xlu0 %1959 }
 0x484   : > { %v1995_v51 = vmax.f32 %v1931_v40, %v1963_v43  ;;  %v1994_v55 = vmax.f32 %v1930_v36, %v1960_v39  ;;  %v2033_v43 = vld [vmem:[#allocation2 + $0x168] sm:$0xff]  ;;  %v2032_v39 = vld [vmem:[#allocation2 + $0x160] sm:$0xff] }
 0x486   : > { %2011 = vst.msk [vmem:[#allocation2 + $0xb8] sm:$0xff] %vm1907_vm1, %v1995_v51  ;;  %2010 = vst.msk [vmem:[#allocation2 + $0xb0] sm:$0xff] %vm1907_vm1, %v1994_v55 }
 0x487   : > { %v1969_v35 = vpop.xlane.xlu1 %1968  ;;  %v1966_v29 = vpop.xlane.xlu0 %1965 }
 0x488   : > { %v1997_v37 = vmax.f32 %v1933_v31, %v1969_v35  ;;  %v1996_v11 = vmax.f32 %v1932_v8, %v1966_v29  ;;  %v2035_v35 = vld [vmem:[#allocation2 + $0x178] sm:$0xff]  ;;  %v2034_v29 = vld [vmem:[#allocation2 + $0x170] sm:$0xff] }
 0x48a   : > { %2013 = vst.msk [vmem:[#allocation2 + $0xc8] sm:$0xff] %vm1907_vm1, %v1997_v37  ;;  %2012 = vst.msk [vmem:[#allocation2 + $0xc0] sm:$0xff] %vm1907_vm1, %v1996_v11 }
 0x48b   : > { %v1975_v46 = vpop.xlane.xlu1 %1974  ;;  %v1972_v1 = vpop.xlane.xlu0 %1971 }
 0x48c   : > { %v1999_v4 = vmax.f32 %v1935_v14, %v1975_v46  ;;  %v1998_v26 = vmax.f32 %v1934_v28, %v1972_v1 }
 0x48e   : > { %2015 = vst.msk [vmem:[#allocation2 + $0xd8] sm:$0xff] %vm1907_vm1, %v1999_v4  ;;  %2014 = vst.msk [vmem:[#allocation2 + $0xd0] sm:$0xff] %vm1907_vm1, %v1998_v26 }
 0x48f   : > { %v1981_v56 = vpop.xlane.xlu1 %1980  ;;  %v1978_v9 = vpop.xlane.xlu0 %1977 }
 0x490   : > { %v2001_v60 = vmax.f32 %v1937_v20, %v1981_v56  ;;  %v2000_v42 = vmax.f32 %v1936_v5, %v1978_v9 }
 0x492   : > { %2017 = vst.msk [vmem:[#allocation2 + $0xe8] sm:$0xff] %vm1907_vm1, %v2001_v60  ;;  %2016 = vst.msk [vmem:[#allocation2 + $0xe0] sm:$0xff] %vm1907_vm1, %v2000_v42 }
 0x493   : > { %v1987_v27 = vpop.xlane.xlu1 %1986  ;;  %v1984_v18 = vpop.xlane.xlu0 %1983 }
 0x494   : > { %v2003_v6 = vmax.f32 %v1939_v23, %v1987_v27  ;;  %v2002_v49 = vmax.f32 %v1938_v22, %v1984_v18 }
 0x496   : > { %2019 = vst.msk [vmem:[#allocation2 + $0xf8] sm:$0xff] %vm1907_vm1, %v2003_v6  ;;  %2018 = vst.msk [vmem:[#allocation2 + $0xf0] sm:$0xff] %vm1907_vm1, %v2002_v49 }
 0x497   : > { %v2041_v41 = vpop.xlane.xlu1 %2040  ;;  %v2038_v21 = vpop.xlane.xlu0 %2037 }
 0x498   : > { %v2085_v45 = vmax.f32 %v2021_v2, %v2041_v41  ;;  %v2084_v61 = vmax.f32 %v2020_v53, %v2038_v21 }
 0x49a   : > { %2101 = vst.msk [vmem:[#allocation2 + $0x108] sm:$0xff] %vm1907_vm1, %v2085_v45  ;;  %2100 = vst.msk [vmem:[#allocation2 + $0x100] sm:$0xff] %vm1907_vm1, %v2084_v61 }
 0x49b   : > { %v2047_v50 = vpop.xlane.xlu1 %2046  ;;  %v2044_v30 = vpop.xlane.xlu0 %2043 }
 0x49c   : > { %v2087_v3 = vmax.f32 %v2023_v52, %v2047_v50  ;;  %v2086_v33 = vmax.f32 %v2022_v13, %v2044_v30 }
 0x49e   : > { %2103 = vst.msk [vmem:[#allocation2 + $0x118] sm:$0xff] %vm1907_vm1, %v2087_v3  ;;  %2102 = vst.msk [vmem:[#allocation2 + $0x110] sm:$0xff] %vm1907_vm1, %v2086_v33 }
 0x49f   : > { %v2053_v24 = vpop.xlane.xlu1 %2052  ;;  %v2050_v7 = vpop.xlane.xlu0 %2049 }
 0x4a0   : > { %v2089_v59 = vmax.f32 %v2025_v48, %v2053_v24  ;;  %v2088_v63 = vmax.f32 %v2024_v54, %v2050_v7 }
 0x4a2   : > { %2105 = vst.msk [vmem:[#allocation2 + $0x128] sm:$0xff] %vm1907_vm1, %v2089_v59  ;;  %2104 = vst.msk [vmem:[#allocation2 + $0x120] sm:$0xff] %vm1907_vm1, %v2088_v63 }
 0x4a3   : > { %v2059_v38 = vpop.xlane.xlu1 %2058  ;;  %v2056_v25 = vpop.xlane.xlu0 %2055 }
 0x4a4   : > { %v2091_v62 = vmax.f32 %v2027_v47, %v2059_v38  ;;  %v2090_v34 = vmax.f32 %v2026_v57, %v2056_v25 }
 0x4a6   : > { %2107 = vst.msk [vmem:[#allocation2 + $0x138] sm:$0xff] %vm1907_vm1, %v2091_v62  ;;  %2106 = vst.msk [vmem:[#allocation2 + $0x130] sm:$0xff] %vm1907_vm1, %v2090_v34 }
 0x4a7   : > { %v2065_v32 = vpop.xlane.xlu1 %2064  ;;  %v2062_v15 = vpop.xlane.xlu0 %2061 }
 0x4a8   : > { %v2093_v0 = vmax.f32 %v2029_v12, %v2065_v32  ;;  %v2092_v19 = vmax.f32 %v2028_v44, %v2062_v15 }
 0x4aa   : > { %2109 = vst.msk [vmem:[#allocation2 + $0x148] sm:$0xff] %vm1907_vm1, %v2093_v0  ;;  %2108 = vst.msk [vmem:[#allocation2 + $0x140] sm:$0xff] %vm1907_vm1, %v2092_v19 }
 0x4ab   : > { %v2071_v17 = vpop.xlane.xlu1 %2070  ;;  %v2068_v16 = vpop.xlane.xlu0 %2067 }
 0x4ac   : > { %v2095_v40 = vmax.f32 %v2031_v10, %v2071_v17  ;;  %v2094_v36 = vmax.f32 %v2030_v58, %v2068_v16 }
 0x4ae   : > { %2111 = vst.msk [vmem:[#allocation2 + $0x158] sm:$0xff] %vm1907_vm1, %v2095_v40  ;;  %2110 = vst.msk [vmem:[#allocation2 + $0x150] sm:$0xff] %vm1907_vm1, %v2094_v36 }
 0x4af   : > { %v2077_v51 = vpop.xlane.xlu1 %2076  ;;  %v2074_v55 = vpop.xlane.xlu0 %2073 }
 0x4b0   : > { %v2097_v31 = vmax.f32 %v2033_v43, %v2077_v51  ;;  %v2096_v8 = vmax.f32 %v2032_v39, %v2074_v55 }
 0x4b2   : > { %2113 = vst.msk [vmem:[#allocation2 + $0x168] sm:$0xff] %vm1907_vm1, %v2097_v31  ;;  %2112 = vst.msk [vmem:[#allocation2 + $0x160] sm:$0xff] %vm1907_vm1, %v2096_v8  ;;  %2119 = sbr.rel (%p3290_p1) target bundleno = 2266 (0x8da), region = 100 }
 0x4b3   : > { %v2083_v37 = vpop.xlane.xlu1 %2082  ;;  %v2080_v11 = vpop.xlane.xlu0 %2079 }
 0x4b4   : > { %v2099_v14 = vmax.f32 %v2035_v35, %v2083_v37  ;;  %v2098_v28 = vmax.f32 %v2034_v29, %v2080_v11 }
 0x4b6   : > { %2115 = vst.msk [vmem:[#allocation2 + $0x178] sm:$0xff] %vm1907_vm1, %v2099_v14  ;;  %2114 = vst.msk [vmem:[#allocation2 + $0x170] sm:$0xff] %vm1907_vm1, %v2098_v28 }
 0x4b7   : > { %v2138_v46 = vld [vmem:[#allocation2 + $0x90] sm:$0xff]  ;;  %v2152_v1 = vld [vmem:[#allocation2 + $0x100] sm:$0xff]  ;;  %v3833_v26 = vmov 0   ;;  %v2153_v9 = vld [vmem:[#allocation2 + $0x108] sm:$0xff]  ;;  %vm3157_vm2 = vcmask 385024  }
 0x4b8   : > { %v2120_v4 = vld [vmem:[#allocation2] sm:$0xff]  ;;  %3493 = vset.pattern.permute.xlu1 %v3833_v26  ;;  %3482 = vset.pattern.permute.xlu0 %v3833_v26  ;;  %v3494_v20 = vpack.i.bf16 %v2138_v46, %v2152_v1  ;;  %v2122_v56 = vld [vmem:[#allocation2 + $0x10] sm:$0xff]  ;;  %v2121_v42 = vld [vmem:[#allocation2 + $0x8] sm:$0xff] }
 0x4b9   : > { %v2136_v5 = vld [vmem:[#allocation2 + $0x80] sm:$0xff]  ;;  %v2137_v23 = vld [vmem:[#allocation2 + $0x88] sm:$0xff]  ;;  %v3499_v22 = vpack.i.bf16 %v2153_v9, %v2122_v56  ;;  %v2154_v6 = vld [vmem:[#allocation2 + $0x110] sm:$0xff] }
 0x4ba   : > { %v3483_v60 = vpack.i.bf16 %v2120_v4, %v2136_v5  ;;  %3495 = vperm.xlu1 %3493, %v3494_v20   ;;  %v3488_v27 = vpack.i.bf16 %v2121_v42, %v2137_v23  ;;  %v2140_v18 = vld [vmem:[#allocation2 + $0xa0] sm:$0xff]  ;;  %v2123_v49 = vld [vmem:[#allocation2 + $0x18] sm:$0xff]  ;;  %v2125_v21 = vld [vmem:[#allocation2 + $0x28] sm:$0xff] }
 0x4bb   : > { %v2139_v2 = vld [vmem:[#allocation2 + $0x98] sm:$0xff]  ;;  %v3509_v53 = vpack.i.bf16 %v2140_v18, %v2154_v6  ;;  %v2141_v45 = vld [vmem:[#allocation2 + $0xa8] sm:$0xff]  ;;  %v2124_v61 = vld [vmem:[#allocation2 + $0x20] sm:$0xff] }
 0x4bc   : > { %3484 = vperm.xlu0 %3482, %v3483_v60   ;;  %v3504_v41 = vpack.i.bf16 %v2123_v49, %v2139_v2  ;;  %v2155_v52 = vld [vmem:[#allocation2 + $0x118] sm:$0xff]  ;;  %v3519_v13 = vpack.i.bf16 %v2125_v21, %v2141_v45  ;;  %v2126_v30 = vld [vmem:[#allocation2 + $0x30] sm:$0xff]  ;;  %v2157_v3 = vld [vmem:[#allocation2 + $0x128] sm:$0xff] }
 0x4bd   : > { %v3514_v50 = vpack.i.bf16 %v2155_v52, %v2124_v61  ;;  %v2142_v33 = vld [vmem:[#allocation2 + $0xb0] sm:$0xff]  ;;  %v2156_v48 = vld [vmem:[#allocation2 + $0x120] sm:$0xff]  ;;  %v3529_v54 = vpack.i.bf16 %v2157_v3, %v2126_v30  ;;  %v2127_v63 = vld [vmem:[#allocation2 + $0x38] sm:$0xff] }
 0x4be   : > { %3500 = vperm.xlu1 %3493, %v3499_v22   ;;  %v3524_v24 = vpack.i.bf16 %v2142_v33, %v2156_v48  ;;  %v2144_v7 = vld [vmem:[#allocation2 + $0xc0] sm:$0xff]  ;;  %v2158_v59 = vld [vmem:[#allocation2 + $0x130] sm:$0xff]  ;;  %v2143_v47 = vld [vmem:[#allocation2 + $0xb8] sm:$0xff] }
 0x4bf   : > { %v3539_v57 = vpack.i.bf16 %v2144_v7, %v2158_v59  ;;  %v3534_v38 = vpack.i.bf16 %v2127_v63, %v2143_v47  ;;  %v2129_v25 = vld [vmem:[#allocation2 + $0x48] sm:$0xff]  ;;  %v2128_v34 = vld [vmem:[#allocation2 + $0x40] sm:$0xff]  ;;  %v2159_v12 = vld [vmem:[#allocation2 + $0x138] sm:$0xff] }
 0x4c0   : > { %3489 = vperm.xlu0 %3482, %v3488_v27   ;;  %v2145_v62 = vld [vmem:[#allocation2 + $0xc8] sm:$0xff]  ;;  %v3544_v32 = vpack.i.bf16 %v2159_v12, %v2128_v34  ;;  %v2130_v15 = vld [vmem:[#allocation2 + $0x50] sm:$0xff]  ;;  %v2160_v10 = vld [vmem:[#allocation2 + $0x140] sm:$0xff] }
 0x4c1   : > { %v3549_v44 = vpack.i.bf16 %v2129_v25, %v2145_v62  ;;  %v2161_v0 = vld [vmem:[#allocation2 + $0x148] sm:$0xff]  ;;  %v2146_v19 = vld [vmem:[#allocation2 + $0xd0] sm:$0xff]  ;;  %v2148_v16 = vld [vmem:[#allocation2 + $0xe0] sm:$0xff] }
 0x4c2   : > { %3510 = vperm.xlu1 %3493, %v3509_v53   ;;  %v3559_v58 = vpack.i.bf16 %v2161_v0, %v2130_v15  ;;  %v3554_v17 = vpack.i.bf16 %v2146_v19, %v2160_v10  ;;  %v2162_v40 = vld [vmem:[#allocation2 + $0x150] sm:$0xff]  ;;  %v2131_v36 = vld [vmem:[#allocation2 + $0x58] sm:$0xff]  ;;  %v2133_v55 = vld [vmem:[#allocation2 + $0x68] sm:$0xff] }
 0x4c3   : > { %v2147_v43 = vld [vmem:[#allocation2 + $0xd8] sm:$0xff]  ;;  %v3569_v39 = vpack.i.bf16 %v2148_v16, %v2162_v40  ;;  %v2149_v31 = vld [vmem:[#allocation2 + $0xe8] sm:$0xff]  ;;  %v2132_v8 = vld [vmem:[#allocation2 + $0x60] sm:$0xff] }
 0x4c4   : > { %3505 = vperm.xlu0 %3482, %v3504_v41   ;;  %v3564_v51 = vpack.i.bf16 %v2131_v36, %v2147_v43  ;;  %v2163_v35 = vld [vmem:[#allocation2 + $0x158] sm:$0xff]  ;;  %v3579_v29 = vpack.i.bf16 %v2133_v55, %v2149_v31  ;;  %v2134_v11 = vld [vmem:[#allocation2 + $0x70] sm:$0xff]  ;;  %v2165_v14 = vld [vmem:[#allocation2 + $0x168] sm:$0xff] }
 0x4c5   : > { %v3574_v37 = vpack.i.bf16 %v2163_v35, %v2132_v8  ;;  %v2150_v28 = vld [vmem:[#allocation2 + $0xf0] sm:$0xff]  ;;  %v2164_v46 = vld [vmem:[#allocation2 + $0x160] sm:$0xff]  ;;  %v3589_v1 = vpack.i.bf16 %v2165_v14, %v2134_v11  ;;  %v2167_v20 = vld [vmem:[#allocation2 + $0x178] sm:$0xff] }
 0x4c6   : > { %3520 = vperm.xlu1 %3493, %v3519_v13   ;;  %v3584_v4 = vpack.i.bf16 %v2150_v28, %v2164_v46  ;;  %v2166_v26 = vld [vmem:[#allocation2 + $0x170] sm:$0xff]  ;;  %v2135_v5 = vld [vmem:[#allocation2 + $0x78] sm:$0xff]  ;;  %v2533_v22 = vld [vmem:[%s5818_s7 + $0xe8] sm:$0xff] }
 0x4c7   : > { %v2151_v56 = vld [vmem:[#allocation2 + $0xf8] sm:$0xff]  ;;  %v3599_v9 = vpack.i.bf16 %v2167_v20, %v2166_v26  ;;  %v2534_v23 = vld [vmem:[%s5818_s7 + $0xf0] sm:$0xff]  ;;  %v2532_v27 = vld [vmem:[%s5818_s7 + $0xe0] sm:$0xff] }
 0x4c8   : > { %3515 = vperm.xlu0 %3482, %v3514_v50   ;;  %v3594_v60 = vpack.i.bf16 %v2135_v5, %v2151_v56  ;;  %v2535_v42 = vld [vmem:[%s5818_s7 + $0xf8] sm:$0xff]  ;;  %v2530_v6 = vld [vmem:[%s5818_s7 + $0xd0] sm:$0xff]  ;;  %v2529_v49 = vld [vmem:[%s5818_s7 + $0xc8] sm:$0xff] }
 0x4c9   : > { %2612 = vmatprep.subr.mxu0 %v2535_v42  ;;  %v2531_v18 = vld [vmem:[%s5818_s7 + $0xd8] sm:$0xff]  ;;  %v2528_v2 = vld [vmem:[%s5818_s7 + $0xc0] sm:$0xff]  ;;  %v2526_v41 = vld [vmem:[%s5818_s7 + $0xb0] sm:$0xff] }
 0x4ca   : > { %3530 = vperm.xlu1 %3493, %v3529_v54   ;;  %2613 = vmatpush1.msra.mxu0 %v2534_v23  ;;  %v2527_v53 = vld [vmem:[%s5818_s7 + $0xb8] sm:$0xff]  ;;  %v2525_v21 = vld [vmem:[%s5818_s7 + $0xa8] sm:$0xff]  ;;  %v2524_v45 = vld [vmem:[%s5818_s7 + $0xa0] sm:$0xff] }
 0x4cb   : > { %2614 = vmatprep.subr.mxu0 %v2533_v22  ;;  %v2523_v61 = vld [vmem:[%s5818_s7 + $0x98] sm:$0xff]  ;;  %v2522_v52 = vld [vmem:[%s5818_s7 + $0x90] sm:$0xff]  ;;  %v2521_v30 = vld [vmem:[%s5818_s7 + $0x88] sm:$0xff] }
 0x4cc   : > { %3525 = vperm.xlu0 %3482, %v3524_v24   ;;  %2615 = vmatpush1.msra.mxu0 %v2532_v27  ;;  %v2599_v13 = vld [vmem:[%s5818_s7 + $0x2f8] sm:$0xff]  ;;  %v2598_v50 = vld [vmem:[%s5818_s7 + $0x2f0] sm:$0xff]  ;;  %v2597_v3 = vld [vmem:[%s5818_s7 + $0x2e8] sm:$0xff] }
 0x4cd   : > { %2616 = vmatprep.subr.mxu0 %v2531_v18  ;;  %2683 = vmatprep.subr.mxu1 %v2599_v13  ;;  %v2520_v33 = vld [vmem:[%s5818_s7 + $0x80] sm:$0xff]  ;;  %v2595_v54 = vld [vmem:[%s5818_s7 + $0x2d8] sm:$0xff]  ;;  %v2594_v7 = vld [vmem:[%s5818_s7 + $0x2d0] sm:$0xff] }
 0x4ce   : > { %3540 = vperm.xlu1 %3493, %v3539_v57   ;;  %2617 = vmatpush1.msra.mxu0 %v2530_v6  ;;  %v2596_v48 = vld [vmem:[%s5818_s7 + $0x2e0] sm:$0xff]  ;;  %v2519_v24 = vld [vmem:[%s5818_s7 + $0x78] sm:$0xff]  ;;  %v2518_v59 = vld [vmem:[%s5818_s7 + $0x70] sm:$0xff] }
 0x4cf   : > { %2618 = vmatprep.subr.mxu0 %v2529_v49  ;;  %2684 = vmatpush1.msra.mxu1 %v2598_v50  ;;  %v2593_v63 = vld [vmem:[%s5818_s7 + $0x2c8] sm:$0xff]  ;;  %v2592_v57 = vld [vmem:[%s5818_s7 + $0x2c0] sm:$0xff]  ;;  %v2591_v25 = vld [vmem:[%s5818_s7 + $0x2b8] sm:$0xff] }
 0x4d0   : > { %3535 = vperm.xlu0 %3482, %v3534_v38   ;;  %2619 = vmatpush1.msra.mxu0 %v2528_v2  ;;  %v2517_v47 = vld [vmem:[%s5818_s7 + $0x68] sm:$0xff]  ;;  %v2516_v38 = vld [vmem:[%s5818_s7 + $0x60] sm:$0xff]  ;;  %v2515_v62 = vld [vmem:[%s5818_s7 + $0x58] sm:$0xff] }
 0x4d1   : > { %2620 = vmatprep.subr.mxu0 %v2527_v53  ;;  %2685 = vmatprep.subr.mxu1 %v2597_v3  ;;  %v2590_v34 = vld [vmem:[%s5818_s7 + $0x2b0] sm:$0xff]  ;;  %v2588_v15 = vld [vmem:[%s5818_s7 + $0x2a0] sm:$0xff]  ;;  %v2587_v19 = vld [vmem:[%s5818_s7 + $0x298] sm:$0xff] }
 0x4d2   : > { %3550 = vperm.xlu1 %3493, %v3549_v44   ;;  %2621 = vmatpush1.msra.mxu0 %v2526_v41  ;;  %v2514_v12 = vld [vmem:[%s5818_s7 + $0x50] sm:$0xff]  ;;  %v2589_v44 = vld [vmem:[%s5818_s7 + $0x2a8] sm:$0xff]  ;;  %v2512_v0 = vld [vmem:[%s5818_s7 + $0x40] sm:$0xff] }
 0x4d3   : > { %2622 = vmatprep.subr.mxu0 %v2525_v21  ;;  %2686 = vmatpush1.msra.mxu1 %v2596_v48  ;;  %v2511_v10 = vld [vmem:[%s5818_s7 + $0x38] sm:$0xff]  ;;  %v2585_v16 = vld [vmem:[%s5818_s7 + $0x288] sm:$0xff]  ;;  %v2584_v36 = vld [vmem:[%s5818_s7 + $0x280] sm:$0xff] }
 0x4d4   : > { %3545 = vperm.xlu0 %3482, %v3544_v32   ;;  %2623 = vmatpush1.msra.mxu0 %v2524_v45  ;;  %v2513_v32 = vld [vmem:[%s5818_s7 + $0x48] sm:$0xff]  ;;  %v2508_v43 = vld [vmem:[%s5818_s7 + $0x20] sm:$0xff]  ;;  %v2582_v55 = vld [vmem:[%s5818_s7 + $0x270] sm:$0xff] }
 0x4d5   : > { %2624 = vmatprep.subr.mxu0 %v2523_v61  ;;  %2687 = vmatprep.subr.mxu1 %v2595_v54  ;;  %v2509_v40 = vld [vmem:[%s5818_s7 + $0x28] sm:$0xff]  ;;  %v2506_v31 = vld [vmem:[%s5818_s7 + $0x10] sm:$0xff]  ;;  %v2579_v11 = vld [vmem:[%s5818_s7 + $0x258] sm:$0xff] }
 0x4d6   : > { %3560 = vperm.xlu1 %3493, %v3559_v58   ;;  %2625 = vmatpush1.msra.mxu0 %v2522_v52  ;;  %v2586_v58 = vld [vmem:[%s5818_s7 + $0x290] sm:$0xff]  ;;  %v2581_v8 = vld [vmem:[%s5818_s7 + $0x268] sm:$0xff]  ;;  %v2567_v14 = vld [vmem:[%s5818_s7 + $0x1f8] sm:$0xff] }
 0x4d7   : > { %2626 = vmatprep.subr.mxu0 %v2521_v30  ;;  %2688 = vmatpush1.msra.mxu1 %v2594_v7  ;;  %v2505_v35 = vld [vmem:[%s5818_s7 + $0x8] sm:$0xff]  ;;  %v2578_v28 = vld [vmem:[%s5818_s7 + $0x250] sm:$0xff]  ;;  %v2576_v26 = vld [vmem:[%s5818_s7 + $0x240] sm:$0xff] }
 0x4d8   : > { %3555 = vperm.xlu0 %3482, %v3554_v17   ;;  %2627 = vmatpush1.msra.mxu0 %v2520_v33  ;;  %v2510_v17 = vld [vmem:[%s5818_s7 + $0x30] sm:$0xff]  ;;  %v2564_v20 = vld [vmem:[%s5818_s7 + $0x1e0] sm:$0xff]  ;;  %v2575_v5 = vld [vmem:[%s5818_s7 + $0x238] sm:$0xff] }
 0x4d9   : > { %2628 = vmatprep.subr.mxu0 %v2519_v24  ;;  %2689 = vmatprep.subr.mxu1 %v2593_v63  ;;  %v2566_v46 = vld [vmem:[%s5818_s7 + $0x1f0] sm:$0xff]  ;;  %v2563_v56 = vld [vmem:[%s5818_s7 + $0x1d8] sm:$0xff]  ;;  %v2573_v42 = vld [vmem:[%s5818_s7 + $0x228] sm:$0xff] }
 0x4da   : > { %3570 = vperm.xlu1 %3493, %v3569_v39   ;;  %2629 = vmatpush1.msra.mxu0 %v2518_v59  ;;  %v2583_v39 = vld [vmem:[%s5818_s7 + $0x278] sm:$0xff]  ;;  %v2561_v23 = vld [vmem:[%s5818_s7 + $0x1c8] sm:$0xff]  ;;  %v2572_v22 = vld [vmem:[%s5818_s7 + $0x220] sm:$0xff] }
 0x4db   : > { %2630 = vmatprep.subr.mxu0 %v2517_v47  ;;  %2690 = vmatpush1.msra.mxu1 %v2592_v57  ;;  %v2560_v27 = vld [vmem:[%s5818_s7 + $0x1c0] sm:$0xff]  ;;  %v2571_v18 = vld [vmem:[%s5818_s7 + $0x218] sm:$0xff]  ;;  %v2558_v49 = vld [vmem:[%s5818_s7 + $0x1b0] sm:$0xff] }
 0x4dc   : > { %3565 = vperm.xlu0 %3482, %v3564_v51   ;;  %2631 = vmatpush1.msra.mxu0 %v2516_v38  ;;  %v2507_v51 = vld [vmem:[%s5818_s7 + $0x18] sm:$0xff]  ;;  %v2557_v2 = vld [vmem:[%s5818_s7 + $0x1a8] sm:$0xff]  ;;  %v2556_v53 = vld [vmem:[%s5818_s7 + $0x1a0] sm:$0xff] }
 0x4dd   : > { %2691 = vmatprep.subr.mxu1 %v2591_v25  ;;  %2632 = vmatprep.subr.mxu0 %v2515_v62  ;;  %v2559_v6 = vld [vmem:[%s5818_s7 + $0x1b8] sm:$0xff]  ;;  %v2554_v21 = vld [vmem:[%s5818_s7 + $0x190] sm:$0xff]  ;;  %v2553_v45 = vld [vmem:[%s5818_s7 + $0x188] sm:$0xff] }
 0x4de   : > { %3580 = vperm.xlu1 %3493, %v3579_v29   ;;  %2692 = vmatpush1.msra.mxu1 %v2590_v34  ;;  %v2580_v29 = vld [vmem:[%s5818_s7 + $0x260] sm:$0xff]  ;;  %v2555_v41 = vld [vmem:[%s5818_s7 + $0x198] sm:$0xff]  ;;  %v2550_v13 = vld [vmem:[%s5818_s7 + $0x170] sm:$0xff] }
 0x4df   : > { %2633 = vmatpush1.msra.mxu0 %v2514_v12  ;;  %2693 = vmatprep.subr.mxu1 %v2589_v44  ;;  %v2552_v61 = vld [vmem:[%s5818_s7 + $0x180] sm:$0xff]  ;;  %v2551_v52 = vld [vmem:[%s5818_s7 + $0x178] sm:$0xff]  ;;  %v2549_v50 = vld [vmem:[%s5818_s7 + $0x168] sm:$0xff] }
 0x4e0   : > { %3575 = vperm.xlu0 %3482, %v3574_v37   ;;  %2634 = vmatprep.subr.mxu0 %v2513_v32  ;;  %v2504_v37 = vld [vmem:[%s5818_s7] sm:$0xff]  ;;  %v2547_v3 = vld [vmem:[%s5818_s7 + $0x158] sm:$0xff]  ;;  %v2546_v33 = vld [vmem:[%s5818_s7 + $0x150] sm:$0xff] }
 0x4e1   : > { %2694 = vmatpush1.msra.mxu1 %v2588_v15  ;;  %2635 = vmatpush1.msra.mxu0 %v2512_v0  ;;  %v2548_v30 = vld [vmem:[%s5818_s7 + $0x160] sm:$0xff]  ;;  %v2545_v48 = vld [vmem:[%s5818_s7 + $0x148] sm:$0xff]  ;;  %v2543_v24 = vld [vmem:[%s5818_s7 + $0x138] sm:$0xff] }
 0x4e2   : > { %3590 = vperm.xlu1 %3493, %v3589_v1   ;;  %2695 = vmatprep.subr.mxu1 %v2587_v19  ;;  %v2577_v1 = vld [vmem:[%s5818_s7 + $0x248] sm:$0xff]  ;;  %v2544_v54 = vld [vmem:[%s5818_s7 + $0x140] sm:$0xff]  ;;  %v2542_v7 = vld [vmem:[%s5818_s7 + $0x130] sm:$0xff] }
 0x4e3   : > { %2636 = vmatprep.subr.mxu0 %v2511_v10  ;;  %2696 = vmatpush1.msra.mxu1 %v2586_v58  ;;  %v2541_v59 = vld [vmem:[%s5818_s7 + $0x128] sm:$0xff]  ;;  %v2540_v63 = vld [vmem:[%s5818_s7 + $0x120] sm:$0xff]  ;;  %v2539_v47 = vld [vmem:[%s5818_s7 + $0x118] sm:$0xff] }
 0x4e4   : > { %3585 = vperm.xlu0 %3482, %v3584_v4   ;;  %2637 = vmatpush1.msra.mxu0 %v2510_v17  ;;  %v2565_v4 = vld [vmem:[%s5818_s7 + $0x1e8] sm:$0xff]  ;;  %v2538_v62 = vld [vmem:[%s5818_s7 + $0x110] sm:$0xff]  ;;  %v2536_v32 = vld [vmem:[%s5818_s7 + $0x100] sm:$0xff]  ;;  %v3834_v17 = vmov 0.0  }
 0x4e5   : > { %2697 = vmatprep.subr.mxu1 %v2585_v16  ;;  %2638 = vmatprep.subr.mxu0 %v2509_v40  ;;  %v2570_v34 = vld [vmem:[%s5818_s7 + $0x210] sm:$0xff]  ;;  %v2537_v12 = vld [vmem:[%s5818_s7 + $0x108] sm:$0xff]  ;;  %v2568_v0 = vld [vmem:[%s5818_s7 + $0x200] sm:$0xff] }
 0x4e6   : > { %3600 = vperm.xlu1 %3493, %v3599_v9   ;;  %2698 = vmatpush1.msra.mxu1 %v2584_v36  ;;  %v2574_v9 = vld [vmem:[%s5818_s7 + $0x230] sm:$0xff]  ;;  %v2569_v44 = vld [vmem:[%s5818_s7 + $0x208] sm:$0xff]  ;;  %v2787_v58 = vld [vmem:[#allocation6 + $0xf8] sm:$0xff] }
 0x4e7   : > { %2639 = vmatpush1.msra.mxu0 %v2508_v43  ;;  %2699 = vmatprep.subr.mxu1 %v2583_v39 }
 0x4e8   : > { %3595 = vperm.xlu0 %3482, %v3594_v60   ;;  %2640 = vmatprep.subr.mxu0 %v2507_v51  ;;  %v2562_v60 = vld [vmem:[%s5818_s7 + $0x1d0] sm:$0xff] }
 0x4e9   : > { %2700 = vmatpush1.msra.mxu1 %v2582_v55  ;;  %2641 = vmatpush1.msra.mxu0 %v2506_v31 }
 0x4ea   : > { %2701 = vmatprep.subr.mxu1 %v2581_v8  ;;  %2642 = vmatprep.subr.mxu0 %v2505_v35 }
 0x4eb   : > { %2702 = vmatpush1.msra.mxu1 %v2580_v29  ;;  %2643 = vmatpush1.msra.mxu0 %v2504_v37 }
 0x4ec   : > { %2703 = vmatprep.subr.mxu1 %v2579_v11  ;;  %2644 = vmatprep.subr.mxu0 %v2567_v14 }
 0x4ed   : > { %2704 = vmatpush1.msra.mxu1 %v2578_v28  ;;  %2645 = vmatpush2.msra.mxu0 %v2566_v46 }
 0x4ee   : > { %2705 = vmatprep.subr.mxu1 %v2577_v1  ;;  %2646 = vmatprep.subr.mxu0 %v2565_v4 }
 0x4ef   : > { %2706 = vmatpush1.msra.mxu1 %v2576_v26  ;;  %2647 = vmatpush2.msra.mxu0 %v2564_v20 }
 0x4f0   : > { %2707 = vmatprep.subr.mxu1 %v2575_v5  ;;  %2648 = vmatprep.subr.mxu0 %v2563_v56 }
 0x4f1   : > { %2708 = vmatpush1.msra.mxu1 %v2574_v9  ;;  %2649 = vmatpush2.msra.mxu0 %v2562_v60 }
 0x4f2   : > { %2709 = vmatprep.subr.mxu1 %v2573_v42  ;;  %2650 = vmatprep.subr.mxu0 %v2561_v23 }
 0x4f3   : > { %2710 = vmatpush1.msra.mxu1 %v2572_v22  ;;  %2651 = vmatpush2.msra.mxu0 %v2560_v27 }
 0x4f4   : > { %2711 = vmatprep.subr.mxu1 %v2571_v18  ;;  %2652 = vmatprep.subr.mxu0 %v2559_v6 }
 0x4f5   : > { %2653 = vmatpush2.msra.mxu0 %v2558_v49  ;;  %2712 = vmatpush1.msra.mxu1 %v2570_v34 }
 0x4f6   : > { %2654 = vmatprep.subr.mxu0 %v2557_v2  ;;  %2713 = vmatprep.subr.mxu1 %v2569_v44 }
 0x4f7   : > { %2655 = vmatpush2.msra.mxu0 %v2556_v53  ;;  %2714 = vmatpush1.msra.mxu1 %v2568_v0 }
 0x4f8   : > { %2656 = vmatprep.subr.mxu0 %v2555_v41  ;;  %2747 = vmatprep.mubr.f32.mxu1 %v3834_v17  ;;  %v2782_v17 = vld [vmem:[#allocation6 + $0xd0] sm:$0xff] }
 0x4f9   : > { %2657 = vmatpush2.msra.mxu0 %v2554_v21  ;;  %2832 = vmatprep.subr.mxu1 %v2787_v58 }
 0x4fa   : > { %2658 = vmatprep.subr.mxu0 %v2553_v45 }
 0x4fb   : > { %2659 = vmatpush2.msra.mxu0 %v2552_v61 }
 0x4fc   : > { %2660 = vmatprep.subr.mxu0 %v2551_v52 }
 0x4fd   : > { %2661 = vmatpush2.msra.mxu0 %v2550_v13 }
 0x4fe   : > { %2662 = vmatprep.subr.mxu0 %v2549_v50 }
 0x4ff   : > { %2663 = vmatpush2.msra.mxu0 %v2548_v30 }
 0x500   : > { %2664 = vmatprep.subr.mxu0 %v2547_v3 }
 0x501   : > { %2665 = vmatpush2.msra.mxu0 %v2546_v33 }
 0x502   : > { %2666 = vmatprep.subr.mxu0 %v2545_v48 }
 0x503   : > { %2667 = vmatpush2.msra.mxu0 %v2544_v54 }
 0x504   : > { %2668 = vmatprep.subr.mxu0 %v2543_v24 }
 0x505   : > { %2669 = vmatpush2.msra.mxu0 %v2542_v7 }
 0x506   : > { %2670 = vmatprep.subr.mxu0 %v2541_v59 }
 0x507   : > { %2671 = vmatpush2.msra.mxu0 %v2540_v63 }
 0x508   : > { %2672 = vmatprep.subr.mxu0 %v2539_v47 }
 0x509   : > { %2673 = vmatpush2.msra.mxu0 %v2538_v62 }
 0x50a   : > { %2674 = vmatprep.subr.mxu0 %v2537_v12  ;;  %v2786_v12 = vld [vmem:[#allocation6 + $0xf0] sm:$0xff] }
 0x50b   : > { %2675 = vmatpush2.msra.mxu0 %v2536_v32  ;;  %v2785_v32 = vld [vmem:[#allocation6 + $0xe8] sm:$0xff] }
 0x535   : > { %v3496_v57 = vpop.permute.xlu1 %3495 }
 0x536   : > { %v3497_v38 = vunpack.i.l.bf16 %v3496_v57  ;;  %v3498_v16 = vunpack.i.h.bf16 %v3496_v57 }
 0x537   : > { %v3485_v25 = vpop.permute.xlu0 %3484 }
 0x538   : > { %2472 = vxpose.xlu1.b32.start [1/16] (narrow) %v3497_v38, 8  ;;  %3605 = vxpose.xlu0.b32.start [1/16] (narrow) %v3485_v25, 8 }
 0x539   : > { %v3501_v15 = vpop.permute.xlu1 %3500 }
 0x53a   : > { %v3503_v19 = vunpack.i.h.bf16 %v3501_v15  ;;  %v3502_v40 = vunpack.i.l.bf16 %v3501_v15  ;;  %v2784_v15 = vld [vmem:[#allocation6 + $0xe0] sm:$0xff] }
 0x53b   : > { %v3490_v10 = vpop.permute.xlu0 %3489 }
 0x53c   : > { %2473 = vxpose.xlu1.b32.cont [2/16] (narrow) %v3503_v19, 8  ;;  %3607 = vxpose.xlu0.b32.cont [2/16] (narrow) %v3490_v10, 8  ;;  %v3608_v51 = vpack.i.bf16 %v3502_v40, %v3498_v16  ;;  %v2783_v19 = vld [vmem:[#allocation6 + $0xd8] sm:$0xff]  ;;  %v2781_v16 = vld [vmem:[#allocation6 + $0xc8] sm:$0xff]  ;;  %v2780_v40 = vld [vmem:[#allocation6 + $0xc0] sm:$0xff] }
 0x53d   : > { %v3511_v36 = vpop.permute.xlu1 %3510 }
 0x53e   : > { %v3512_v43 = vunpack.i.l.bf16 %v3511_v36  ;;  %v3513_v11 = vunpack.i.h.bf16 %v3511_v36  ;;  %v2779_v36 = vld [vmem:[#allocation6 + $0xb8] sm:$0xff] }
 0x53f   : > { %v3506_v39 = vpop.permute.xlu0 %3505 }
 0x540   : > { %2474 = vxpose.xlu1.b32.cont [3/16] (narrow) %v3512_v43, 8  ;;  %3609 = vxpose.xlu0.b32.cont [3/16] (narrow) %v3608_v51, 8  ;;  %v2778_v43 = vld [vmem:[#allocation6 + $0xb0] sm:$0xff]  ;;  %v2776_v51 = vld [vmem:[#allocation6 + $0xa0] sm:$0xff] }
 0x541   : > { %v3521_v55 = vpop.permute.xlu1 %3520 }
 0x543   : > { %v3516_v31 = vpop.permute.xlu0 %3515 }
 0x544   : > { %v3518_v8 = vunpack.i.h.bf16 %v3516_v31  ;;  %v3517_v35 = vunpack.i.l.bf16 %v3516_v31  ;;  %3611 = vxpose.xlu0.b32.cont [4/16] (narrow) %v3506_v39, 8  ;;  %v2777_v39 = vld [vmem:[#allocation6 + $0xa8] sm:$0xff]  ;;  %v2774_v31 = vld [vmem:[#allocation6 + $0x90] sm:$0xff] }
 0x545   : > { %v3531_v29 = vpop.permute.xlu1 %3530 }
 0x546   : > { %2475 = vxpose.xlu1.b32.cont [4/16] (narrow) %v3518_v8, 8  ;;  %v3612_v28 = vpack.i.bf16 %v3517_v35, %v3513_v11  ;;  %v3533_v4 = vunpack.i.h.bf16 %v3531_v29  ;;  %v3532_v26 = vunpack.i.l.bf16 %v3531_v29  ;;  %v2773_v8 = vld [vmem:[#allocation6 + $0x88] sm:$0xff]  ;;  %v2772_v35 = vld [vmem:[#allocation6 + $0x80] sm:$0xff]  ;;  %v2771_v29 = vld [vmem:[#allocation6 + $0x78] sm:$0xff] }
 0x547   : > { %v3526_v37 = vpop.permute.xlu0 %3525  ;;  %v2769_v11 = vld [vmem:[#allocation6 + $0x68] sm:$0xff] }
 0x548   : > { %v3527_v14 = vunpack.i.l.bf16 %v3526_v37  ;;  %3613 = vxpose.xlu0.b32.cont [5/16] (narrow) %v3612_v28, 8  ;;  %v3528_v20 = vunpack.i.h.bf16 %v3526_v37  ;;  %v2770_v37 = vld [vmem:[#allocation6 + $0x70] sm:$0xff]  ;;  %v2767_v28 = vld [vmem:[#allocation6 + $0x58] sm:$0xff] }
 0x549   : > { %v3541_v46 = vpop.permute.xlu1 %3540 }
 0x54a   : > { %2476 = vxpose.xlu1.b32.cont [5/16] (narrow) %v3527_v14, 8  ;;  %v3542_v9 = vunpack.i.l.bf16 %v3541_v46  ;;  %v3616_v60 = vpack.i.bf16 %v3532_v26, %v3528_v20  ;;  %v3543_v18 = vunpack.i.h.bf16 %v3541_v46  ;;  %v2768_v14 = vld [vmem:[#allocation6 + $0x60] sm:$0xff]  ;;  %v2766_v46 = vld [vmem:[#allocation6 + $0x50] sm:$0xff]  ;;  %v2763_v26 = vld [vmem:[#allocation6 + $0x38] sm:$0xff] }
 0x54b   : > { %v3536_v1 = vpop.permute.xlu0 %3535  ;;  %v2762_v20 = vld [vmem:[#allocation6 + $0x30] sm:$0xff] }
 0x54c   : > { %3615 = vxpose.xlu0.b32.cont [6/16] (narrow) %v3521_v55, 8  ;;  %v2775_v55 = vld [vmem:[#allocation6 + $0x98] sm:$0xff] }
 0x54d   : > { %v3551_v5 = vpop.permute.xlu1 %3550 }
 0x54e   : > { %2477 = vxpose.xlu1.b32.cont [6/16] (narrow) %v3533_v4, 8  ;;  %v2764_v4 = vld [vmem:[#allocation6 + $0x40] sm:$0xff] }
 0x54f   : > { %v3546_v56 = vpop.permute.xlu0 %3545 }
 0x550   : > { %v3548_v23 = vunpack.i.h.bf16 %v3546_v56  ;;  %3617 = vxpose.xlu0.b32.cont [7/16] (narrow) %v3616_v60, 8  ;;  %v3547_v27 = vunpack.i.l.bf16 %v3546_v56  ;;  %v2760_v56 = vld [vmem:[#allocation6 + $0x20] sm:$0xff]  ;;  %v2758_v60 = vld [vmem:[#allocation6 + $0x10] sm:$0xff] }
 0x551   : > { %v3561_v22 = vpop.permute.xlu1 %3560 }
 0x552   : > { %2478 = vxpose.xlu1.b32.cont [7/16] (narrow) %v3542_v9, 8  ;;  %v3620_v2 = vpack.i.bf16 %v3547_v27, %v3543_v18  ;;  %v3563_v41 = vunpack.i.h.bf16 %v3561_v22  ;;  %v3562_v21 = vunpack.i.l.bf16 %v3561_v22  ;;  %v2759_v9 = vld [vmem:[#allocation6 + $0x18] sm:$0xff]  ;;  %v2818_v27 = vld [vmem:[#allocation6 + $0x1f0] sm:$0xff]  ;;  %v2817_v18 = vld [vmem:[#allocation6 + $0x1e8] sm:$0xff] }
 0x553   : > { %v3556_v42 = vpop.permute.xlu0 %3555  ;;  %v2819_v22 = vld [vmem:[#allocation6 + $0x1f8] sm:$0xff] }
 0x554   : > { %v3557_v6 = vunpack.i.l.bf16 %v3556_v42  ;;  %3619 = vxpose.xlu0.b32.cont [8/16] (narrow) %v3536_v1, 8  ;;  %v3558_v45 = vunpack.i.h.bf16 %v3556_v42  ;;  %v2765_v1 = vld [vmem:[#allocation6 + $0x48] sm:$0xff] }
 0x555   : > { %v3571_v53 = vpop.permute.xlu1 %3570  ;;  %v2757_v42 = vld [vmem:[#allocation6 + $0x8] sm:$0xff] }
 0x556   : > { %2479 = vxpose.xlu1.b32.cont [8/16] (narrow) %v3548_v23, 8  ;;  %v3572_v52 = vunpack.i.l.bf16 %v3571_v53  ;;  %v3624_v50 = vpack.i.bf16 %v3562_v21, %v3558_v45  ;;  %v3573_v54 = vunpack.i.h.bf16 %v3571_v53  ;;  %v2756_v23 = vld [vmem:[#allocation6] sm:$0xff]  ;;  %v2813_v53 = vld [vmem:[#allocation6 + $0x1c8] sm:$0xff]  ;;  %v2811_v21 = vld [vmem:[#allocation6 + $0x1b8] sm:$0xff] }
 0x557   : > { %v3566_v49 = vpop.permute.xlu0 %3565  ;;  %v2810_v45 = vld [vmem:[#allocation6 + $0x1b0] sm:$0xff] }
 0x558   : > { %3621 = vxpose.xlu0.b32.cont [9/16] (narrow) %v3620_v2, 8  ;;  %v2814_v2 = vld [vmem:[#allocation6 + $0x1d0] sm:$0xff] }
 0x559   : > { %v3581_v13 = vpop.permute.xlu1 %3580 }
 0x55a   : > { %2480 = vxpose.xlu1.b32.cont [9/16] (narrow) %v3557_v6, 8  ;;  %v2816_v6 = vld [vmem:[#allocation6 + $0x1e0] sm:$0xff] }
 0x55b   : > { %v3576_v61 = vpop.permute.xlu0 %3575 }
 0x55c   : > { %3623 = vxpose.xlu0.b32.cont [10/16] (narrow) %v3551_v5, 8  ;;  %v3578_v30 = vunpack.i.h.bf16 %v3576_v61  ;;  %v3577_v33 = vunpack.i.l.bf16 %v3576_v61  ;;  %v2761_v5 = vld [vmem:[#allocation6 + $0x28] sm:$0xff] }
 0x55d   : > { %v3591_v48 = vpop.permute.xlu1 %3590  ;;  %v2809_v61 = vld [vmem:[#allocation6 + $0x1a8] sm:$0xff] }
 0x55e   : > { %2481 = vxpose.xlu1.b32.cont [10/16] (narrow) %v3563_v41, 8  ;;  %v3628_v7 = vpack.i.bf16 %v3577_v33, %v3573_v54  ;;  %v3593_v59 = vunpack.i.h.bf16 %v3591_v48  ;;  %v3592_v47 = vunpack.i.l.bf16 %v3591_v48  ;;  %v2812_v41 = vld [vmem:[#allocation6 + $0x1c0] sm:$0xff]  ;;  %v2803_v33 = vld [vmem:[#allocation6 + $0x178] sm:$0xff]  ;;  %v2802_v48 = vld [vmem:[#allocation6 + $0x170] sm:$0xff] }
 0x55f   : > { %v3586_v3 = vpop.permute.xlu0 %3585  ;;  %v2801_v54 = vld [vmem:[#allocation6 + $0x168] sm:$0xff] }
 0x560   : > { %3625 = vxpose.xlu0.b32.cont [11/16] (narrow) %v3624_v50, 8  ;;  %v3587_v24 = vunpack.i.l.bf16 %v3586_v3  ;;  %v3588_v57 = vunpack.i.h.bf16 %v3586_v3  ;;  %v2806_v50 = vld [vmem:[#allocation6 + $0x190] sm:$0xff]  ;;  %v2804_v3 = vld [vmem:[#allocation6 + $0x180] sm:$0xff] }
 0x561   : > { %v3601_v63 = vpop.permute.xlu1 %3600 }
 0x562   : > { %2482 = vxpose.xlu1.b32.cont [11/16] (narrow) %v3572_v52, 8  ;;  %v3602_v25 = vunpack.i.l.bf16 %v3601_v63  ;;  %v3632_v62 = vpack.i.bf16 %v3592_v47, %v3588_v57  ;;  %v3603_v34 = vunpack.i.h.bf16 %v3601_v63  ;;  %v2808_v52 = vld [vmem:[#allocation6 + $0x1a0] sm:$0xff]  ;;  %v2797_v63 = vld [vmem:[#allocation6 + $0x148] sm:$0xff]  ;;  %v2795_v57 = vld [vmem:[#allocation6 + $0x138] sm:$0xff] }
 0x563   : > { %v3596_v38 = vpop.permute.xlu0 %3595  ;;  %v2796_v47 = vld [vmem:[#allocation6 + $0x140] sm:$0xff] }
 0x564   : > { %3627 = vxpose.xlu0.b32.cont [12/16] (narrow) %v3566_v49, 8  ;;  %v2815_v49 = vld [vmem:[#allocation6 + $0x1d8] sm:$0xff] }
 0x566   : > { %2483 = vxpose.xlu1.b32.cont [12/16] (narrow) %v3578_v30, 8  ;;  %v2805_v30 = vld [vmem:[#allocation6 + $0x188] sm:$0xff] }
 0x568   : > { %3629 = vxpose.xlu0.b32.cont [13/16] (narrow) %v3628_v7, 8  ;;  %v2799_v7 = vld [vmem:[#allocation6 + $0x158] sm:$0xff] }
 0x56a   : > { %2484 = vxpose.xlu1.b32.cont [13/16] (narrow) %v3587_v24, 8  ;;  %v2800_v24 = vld [vmem:[#allocation6 + $0x160] sm:$0xff] }
 0x56c   : > { %3631 = vxpose.xlu0.b32.cont [14/16] (narrow) %v3581_v13, 8  ;;  %v2807_v13 = vld [vmem:[#allocation6 + $0x198] sm:$0xff] }
 0x56e   : > { %2485 = vxpose.xlu1.b32.cont [14/16] (narrow) %v3593_v59, 8  ;;  %v2798_v59 = vld [vmem:[#allocation6 + $0x150] sm:$0xff] }
 0x570   : > { %3633 = vxpose.xlu0.b32.cont [15/16] (narrow) %v3632_v62, 8  ;;  %v2792_v62 = vld [vmem:[#allocation6 + $0x120] sm:$0xff] }
 0x572   : > { %2486 = vxpose.xlu1.b32.cont [15/16] (narrow) %v3602_v25, 8  ;;  %v2793_v25 = vld [vmem:[#allocation6 + $0x128] sm:$0xff] }
 0x574   : > { %3635 = vxpose.xlu0.b32.end [16/16] (narrow) %v3596_v38, 8  ;;  %v2794_v38 = vld [vmem:[#allocation6 + $0x130] sm:$0xff] }
 0x576   : > { %2487 = vxpose.xlu1.b32.end [16/16] (narrow) %v3603_v34, 8  ;;  %v2791_v34 = vld [vmem:[#allocation6 + $0x118] sm:$0xff] }
 0x5b4   : > { %v3636_v0 = vpop.trf.xlu0 }
 0x5b5   : > { %v3640_v10 = vunpack.i.h.bf16 %v3636_v0  ;;  %v3637_v58 = vunpack.i.l.bf16 %v3636_v0  ;;  %v2935_v0 = vld [vmem:[#allocation8 + $0xf0] sm:$0xff] }
 0x5b6   : > { %v2488_v44 = vpop.trf.xlu1 }
 0x5b7   : > { %2748 = vmatmul.mubr.f32.vlgmr.msra.gmra.mxu1 %v2488_v44  ;;  %2676 = vmatprep.mubr.f32.mxu0 %v3637_v58  ;;  %v2789_v44 = vld [vmem:[#allocation6 + $0x108] sm:$0xff]  ;;  %v2932_v58 = vld [vmem:[#allocation8 + $0xd8] sm:$0xff] }
 0x5b8   : > { %2833 = vmatpush1.msra.mxu1 %v2786_v12  ;;  %2677 = vmatmul.mubr.f32.vlgmr.msra.gmra.mxu0 %v3640_v10  ;;  %v2790_v12 = vld [vmem:[#allocation6 + $0x110] sm:$0xff]  ;;  %v2933_v10 = vld [vmem:[#allocation8 + $0xe0] sm:$0xff] }
 0x5b9   : > { %2834 = vmatprep.subr.mxu1 %v2785_v32  ;;  %v2788_v32 = vld [vmem:[#allocation6 + $0x100] sm:$0xff] }
 0x5ba   : > { %2835 = vmatpush1.msra.mxu1 %v2784_v15  ;;  %v2936_v15 = vld [vmem:[#allocation8 + $0xf8] sm:$0xff] }
 0x5bb   : > { %2836 = vmatprep.subr.mxu1 %v2783_v19  ;;  %v2934_v19 = vld [vmem:[#allocation8 + $0xe8] sm:$0xff]  ;;  %2981 = vmatprep.subr.mxu0 %v2936_v15 }
 0x5bc   : > { %2837 = vmatpush1.msra.mxu1 %v2782_v17  ;;  %2982 = vmatpush1.msra.mxu0 %v2935_v0  ;;  %v2931_v17 = vld [vmem:[#allocation8 + $0xd0] sm:$0xff] }
 0x5bd   : > { %2838 = vmatprep.subr.mxu1 %v2781_v16  ;;  %2983 = vmatprep.subr.mxu0 %v2934_v19  ;;  %v2930_v16 = vld [vmem:[#allocation8 + $0xc8] sm:$0xff] }
 0x5be   : > { %2839 = vmatpush1.msra.mxu1 %v2780_v40  ;;  %2984 = vmatpush1.msra.mxu0 %v2933_v10  ;;  %v2929_v40 = vld [vmem:[#allocation8 + $0xc0] sm:$0xff] }
 0x5bf   : > { %2840 = vmatprep.subr.mxu1 %v2779_v36  ;;  %2985 = vmatprep.subr.mxu0 %v2932_v58  ;;  %v2928_v36 = vld [vmem:[#allocation8 + $0xb8] sm:$0xff] }
 0x5c0   : > { %2841 = vmatpush1.msra.mxu1 %v2778_v43  ;;  %2986 = vmatpush1.msra.mxu0 %v2931_v17  ;;  %v2927_v43 = vld [vmem:[#allocation8 + $0xb0] sm:$0xff] }
 0x5c1   : > { %2842 = vmatprep.subr.mxu1 %v2777_v39  ;;  %2987 = vmatprep.subr.mxu0 %v2930_v16  ;;  %v2926_v39 = vld [vmem:[#allocation8 + $0xa8] sm:$0xff] }
 0x5c2   : > { %2843 = vmatpush1.msra.mxu1 %v2776_v51  ;;  %2988 = vmatpush1.msra.mxu0 %v2929_v40  ;;  %v2925_v51 = vld [vmem:[#allocation8 + $0xa0] sm:$0xff]  ;;  %v2944_v40 = vld [vmem:[#allocation8 + $0x138] sm:$0xff] }
 0x5c3   : > { %2844 = vmatprep.subr.mxu1 %v2775_v55  ;;  %2989 = vmatprep.subr.mxu0 %v2928_v36  ;;  %v2924_v55 = vld [vmem:[#allocation8 + $0x98] sm:$0xff]  ;;  %v2943_v36 = vld [vmem:[#allocation8 + $0x130] sm:$0xff] }
 0x5c4   : > { %2845 = vmatpush1.msra.mxu1 %v2774_v31  ;;  %2990 = vmatpush1.msra.mxu0 %v2927_v43  ;;  %v2923_v31 = vld [vmem:[#allocation8 + $0x90] sm:$0xff]  ;;  %v2942_v43 = vld [vmem:[#allocation8 + $0x128] sm:$0xff] }
 0x5c5   : > { %2846 = vmatprep.subr.mxu1 %v2773_v8  ;;  %2991 = vmatprep.subr.mxu0 %v2926_v39  ;;  %v2922_v8 = vld [vmem:[#allocation8 + $0x88] sm:$0xff]  ;;  %v2941_v39 = vld [vmem:[#allocation8 + $0x120] sm:$0xff] }
 0x5c6   : > { %2847 = vmatpush1.msra.mxu1 %v2772_v35  ;;  %2992 = vmatpush1.msra.mxu0 %v2925_v51  ;;  %v2921_v35 = vld [vmem:[#allocation8 + $0x80] sm:$0xff]  ;;  %v2940_v51 = vld [vmem:[#allocation8 + $0x118] sm:$0xff] }
 0x5c7   : > { %2848 = vmatprep.subr.mxu1 %v2771_v29  ;;  %2993 = vmatprep.subr.mxu0 %v2924_v55  ;;  %v2920_v29 = vld [vmem:[#allocation8 + $0x78] sm:$0xff]  ;;  %v2939_v55 = vld [vmem:[#allocation8 + $0x110] sm:$0xff] }
 0x5c8   : > { %2849 = vmatpush1.msra.mxu1 %v2770_v37  ;;  %2994 = vmatpush1.msra.mxu0 %v2923_v31  ;;  %v2919_v37 = vld [vmem:[#allocation8 + $0x70] sm:$0xff]  ;;  %v2938_v31 = vld [vmem:[#allocation8 + $0x108] sm:$0xff] }
 0x5c9   : > { %2850 = vmatprep.subr.mxu1 %v2769_v11  ;;  %2995 = vmatprep.subr.mxu0 %v2922_v8  ;;  %v2918_v11 = vld [vmem:[#allocation8 + $0x68] sm:$0xff]  ;;  %v2937_v8 = vld [vmem:[#allocation8 + $0x100] sm:$0xff] }
 0x5ca   : > { %2851 = vmatpush1.msra.mxu1 %v2768_v14  ;;  %2996 = vmatpush1.msra.mxu0 %v2921_v35  ;;  %v2917_v14 = vld [vmem:[#allocation8 + $0x60] sm:$0xff]  ;;  %v3085_v35 = vld [vmem:[%s5824_s13 + $0xf8] sm:$0xff] }
 0x5cb   : > { %2852 = vmatprep.subr.mxu1 %v2767_v28  ;;  %2997 = vmatprep.subr.mxu0 %v2920_v29  ;;  %v2916_v28 = vld [vmem:[#allocation8 + $0x58] sm:$0xff] }
 0x5cc   : > { %2853 = vmatpush1.msra.mxu1 %v2766_v46  ;;  %2998 = vmatpush1.msra.mxu0 %v2919_v37  ;;  %v2915_v46 = vld [vmem:[#allocation8 + $0x50] sm:$0xff]  ;;  %v3069_v29 = vld [vmem:[%s5824_s13 + $0x78] sm:$0xff] }
 0x5cd   : > { %2854 = vmatprep.subr.mxu1 %v2765_v1  ;;  %2999 = vmatprep.subr.mxu0 %v2918_v11  ;;  %v2914_v1 = vld [vmem:[#allocation8 + $0x48] sm:$0xff]  ;;  %v3084_v37 = vld [vmem:[%s5824_s13 + $0xf0] sm:$0xff] }
 0x5ce   : > { %2855 = vmatpush1.msra.mxu1 %v2764_v4  ;;  %3000 = vmatpush1.msra.mxu0 %v2917_v14  ;;  %v2913_v4 = vld [vmem:[#allocation8 + $0x40] sm:$0xff]  ;;  %v3068_v11 = vld [vmem:[%s5824_s13 + $0x70] sm:$0xff]  ;;  %v3083_v14 = vld [vmem:[%s5824_s13 + $0xe8] sm:$0xff] }
 0x5cf   : > { %2856 = vmatprep.subr.mxu1 %v2763_v26  ;;  %3001 = vmatprep.subr.mxu0 %v2916_v28  ;;  %v2912_v26 = vld [vmem:[#allocation8 + $0x38] sm:$0xff]  ;;  %v3067_v28 = vld [vmem:[%s5824_s13 + $0x68] sm:$0xff] }
 0x5d0   : > { %2857 = vmatpush1.msra.mxu1 %v2762_v20  ;;  %3002 = vmatpush1.msra.mxu0 %v2915_v46  ;;  %v2911_v20 = vld [vmem:[#allocation8 + $0x30] sm:$0xff]  ;;  %v3082_v46 = vld [vmem:[%s5824_s13 + $0xe0] sm:$0xff] }
 0x5d1   : > { %2858 = vmatprep.subr.mxu1 %v2761_v5  ;;  %3003 = vmatprep.subr.mxu0 %v2914_v1  ;;  %v2910_v5 = vld [vmem:[#allocation8 + $0x28] sm:$0xff]  ;;  %v3066_v1 = vld [vmem:[%s5824_s13 + $0x60] sm:$0xff] }
 0x5d2   : > { %2859 = vmatpush1.msra.mxu1 %v2760_v56  ;;  %3004 = vmatpush1.msra.mxu0 %v2913_v4  ;;  %v2909_v56 = vld [vmem:[#allocation8 + $0x20] sm:$0xff]  ;;  %v3081_v4 = vld [vmem:[%s5824_s13 + $0xd8] sm:$0xff] }
 0x5d3   : > { %2860 = vmatprep.subr.mxu1 %v2759_v9  ;;  %3005 = vmatprep.subr.mxu0 %v2912_v26  ;;  %v2908_v9 = vld [vmem:[#allocation8 + $0x18] sm:$0xff] }
 0x5d4   : > { %2861 = vmatpush1.msra.mxu1 %v2758_v60  ;;  %3006 = vmatpush1.msra.mxu0 %v2911_v20  ;;  %v2907_v60 = vld [vmem:[#allocation8 + $0x10] sm:$0xff]  ;;  %v3065_v26 = vld [vmem:[%s5824_s13 + $0x58] sm:$0xff] }
 0x5d5   : > { %2862 = vmatprep.subr.mxu1 %v2757_v42  ;;  %3007 = vmatprep.subr.mxu0 %v2910_v5  ;;  %v2906_v42 = vld [vmem:[#allocation8 + $0x8] sm:$0xff]  ;;  %v3080_v20 = vld [vmem:[%s5824_s13 + $0xd0] sm:$0xff] }
 0x5d6   : > { %2863 = vmatpush1.msra.mxu1 %v2756_v23  ;;  %3008 = vmatpush1.msra.mxu0 %v2909_v56  ;;  %v2905_v23 = vld [vmem:[#allocation8] sm:$0xff]  ;;  %v3064_v5 = vld [vmem:[%s5824_s13 + $0x50] sm:$0xff]  ;;  %v3079_v56 = vld [vmem:[%s5824_s13 + $0xc8] sm:$0xff] }
 0x5d7   : > { %2864 = vmatprep.subr.mxu1 %v2819_v22  ;;  %3009 = vmatprep.subr.mxu0 %v2908_v9  ;;  %v2968_v22 = vld [vmem:[#allocation8 + $0x1f8] sm:$0xff]  ;;  %v3063_v9 = vld [vmem:[%s5824_s13 + $0x48] sm:$0xff] }
 0x5d8   : > { %2865 = vmatpush2.msra.mxu1 %v2818_v27  ;;  %3010 = vmatpush1.msra.mxu0 %v2907_v60  ;;  %v2967_v27 = vld [vmem:[#allocation8 + $0x1f0] sm:$0xff]  ;;  %v3078_v60 = vld [vmem:[%s5824_s13 + $0xc0] sm:$0xff] }
 0x5d9   : > { %2866 = vmatprep.subr.mxu1 %v2817_v18  ;;  %3011 = vmatprep.subr.mxu0 %v2906_v42  ;;  %v2966_v18 = vld [vmem:[#allocation8 + $0x1e8] sm:$0xff]  ;;  %v3062_v42 = vld [vmem:[%s5824_s13 + $0x40] sm:$0xff] }
 0x5da   : > { %2867 = vmatpush2.msra.mxu1 %v2816_v6  ;;  %3012 = vmatpush1.msra.mxu0 %v2905_v23  ;;  %v2965_v6 = vld [vmem:[#allocation8 + $0x1e0] sm:$0xff]  ;;  %v3077_v23 = vld [vmem:[%s5824_s13 + $0xb8] sm:$0xff] }
 0x5db   : > { %2868 = vmatprep.subr.mxu1 %v2815_v49  ;;  %3013 = vmatprep.subr.mxu0 %v2968_v22  ;;  %v2964_v49 = vld [vmem:[#allocation8 + $0x1d8] sm:$0xff] }
 0x5dc   : > { %2869 = vmatpush2.msra.mxu1 %v2814_v2  ;;  %3014 = vmatpush2.msra.mxu0 %v2967_v27  ;;  %v2963_v2 = vld [vmem:[#allocation8 + $0x1d0] sm:$0xff]  ;;  %v3061_v22 = vld [vmem:[%s5824_s13 + $0x38] sm:$0xff] }
 0x5dd   : > { %2870 = vmatprep.subr.mxu1 %v2813_v53  ;;  %3015 = vmatprep.subr.mxu0 %v2966_v18  ;;  %v2962_v53 = vld [vmem:[#allocation8 + $0x1c8] sm:$0xff]  ;;  %v3076_v27 = vld [vmem:[%s5824_s13 + $0xb0] sm:$0xff] }
 0x5de   : > { %2871 = vmatpush2.msra.mxu1 %v2812_v41  ;;  %3016 = vmatpush2.msra.mxu0 %v2965_v6  ;;  %v2961_v41 = vld [vmem:[#allocation8 + $0x1c0] sm:$0xff]  ;;  %v3060_v18 = vld [vmem:[%s5824_s13 + $0x30] sm:$0xff]  ;;  %v3075_v6 = vld [vmem:[%s5824_s13 + $0xa8] sm:$0xff] }
 0x5df   : > { %2872 = vmatprep.subr.mxu1 %v2811_v21  ;;  %3017 = vmatprep.subr.mxu0 %v2964_v49  ;;  %v2960_v21 = vld [vmem:[#allocation8 + $0x1b8] sm:$0xff]  ;;  %v3059_v49 = vld [vmem:[%s5824_s13 + $0x28] sm:$0xff] }
 0x5e0   : > { %2873 = vmatpush2.msra.mxu1 %v2810_v45  ;;  %3018 = vmatpush2.msra.mxu0 %v2963_v2  ;;  %v2959_v45 = vld [vmem:[#allocation8 + $0x1b0] sm:$0xff]  ;;  %v3074_v2 = vld [vmem:[%s5824_s13 + $0xa0] sm:$0xff] }
 0x5e1   : > { %2874 = vmatprep.subr.mxu1 %v2809_v61  ;;  %3019 = vmatprep.subr.mxu0 %v2962_v53  ;;  %v2958_v61 = vld [vmem:[#allocation8 + $0x1a8] sm:$0xff]  ;;  %v3058_v53 = vld [vmem:[%s5824_s13 + $0x20] sm:$0xff] }
 0x5e2   : > { %2875 = vmatpush2.msra.mxu1 %v2808_v52  ;;  %3020 = vmatpush2.msra.mxu0 %v2961_v41  ;;  %v2957_v52 = vld [vmem:[#allocation8 + $0x1a0] sm:$0xff] }
 0x5e3   : > { %2876 = vmatprep.subr.mxu1 %v2807_v13  ;;  %3021 = vmatprep.subr.mxu0 %v2960_v21  ;;  %v2956_v13 = vld [vmem:[#allocation8 + $0x198] sm:$0xff]  ;;  %v2820_v41 = vld [vmem:[%s5821_s10] sm:$0x3] }
 0x5e4   : > { %2877 = vmatpush2.msra.mxu1 %v2806_v50  ;;  %3022 = vmatpush2.msra.mxu0 %v2959_v45  ;;  %v2955_v50 = vld [vmem:[#allocation8 + $0x190] sm:$0xff] }
 0x5e5   : > { %2878 = vmatprep.subr.mxu1 %v2805_v30  ;;  %3023 = vmatprep.subr.mxu0 %v2958_v61  ;;  %v2954_v30 = vld [vmem:[#allocation8 + $0x188] sm:$0xff] }
 0x5e6   : > { %2879 = vmatpush2.msra.mxu1 %v2804_v3  ;;  %3024 = vmatpush2.msra.mxu0 %v2957_v52  ;;  %v2953_v3 = vld [vmem:[#allocation8 + $0x180] sm:$0xff] }
 0x5e7   : > { %2880 = vmatprep.subr.mxu1 %v2803_v33  ;;  %3025 = vmatprep.subr.mxu0 %v2956_v13  ;;  %v2952_v33 = vld [vmem:[#allocation8 + $0x178] sm:$0xff] }
 0x5e8   : > { %2881 = vmatpush2.msra.mxu1 %v2802_v48  ;;  %3026 = vmatpush2.msra.mxu0 %v2955_v50  ;;  %v2951_v48 = vld [vmem:[#allocation8 + $0x170] sm:$0xff] }
 0x5e9   : > { %2882 = vmatprep.subr.mxu1 %v2801_v54  ;;  %3027 = vmatprep.subr.mxu0 %v2954_v30  ;;  %v2950_v54 = vld [vmem:[#allocation8 + $0x168] sm:$0xff] }
 0x5ea   : > { %2883 = vmatpush2.msra.mxu1 %v2800_v24  ;;  %3028 = vmatpush2.msra.mxu0 %v2953_v3  ;;  %v2949_v24 = vld [vmem:[#allocation8 + $0x160] sm:$0xff] }
 0x5eb   : > { %2884 = vmatprep.subr.mxu1 %v2799_v7  ;;  %3029 = vmatprep.subr.mxu0 %v2952_v33  ;;  %v2948_v7 = vld [vmem:[#allocation8 + $0x158] sm:$0xff] }
 0x5ec   : > { %2885 = vmatpush2.msra.mxu1 %v2798_v59  ;;  %3030 = vmatpush2.msra.mxu0 %v2951_v48  ;;  %v2947_v59 = vld [vmem:[#allocation8 + $0x150] sm:$0xff]  ;;  %v3073_v33 = vld [vmem:[%s5824_s13 + $0x98] sm:$0xff] }
 0x5ed   : > { %2886 = vmatprep.subr.mxu1 %v2797_v63  ;;  %3031 = vmatprep.subr.mxu0 %v2950_v54  ;;  %v2946_v63 = vld [vmem:[#allocation8 + $0x148] sm:$0xff]  ;;  %v3057_v48 = vld [vmem:[%s5824_s13 + $0x18] sm:$0xff]  ;;  %v3072_v54 = vld [vmem:[%s5824_s13 + $0x90] sm:$0xff] }
 0x5ee   : > { %2887 = vmatpush2.msra.mxu1 %v2796_v47  ;;  %3032 = vmatpush2.msra.mxu0 %v2949_v24  ;;  %v2945_v47 = vld [vmem:[#allocation8 + $0x140] sm:$0xff]  ;;  %v3056_v24 = vld [vmem:[%s5824_s13 + $0x10] sm:$0xff] }
 0x5ef   : > { %2888 = vmatprep.subr.mxu1 %v2795_v57  ;;  %3033 = vmatprep.subr.mxu0 %v2948_v7  ;;  %v2600_v57 = vld [vmem:[%s5819_s8] sm:$0x3]  ;;  %v3071_v7 = vld [vmem:[%s5824_s13 + $0x88] sm:$0xff] }
 0x5f0   : > { %2889 = vmatpush2.msra.mxu1 %v2794_v38  ;;  %3034 = vmatpush2.msra.mxu0 %v2947_v59  ;;  %v6154_v38 = vld [vmem:[#allocation24_spill] sm:$0xff] }
 0x5f1   : > { %2890 = vmatprep.subr.mxu1 %v2793_v25  ;;  %3035 = vmatprep.subr.mxu0 %v2946_v63  ;;  %v2605_v25 = vrot.slane %v2600_v57, %v6154_v38  ;;  %v2825_v21 = vrot.slane %v2820_v41, %v6154_v38  ;;  %v3055_v59 = vld [vmem:[%s5824_s13 + $0x8] sm:$0xff]  ;;  %v3070_v63 = vld [vmem:[%s5824_s13 + $0x80] sm:$0xff] }
 0x5f2   : > { %2891 = vmatpush2.msra.mxu1 %v2792_v62  ;;  %3036 = vmatpush2.msra.mxu0 %v2945_v47  ;;  %v6155_v62 = vld [vmem:[#allocation23_spill] sm:$0xff] }
 0x5f3   : > { %2892 = vmatprep.subr.mxu1 %v2791_v34  ;;  %v2609_v34 = vrot.slane %v2600_v57, %v6155_v62  ;;  %3037 = vmatprep.subr.mxu0 %v2944_v40  ;;  %v2829_v45 = vrot.slane %v2820_v41, %v6155_v62  ;;  %v3054_v47 = vld [vmem:[%s5824_s13] sm:$0xff] }
 0x5f4   : > { %2893 = vmatpush2.msra.mxu1 %v2790_v12  ;;  %3038 = vmatpush2.msra.mxu0 %v2943_v36  ;;  %v2969_v57 = vld [vmem:[%s5823_s12] sm:$0x3] }
 0x5f5   : > { %2894 = vmatprep.subr.mxu1 %v2789_v44  ;;  %3039 = vmatprep.subr.mxu0 %v2942_v43 }
 0x5f6   : > { %2895 = vmatpush2.msra.mxu1 %v2788_v32  ;;  %3040 = vmatpush2.msra.mxu0 %v2941_v39 }
 0x5f7   : > { %3041 = vmatprep.subr.mxu0 %v2940_v51  ;;  %3294 = vmatprep.subr.mxu1 %v3085_v35 }
 0x5f8   : > { %3042 = vmatpush2.msra.mxu0 %v2939_v55 }
 0x5f9   : > { %3043 = vmatprep.subr.mxu0 %v2938_v31 }
 0x5fa   : > { %3044 = vmatpush2.msra.mxu0 %v2937_v8 }
 0x677   : > { %v2749_v44 = vpop.f32.mrf.mxu1 }
 0x678   : > { %v2678_v12 = vpop.f32.mrf.mxu0 }
 0x679   : > { %v2679_v32 = vadd.f32 %v2678_v12, %v2605_v25  ;;  %v2751_v10 = vpop.f32.mrf.mxu1  ;;  %v2974_v25 = vrot.slane %v2969_v57, %v6154_v38 }
 0x67a   : > { %v2680_v15 = vpop.f32.mrf.mxu0 }
 0x67b   : > { %v2681_v0 = vadd.f32 %v2680_v15, %v2609_v34  ;;  %v2750_v19 = vadd.f32 %v2749_v44, %v2679_v32  ;;  %v2978_v34 = vrot.slane %v2969_v57, %v6155_v62 }
 0x67d   : > { %v2752_v58 = vadd.f32 %v2751_v10, %v2681_v0  ;;  %v2754_v16 = vmax.f32 %v2750_v19, 0.0 }
 0x67f   : > { %v2755_v17 = vmax.f32 %v2752_v58, 0.0  ;;  %v3086_v58 = vld [vmem:[%s5825_s14] sm:$0x1] }
 0x681   : > { %2896 = vmatprep.mubr.f32.mxu1 %v2755_v17 }
 0x682   : > { %2897 = vmatmul.mubr.f32.vlgmr.msra.gmra.mxu1 %v2754_v16 }
 0x683   : > { %3295 = vmatpush3.msra.mxu1 %v3069_v29 }
 0x684   : > { %3296 = vmatprep.subr.mxu1 %v3084_v37 }
 0x685   : > { %3297 = vmatpush3.msra.mxu1 %v3068_v11 }
 0x686   : > { %3298 = vmatprep.subr.mxu1 %v3083_v14 }
 0x687   : > { %3299 = vmatpush3.msra.mxu1 %v3067_v28 }
 0x688   : > { %3300 = vmatprep.subr.mxu1 %v3082_v46 }
 0x689   : > { %3301 = vmatpush3.msra.mxu1 %v3066_v1 }
 0x68a   : > { %3302 = vmatprep.subr.mxu1 %v3081_v4 }
 0x68b   : > { %3303 = vmatpush3.msra.mxu1 %v3065_v26 }
 0x68c   : > { %3304 = vmatprep.subr.mxu1 %v3080_v20 }
 0x68d   : > { %3305 = vmatpush3.msra.mxu1 %v3064_v5 }
 0x68e   : > { %3306 = vmatprep.subr.mxu1 %v3079_v56 }
 0x68f   : > { %3307 = vmatpush3.msra.mxu1 %v3063_v9 }
 0x690   : > { %3308 = vmatprep.subr.mxu1 %v3078_v60 }
 0x691   : > { %3309 = vmatpush3.msra.mxu1 %v3062_v42 }
 0x692   : > { %3310 = vmatprep.subr.mxu1 %v3077_v23 }
 0x693   : > { %3311 = vmatpush3.msra.mxu1 %v3061_v22 }
 0x694   : > { %3312 = vmatprep.subr.mxu1 %v3076_v27 }
 0x695   : > { %3313 = vmatpush3.msra.mxu1 %v3060_v18 }
 0x696   : > { %3314 = vmatprep.subr.mxu1 %v3075_v6 }
 0x697   : > { %3315 = vmatpush3.msra.mxu1 %v3059_v49 }
 0x698   : > { %3316 = vmatprep.subr.mxu1 %v3074_v2 }
 0x699   : > { %3317 = vmatpush3.msra.mxu1 %v3058_v53 }
 0x69a   : > { %3318 = vmatprep.subr.mxu1 %v3073_v33 }
 0x69b   : > { %3319 = vmatpush3.msra.mxu1 %v3057_v48 }
 0x69c   : > { %3320 = vmatprep.subr.mxu1 %v3072_v54 }
 0x69d   : > { %3321 = vmatpush3.msra.mxu1 %v3056_v24 }
 0x69e   : > { %3322 = vmatprep.subr.mxu1 %v3071_v7 }
 0x69f   : > { %3323 = vmatpush3.msra.mxu1 %v3055_v59 }
 0x6a0   : > { %3324 = vmatprep.subr.mxu1 %v3070_v63 }
 0x6a1   : > { %3325 = vmatpush3.msra.mxu1 %v3054_v47 }
 0x742   : > { %v2898_v61 = vpop.f32.mrf.mxu1 }
 0x743   : > { %v2899_v52 = vadd.f32 %v2898_v61, %v2825_v21 }
 0x744   : > { %v2900_v13 = vpop.f32.mrf.mxu1 }
 0x745   : > { %v2901_v50 = vadd.f32 %v2900_v13, %v2829_v45  ;;  %v2903_v3 = vmax.f32 %v2899_v52, 0.0 }
 0x747   : > { %v2904_v30 = vmax.f32 %v2901_v50, 0.0 }
 0x749   : > { %3045 = vmatprep.mubr.f32.mxu0 %v2904_v30 }
 0x74a   : > { %3046 = vmatmul.mubr.f32.vlgmr.msra.gmra.mxu0 %v2903_v3 }
 0x80a   : > { %v3047_v12 = vpop.f32.mrf.mxu0 }
 0x80b   : > { %v3048_v44 = vadd.f32 %v3047_v12, %v2974_v25 }
 0x80c   : > { %v3049_v32 = vpop.f32.mrf.mxu0 }
 0x80d   : > { %v3050_v15 = vadd.f32 %v3049_v32, %v2978_v34  ;;  %v3052_v19 = vmax.f32 %v3048_v44, 0.0 }
 0x80f   : > { %v3053_v0 = vmax.f32 %v3050_v15, 0.0 }
 0x811   : > { %3151 = vmatprep.mubr.f32.mxu1 %v3053_v0 }
 0x812   : > { %3152 = vmatmul.mubr.f32.vlgmr.msra.gmra.mxu1 %v3052_v19 }
 0x8d2   : > { %v3326_v10 = vpop.f32.mrf.mxu1 }
 0x8d4   : > { %v3327_v17 = vpop.f32.mrf.mxu1 }
 0x8d5   : > { %v3328_v16 = vadd.f32 %v3327_v17, %v3326_v10 }
 0x8d7   : > { %v3154_v38 = vadd.f32 %v3328_v16, %v3086_v58 }
 0x8d9   : > { %3158 = vst.msk [vmem:[%s5069_s16] sm:$0x1] %vm3157_vm2, %v3154_v38 }
 0x8da PF: > { %s3291_s23 = sshll.u32 %s3807_s22, 4  ;;  %s6157_s30 = sld [smem:[#allocation68_spill]] }
 0x8db   : > { %s3172_s15 = sshll.u32 %s5069_s16, 4  ;;  %s3160_s27 = scalar_lea.sflag [#allocation5], %s552_s18  ;;  %s3173_s15 = int_to_ptr.vmem [resolvable:$true] %s3172_s15 }
 0x8dc   : > { %s3719_s29 = scalar_lea.vmem %s3173_s15, 16  ;;  %s3835_s24 = smov [#allocation9]  }
 0x8dd   : > { %p3720_p8 = scmp.ne.s32.totalorder %s3173_s15, %s3719_s29  ;;  %s3723_s17 = sshll.u32 %s3835_s24, 4  ;;  %s3724_s17 = int_to_ptr.vmem [resolvable:$false] %s3723_s17 }
 0x8de   : > { %s3725_s20 = scalar_lea.vmem %s3724_s17, 32  ;;  %p3726_p2 = scmp.lt.s32.totalorder %s3173_s15, %s3724_s17 }
 0x8df   : > { %p3721_p11 = pnand %p3720_p8, %p3966_p3  ;;  %p3727_p4 = scmp.lt.s32.totalorder %s3725_s20, %s3719_s29 }
 0x8e0   : > { %s3170_s28 = scalar_lea.hbm %s6157_s30, %s3291_s23 }
 0x8e1   : > { %p3722_p12 = pneg %p3721_p11  ;;  %p3728_p5 = por %p3727_p4, %p3726_p2 }
 0x8e3   : > { %p3729_p6 = pnand %p3728_p5, %p3722_p12 }
 0x8e5   : > { %3732 = shalt.err (!%p3729_p6)
}
 0x8e6   : > { %s3733_s22 = scalar_lea.hbm %s3170_s28, 16  ;;  %s3737_s23 = scalar_lea.hbm %s6157_s30, 32 }
 0x8e7   : > { %p3734_p7 = scmp.ne.s32.totalorder %s3170_s28, %s3733_s22  ;;  %p3738_p0 = scmp.lt.s32.totalorder %s3170_s28, %s6157_s30 }
 0x8e8   : > { %p3739_p1 = scmp.lt.s32.totalorder %s3737_s23, %s3733_s22 }
 0x8e9   : > { %p3735_p10 = pnand %p3734_p7, %p3966_p3 }
 0x8ea   : > { %p3740_p8 = por %p3739_p1, %p3738_p0 }
 0x8eb   : > { %p3736_p13 = pneg %p3735_p10 }
 0x8ed   : > { %p3741_p11 = pnand %p3740_p8, %p3736_p13 }
 0x8ef   : > { %3744 = shalt.err (!%p3741_p11)
}
 0x8f0   : > { %3341 = dma.vmem_to_hbm [thread:$0]  (%p3966_p3), %s3173_s15, 16, %s3170_s28, %s3160_s27  }
 0x8f1 PF: > { %s6158_s29 = sld [smem:[#allocation17_spill]] }
 0x8f2   : > { %s6159_s24 = sld [smem:[#allocation13_spill]] }
 0x8f7   : > { %p3363_p12 = scmp.ge.s32.totalorder %s6158_s29, 2 }
 0x8f8   : > { %s3184_s20 = sand.u32 1, %s6159_s24  }
 0x8f9   : > { %p3354_p2 = pnand %p3363_p12, %p3976_p9  ;;  %s3185_s18 = scalar_lea.sflag [#allocation5], %s3184_s20 }
 0x8fb   : > { %p3355_p4 = pneg %p3354_p2 }
 0x8fd   : > { %3786 = dma.done.wait (%p3355_p4), %s3185_s18, 16  }
 0x8fe   : > { %3788 = vsyncadd (%p3355_p4), %s3185_s18, 4294967280  ;;  %s30_s25 = sadd.s32 1, %s6158_s29   ;;  %s6161_s22 = sld [smem:[#allocation14_spill]] }
 0x8ff   : > { %p27_p5 = scmp.ge.s32.totalorder %s30_s25, 10   ;;  %s6162_s20 = sld [smem:[#allocation22_spill]] }
 0x900   : > { %s6163_s21 = sld [smem:[#allocation15_spill]]  ;;  %s6167_s18 = smov %s3795_s19 }
 0x901   : > { %s6164_s28 = sld [smem:[#allocation16_spill]] }
 0x902   : > { %s6165_s23 = sld [smem:[#allocation18_spill]] }
 0x903   : > { %s6166_s24 = sld [smem:[#allocation20_spill]]  ;;  %29 = sbr.rel (!%p27_p5) target bundleno = 9 (0x9), region = 136 }
 0x904   : > { %s6168_s19 = smov %s6161_s22 }
 0x907   : > { %s6169_s22 = smov %s6164_s28 }
 0x908   :  { %3189 = vsyncpa [#allocation4], 1 }
 0x909   :  { %3191 = vsyncpa [#allocation4 + $0x1], 1 }
 0x90a   :  { %3192 = vsyncpa [#allocation7], 1 }
 0x90b   :  { %3193 = vsyncpa [#allocation5], 1 }
 0x90c   :  { %3195 = vsyncpa [#allocation5 + $0x1], 1 }

</bundles_post_ra>
